<compile_context>
chip_gen: v6e
topology: v6e:2x2x1
jax: 0.10.0
libtpu: 0.0.40
codegen_flags: <defaults>
</compile_context>

<pallas_src>
import functools

import jax
import jax.numpy as jnp
from jax import lax
from jax.experimental import pallas as pl
from jax.experimental.pallas import tpu as pltpu


# ----------------------- reference-layout parameter init --------------------

def init_lenet_params(key, num_class):
    """PyTorch-style uniform(-1/sqrt(fan_in), 1/sqrt(fan_in)) init, torch layouts."""
    def u(k, shape, fan_in):
        bound = 1.0 / (fan_in ** 0.5)
        return jax.random.uniform(k, shape, jnp.float32, -bound, bound)

    ks = jax.random.split(key, 10)
    return {
        "C1_w": u(ks[0], (6, 1, 5, 5), 25),      "C1_b": u(ks[1], (6,), 25),
        "C3_w": u(ks[2], (16, 6, 5, 5), 150),    "C3_b": u(ks[3], (16,), 150),
        "C5_w": u(ks[4], (120, 16, 5, 5), 400),  "C5_b": u(ks[5], (120,), 400),
        "F6_w": u(ks[6], (84, 120), 120),        "F6_b": u(ks[7], (84,), 120),
        "Out_w": u(ks[8], (num_class, 84), 84),  "Out_b": u(ks[9], (num_class,), 84),
    }


# ------------------------- plain-JAX building blocks -------------------------

def _conv_valid(x, w):
    return lax.conv_general_dilated(x, w, (1, 1), "VALID",
                                    dimension_numbers=("NCHW", "OIHW", "NCHW"))


def _avgpool2(x):
    s = lax.reduce_window(x, 0.0, lax.add, (1, 1, 2, 2), (1, 1, 2, 2), "VALID")
    return s * 0.25


def lenet_reference(params, x_nchw):
    """Straightforward JAX port of the PyTorch module (correctness oracle)."""
    p = params
    x = x_nchw.astype(jnp.float32)
    x = _conv_valid(x, p["C1_w"]) + p["C1_b"][None, :, None, None]
    x = jax.nn.sigmoid(_avgpool2(x))
    x = _conv_valid(x, p["C3_w"]) + p["C3_b"][None, :, None, None]
    x = _avgpool2(x)
    x = _conv_valid(x, p["C5_w"]) + p["C5_b"][None, :, None, None]
    x = x.reshape(x.shape[0], 120)                 # torch.squeeze on (B,120,1,1)
    x = x @ p["F6_w"].T + p["F6_b"]
    x = x @ p["Out_w"].T + p["Out_b"]
    return x


# ----------------------- host-side one-time weight fold ----------------------

_IMG = 32
_K_IN = _IMG * _IMG          # 1024
_HID = 6 * 14 * 14           # 1176 (post-S2 activation size)
_HID_PAD = 1280              # next multiple of 128


def prepare_params(params, num_class):
    """Fold the two affine halves of LeNet (everything before / after the single
    sigmoid) into two dense matrices + bias rows, padded to MXU/lane-friendly
    shapes.  Exact in f32; the only approximation is the final bf16 cast."""
    f32 = jnp.float32
    p = {k: jnp.asarray(v, f32) for k, v in params.items()}

    def pre_sigmoid(img):                                 # (32,32) -> (1176,)
        y = _conv_valid(img[None, None], p["C1_w"]) + p["C1_b"][None, :, None, None]
        return _avgpool2(y).reshape(-1)

    def post_sigmoid(a1_flat):                            # (1176,) -> (num_class,)
        y = a1_flat.reshape(1, 6, 14, 14)
        y = _conv_valid(y, p["C3_w"]) + p["C3_b"][None, :, None, None]
        y = _avgpool2(y)
        y = _conv_valid(y, p["C5_w"]) + p["C5_b"][None, :, None, None]
        y = y.reshape(120)
        y = p["F6_w"] @ y + p["F6_b"]
        return p["Out_w"] @ y + p["Out_b"]

    zero_img = jnp.zeros((_IMG, _IMG), f32)
    b1 = pre_sigmoid(zero_img)                                       # (1176,)
    w1 = jax.jacfwd(pre_sigmoid)(zero_img).reshape(_HID, _K_IN).T    # (1024, 1176)

    zero_hid = jnp.zeros((_HID,), f32)
    b2 = post_sigmoid(zero_hid)                                      # (nc,)
    w2 = jax.jacfwd(post_sigmoid)(zero_hid).T                        # (1176, nc)

    ncp = ((num_class + 127) // 128) * 128
    w1p = jnp.zeros((_K_IN, _HID_PAD), f32).at[:, :_HID].set(w1)
    b1p = jnp.zeros((1, _HID_PAD), f32).at[:, :_HID].set(b1)
    w2p = jnp.zeros((_HID_PAD, ncp), f32).at[:_HID, :num_class].set(w2)
    b2p = jnp.zeros((1, ncp), f32).at[:, :num_class].set(b2)
    # Padded hidden lanes become sigmoid(0)=0.5 but hit zero rows of w2p -> add 0.

    return {"w1": w1p.astype(jnp.bfloat16), "b1": b1p,
            "w2": w2p.astype(jnp.bfloat16), "b2": b2p}


# -------------------------------- fused kernel -------------------------------

def _lenet_kernel(x_ref, w1_ref, b1_ref, w2_ref, b2_ref, o_ref):
    f32 = jnp.float32
    # C1 + S2 folded: one MXU matmul (K=1024), f32 accumulation, bias.
    z1 = jnp.dot(x_ref[...], w1_ref[...], preferred_element_type=f32) + b1_ref[...]
    a1 = 1.0 / (1.0 + jnp.exp(-z1))                       # exact sigmoid (EUP)
    # C3+S4+C5+F6+Out folded: one MXU matmul (K=1280), bias, lane-dense store.
    o_ref[...] = (jnp.dot(a1.astype(jnp.bfloat16), w2_ref[...],
                          preferred_element_type=f32) + b2_ref[...])


def _batch_tiling(batch):
    """Batch tile ~= ceil(B/2) rounded up to a multiple of 8, capped at 256
    (MXU height on v6e/v7x; 2x128 rows on v5e); always >= 2 grid steps so the
    second v7x TensorCore gets work.  Returns (tile, padded_batch)."""
    bt = min(256, max(8, ((batch + 15) // 16) * 8))
    steps = max(2, pl.cdiv(batch, bt))
    return bt, steps * bt


@functools.partial(jax.jit, static_argnames=("num_class",))
def lenet_forward(prep, x_nchw, *, num_class):
    w1, b1, w2, b2 = prep["w1"], prep["b1"], prep["w2"], prep["b2"]
    batch = x_nchw.shape[0]
    ncp = w2.shape[1]
    bt, batch_pad = _batch_tiling(batch)

    # Cin == 1: flatten each image to a 1024-lane row; pre-cast to bf16.
    x = x_nchw.reshape(batch, _K_IN).astype(jnp.bfloat16)
    if batch_pad != batch:
        x = jnp.pad(x, ((0, batch_pad - batch), (0, 0)))

    const2d = lambda b: (0, 0)                 # weights: VMEM-resident
    out = pl.pallas_call(
        _lenet_kernel,
        grid=(batch_pad // bt,),
        out_shape=jax.ShapeDtypeStruct((batch_pad, ncp), jnp.float32),
        in_specs=[pl.BlockSpec((bt, _K_IN), lambda b: (b, 0)),
                  pl.BlockSpec(w1.shape, const2d),
                  pl.BlockSpec(b1.shape, const2d),
                  pl.BlockSpec(w2.shape, const2d),
                  pl.BlockSpec(b2.shape, const2d)],
        out_specs=pl.BlockSpec((bt, ncp), lambda b: (b, 0)),
        compiler_params=pltpu.CompilerParams(
            dimension_semantics=("parallel",)),
    )(x, w1, b1, w2, b2)
    return out[:batch, :num_class]


# ----------------------------------- demo ------------------------------------

if __name__ == "__main__":
    num_class = 10
    key = jax.random.PRNGKey(0)
    pkey, xkey = jax.random.split(key)
    params = init_lenet_params(pkey, num_class)
    prep = prepare_params(params, num_class)          # one-time weight fold

    # LeNet's architecture requires 32x32 spatial input; small demo batch = 2.
    x = jax.random.normal(xkey, (2, 1, 32, 32), jnp.float32)   # NCHW

    out = lenet_forward(prep, x, num_class=num_class)
    out = jax.block_until_ready(out)
    assert out.shape == (2, num_class)
    assert bool(jnp.all(jnp.isfinite(out)))

    # Numerical sanity check against a plain-JAX port of the PyTorch module
    # (bf16 matmul operands -> loose tolerance).
    ref = lenet_reference(params, x)
    err = float(jnp.max(jnp.abs(out - ref)))
    assert err < 5e-2, f"max abs err {err}"
    print("KERNEL_OK")
</pallas_src>

<mosaic_0001>
module attributes {stable_mosaic.version = 11 : i64} {
  func.func @_lenet_kernel(%arg0: i32, %arg1: memref<8x1024xbf16, #tpu.memory_space<vmem>>, %arg2: memref<1024x1280xbf16, #tpu.memory_space<vmem>>, %arg3: memref<1x1280xf32, #tpu.memory_space<vmem>>, %arg4: memref<1280x128xbf16, #tpu.memory_space<vmem>>, %arg5: memref<1x128xf32, #tpu.memory_space<vmem>>, %arg6: memref<8x128xf32, #tpu.memory_space<vmem>>) attributes {dimension_semantics = [#tpu.dimension_semantics<parallel>], iteration_bounds = array<i64: 2>, scalar_prefetch = 0 : i64, scratch_operands = 0 : i64, tpu.core_type = #tpu.core_type<tc>, window_params = [{transform_indices = @transform_0, window_bounds = array<i64: 8, 1024>}, {pipeline_mode = #tpu.pipeline_mode<synchronous>, transform_indices = @transform_1, window_bounds = array<i64: 1024, 1280>}, {pipeline_mode = #tpu.pipeline_mode<synchronous>, transform_indices = @transform_2, window_bounds = array<i64: 1, 1280>}, {pipeline_mode = #tpu.pipeline_mode<synchronous>, transform_indices = @transform_3, window_bounds = array<i64: 1280, 128>}, {pipeline_mode = #tpu.pipeline_mode<synchronous>, transform_indices = @transform_4, window_bounds = array<i64: 1, 128>}, {transform_indices = @transform_5, window_bounds = array<i64: 8, 128>}]} {
    %c0 = arith.constant 0 : index
    %c0_0 = arith.constant 0 : index
    %0 = vector.load %arg1[%c0, %c0_0] : memref<8x1024xbf16, #tpu.memory_space<vmem>>, vector<8x1024xbf16>
    %c0_1 = arith.constant 0 : index
    %c0_2 = arith.constant 0 : index
    %1 = vector.load %arg2[%c0_1, %c0_2] : memref<1024x1280xbf16, #tpu.memory_space<vmem>>, vector<1024x1280xbf16>
    %cst = arith.constant dense<0.000000e+00> : vector<8x1280xf32>
    %2 = tpu.matmul %0, %1, %cst {dimension_numbers = #tpu.dot_dimension_numbers<[1], [0], [0], [1], [0, 0, 1, 1], [], []>} : vector<8x1024xbf16>, vector<1024x1280xbf16>, vector<8x1280xf32> -> vector<8x1280xf32>
    %c0_3 = arith.constant 0 : index
    %c0_4 = arith.constant 0 : index
    %3 = vector.load %arg3[%c0_3, %c0_4] : memref<1x1280xf32, #tpu.memory_space<vmem>>, vector<1x1280xf32>
    %4 = vector.broadcast %3 : vector<1x1280xf32> to vector<8x1280xf32>
    %5 = arith.addf %2, %4 : vector<8x1280xf32>
    %cst_5 = arith.constant 0.000000e+00 : f32
    %6 = vector.broadcast %cst_5 : f32 to vector<8x1280xf32>
    %7 = arith.subf %6, %5 : vector<8x1280xf32>
    %8 = math.exp %7 : vector<8x1280xf32>
    %cst_6 = arith.constant 1.000000e+00 : f32
    %9 = vector.broadcast %cst_6 : f32 to vector<8x1280xf32>
    %10 = arith.addf %9, %8 : vector<8x1280xf32>
    %cst_7 = arith.constant 1.000000e+00 : f32
    %11 = vector.broadcast %cst_7 : f32 to vector<8x1280xf32>
    %12 = arith.divf %11, %10 : vector<8x1280xf32>
    %13 = arith.truncf %12 : vector<8x1280xf32> to vector<8x1280xbf16>
    %c0_8 = arith.constant 0 : index
    %c0_9 = arith.constant 0 : index
    %14 = vector.load %arg4[%c0_8, %c0_9] : memref<1280x128xbf16, #tpu.memory_space<vmem>>, vector<1280x128xbf16>
    %cst_10 = arith.constant dense<0.000000e+00> : vector<8x128xf32>
    %15 = tpu.matmul %13, %14, %cst_10 {dimension_numbers = #tpu.dot_dimension_numbers<[1], [0], [0], [1], [0, 0, 1, 1], [], []>} : vector<8x1280xbf16>, vector<1280x128xbf16>, vector<8x128xf32> -> vector<8x128xf32>
    %c0_11 = arith.constant 0 : index
    %c0_12 = arith.constant 0 : index
    %16 = vector.load %arg5[%c0_11, %c0_12] : memref<1x128xf32, #tpu.memory_space<vmem>>, vector<1x128xf32>
    %17 = vector.broadcast %16 : vector<1x128xf32> to vector<8x128xf32>
    %18 = arith.addf %15, %17 : vector<8x128xf32>
    %c0_13 = arith.constant 0 : index
    %c0_14 = arith.constant 0 : index
    %19 = vector.load %arg6[%c0_13, %c0_14] : memref<8x128xf32, #tpu.memory_space<vmem>>, vector<8x128xf32>
    tpu.vector_store %arg6[%c0_13, %c0_14], %18 {strides = array<i32>} : memref<8x128xf32, #tpu.memory_space<vmem>>, vector<8x128xf32>,
    return
  }
  func.func @transform_0(%arg0: i32) -> (i32, i32) {
    %c0_i32 = arith.constant 0 : i32
    %c0_i32_0 = arith.constant 0 : i32
    return %arg0, %c0_i32 : i32, i32
  }
  func.func @transform_1(%arg0: i32) -> (i32, i32) {
    %c0_i32 = arith.constant 0 : i32
    %c0_i32_0 = arith.constant 0 : i32
    %c0_i32_1 = arith.constant 0 : i32
    return %c0_i32, %c0_i32_0 : i32, i32
  }
  func.func @transform_2(%arg0: i32) -> (i32, i32) {
    %c0_i32 = arith.constant 0 : i32
    %c0_i32_0 = arith.constant 0 : i32
    %c0_i32_1 = arith.constant 0 : i32
    return %c0_i32, %c0_i32_0 : i32, i32
  }
  func.func @transform_3(%arg0: i32) -> (i32, i32) {
    %c0_i32 = arith.constant 0 : i32
    %c0_i32_0 = arith.constant 0 : i32
    %c0_i32_1 = arith.constant 0 : i32
    return %c0_i32, %c0_i32_0 : i32, i32
  }
  func.func @transform_4(%arg0: i32) -> (i32, i32) {
    %c0_i32 = arith.constant 0 : i32
    %c0_i32_0 = arith.constant 0 : i32
    %c0_i32_1 = arith.constant 0 : i32
    return %c0_i32, %c0_i32_0 : i32, i32
  }
  func.func @transform_5(%arg0: i32) -> (i32, i32) {
    %c0_i32 = arith.constant 0 : i32
    %c0_i32_0 = arith.constant 0 : i32
    return %arg0, %c0_i32 : i32, i32
  }
}

</mosaic_0001>

<bundles_post_ra>
// kernel: lenet_forward.1
= control target key start
LH: loop header
LB: loop body
LE: loop exit
PB: predicated region body
PF: predicated region fallthrough
CT: control target
= control target key end

     0   :  { %10 = vsyncpa [#allocation3], 0  ;;  %s8449_s0 = inlined_call_operand.vmem [shape: bf16[16,1024], index: 0, kind: input, shape index: {}]   ;;  %s8450_s1 = inlined_call_operand.hbm [shape: bf16[1024,1280], index: 1, kind: input, shape index: {}]   ;;  %s8451_s2 = inlined_call_operand.hbm [shape: f32[1,1280], index: 2, kind: input, shape index: {}]   ;;  %s8452_s3 = inlined_call_operand.hbm [shape: bf16[1280,128], index: 3, kind: input, shape index: {}]   ;;  %s8453_s4 = inlined_call_operand.hbm [shape: f32[1,128], index: 4, kind: input, shape index: {}]   ;;  %s8454_s5 = inlined_call_operand.vmem [shape: f32[16,128], index: 5, kind: output, shape index: {}]  }
   0x1   :  { %11 = vsyncpa [#allocation5], 0 }
   0x2   :  { %12 = vsyncpa [#allocation8], 0  ;;  %s8200_s18 = smov 0  }
   0x3 LB: > { %s8162_s19 = smov [#allocation4]   ;;  %s8206_s21 = sadd.s32 4294967295, %s8160_s18   ;;  %s8160_s18 = sphi %s8200_s18, %s18_s18  }
   0x4   : > { %s185_s20 = sshll.u32 %s8162_s19, 4  ;;  %p6039_p0 = scmp.ge.s32.totalorder %s8160_s18, 1  ;;  %s186_s20 = int_to_ptr.vmem [resolvable:$true] %s185_s20 }
   0x5   : > { %p159_p1 = scmp.lt.s32.totalorder %s8160_s18, 3  ;;  %p6924_p2 = scmp.eq.s32.totalorder %s8206_s21, 0 }
   0x6   : > { %s8163_s23 = smov [#allocation2]   ;;  %s8164_s26 = smov [#allocation6]  }
   0x7   : > { %p8211_p3 = pnand %p6039_p0, %p159_p1  ;;  %s171_s24 = sshll.u32 %s8163_s23, 4  ;;  %s8217_s24 = int_to_ptr.vmem [resolvable:$true] %s171_s24 }
   0x8   : > { %s195_s27 = sshll.u32 %s8164_s26, 4  ;;  %s8049_s28 = scalar_lea.vmem %s186_s20, 160  ;;  %s8225_s27 = int_to_ptr.vmem [resolvable:$true] %s195_s27 }
   0x9   : > { %p6911_p4 = pneg %p8211_p3  ;;  %p8050_p7 = scmp.ne.s32.totalorder %s186_s20, %s8049_s28 }
   0xa   : > { %p8057_p10 = scmp.lt.s32.totalorder %s186_s20, %s186_s20  ;;  %p8058_p11 = scmp.lt.s32.totalorder %s8049_s28, %s8049_s28 }
   0xb   : > { %p8221_p5 = pnand %p6924_p2, %p6911_p4 }
   0xc   : > { %p8059_p12 = por %p8058_p11, %p8057_p10 }
   0xd   : > { %p8040_p6 = pneg %p8221_p5 }
   0xf   : > { %p8052_p8 = pnand %p8050_p7, %p8040_p6 }
  0x11   : > { %p8053_p9 = pneg %p8052_p8 }
  0x13   : > { %p8060_p13 = pnand %p8059_p12, %p8053_p9 }
  0x15   : > { %8063 = shalt.err (!%p8060_p13)
}
  0x16   : > { %6917 = dma.hbm_to_vmem [thread:$0]  (!%p8221_p5), %s8451_s2, 160, %s186_s20, [#allocation5]  }
  0x17   : > { %s8075_s6 = scalar_lea.vmem %s8217_s24, 81920  ;;  %p8083_p7 = scmp.lt.s32.totalorder %s8217_s24, %s8217_s24 }
  0x18   : > { %p8076_p0 = scmp.ne.s32.totalorder %s8217_s24, %s8075_s6  ;;  %p8084_p8 = scmp.lt.s32.totalorder %s8075_s6, %s8075_s6 }
  0x1a   : > { %p8078_p1 = pnand %p8076_p0, %p8040_p6  ;;  %p8085_p9 = por %p8084_p8, %p8083_p7 }
  0x1c   : > { %p8079_p4 = pneg %p8078_p1 }
  0x1e   : > { %p8086_p10 = pnand %p8085_p9, %p8079_p4 }
  0x20   : > { %8089 = shalt.err (!%p8086_p10)
}
  0x21   : > { %s8165_s7 = smov 640   ;;  %s8166_s8 = smov 40  }
  0x22   : > { %6914 = dma.hbm_to_vmem [thread:$0]  (!%p8221_p5), %s8450_s1, 81920, %s8217_s24, [#allocation3], %s8165_s7, %s8165_s7, %s8166_s8  }
  0x23   : > { %s8101_s11 = scalar_lea.vmem %s8225_s27, 10240  ;;  %p8109_p0 = scmp.lt.s32.totalorder %s8225_s27, %s8225_s27 }
  0x24   : > { %p8102_p11 = scmp.ne.s32.totalorder %s8225_s27, %s8101_s11  ;;  %p8110_p1 = scmp.lt.s32.totalorder %s8101_s11, %s8101_s11 }
  0x26   : > { %p8104_p12 = pnand %p8102_p11, %p8040_p6  ;;  %p8111_p4 = por %p8110_p1, %p8109_p0 }
  0x28   : > { %p8105_p13 = pneg %p8104_p12 }
  0x2a   : > { %p8112_p7 = pnand %p8111_p4, %p8105_p13 }
  0x2c   : > { %8115 = shalt.err (!%p8112_p7)
}
  0x2d   : > { %s8167_s12 = smov 64   ;;  %s8168_s13 = smov 4  }
  0x2e   : > { %6920 = dma.hbm_to_vmem [thread:$0]  (!%p8221_p5), %s8452_s3, 10240, %s8225_s27, [#allocation5], %s8167_s12, %s8167_s12, %s8168_s13  }
  0x2f   : > { %s8169_s16 = smov [#allocation7]  }
  0x30   : > { %s209_s17 = sshll.u32 %s8169_s16, 4  ;;  %s210_s17 = int_to_ptr.vmem [resolvable:$true] %s209_s17 }
  0x31   : > { %s8127_s19 = scalar_lea.vmem %s210_s17, 16  ;;  %s8134_s20 = scalar_lea.vmem %s210_s17, 32 }
  0x32   : > { %p8128_p8 = scmp.ne.s32.totalorder %s210_s17, %s8127_s19  ;;  %p8135_p11 = scmp.lt.s32.totalorder %s210_s17, %s210_s17 }
  0x33   : > { %p8136_p12 = scmp.lt.s32.totalorder %s8134_s20, %s8127_s19 }
  0x34   : > { %p8130_p9 = pnand %p8128_p8, %p8040_p6 }
  0x35   : > { %p8137_p13 = por %p8136_p12, %p8135_p11 }
  0x36   : > { %p8131_p10 = pneg %p8130_p9 }
  0x38   : > { %p8138_p0 = pnand %p8137_p13, %p8131_p10 }
  0x3a   : > { %8141 = shalt.err (!%p8138_p0)
}
  0x3b   : > { %6923 = dma.hbm_to_vmem [thread:$0]  (!%p8221_p5), %s8453_s4, 16, %s210_s17, [#allocation8]  }
  0x3c   : > { %230 = sbr.rel (%p8211_p3) target bundleno = 1147 (0x47b), region = 40 }
  0x41   : > { %8147 = dma.done.wait (%p6924_p2), [#allocation3], 81920  }
  0x42   : > { %8149 = vsyncadd (%p6924_p2), [#allocation3], 4294885376 }
  0x43   : > { %8151 = dma.done.wait (%p6924_p2), [#allocation5], 10400  }
  0x44   : > { %8153 = vsyncadd (%p6924_p2), [#allocation5], 4294956896 }
  0x45   : > { %8155 = dma.done.wait (%p6924_p2), [#allocation8], 16  }
  0x46   : > { %8157 = vsyncadd (%p6924_p2), [#allocation8], 4294967280  ;;  %v6948_v0 = vld [vmem:[#allocation2 + $0x234] ss:$40 sps:$4 sm:$0xff]   ;;  %v6952_v2 = vld [vmem:[#allocation2 + $0x230] ss:$40 sps:$4 sm:$0xff]  }
  0x47   : > { %v6950_v1 = vld [vmem:[#allocation2 + $0x734] ss:$40 sps:$4 sm:$0xff]   ;;  %4205 = vmatprep.subr.bf16.mxu0 %v6948_v0  ;;  %v6953_v3 = vld [vmem:[#allocation2 + $0x730] ss:$40 sps:$4 sm:$0xff]   ;;  %v6954_v4 = vld [vmem:[#allocation2 + $0x1e4] ss:$40 sps:$4 sm:$0xff]  }
  0x48   : > { %4246 = vmatprep.subr.bf16.mxu1 %v6950_v1  ;;  %4206 = vmatpush1.bf16.msra.mxu0 %v6952_v2  ;;  %v6956_v5 = vld [vmem:[#allocation2 + $0x6e4] ss:$40 sps:$4 sm:$0xff]   ;;  %v6958_v6 = vld [vmem:[#allocation2 + $0x1e0] ss:$40 sps:$4 sm:$0xff]   ;;  %v6960_v8 = vld [vmem:[#allocation2 + $0x194] ss:$40 sps:$4 sm:$0xff]  }
  0x49   : > { %4247 = vmatpush1.bf16.msra.mxu1 %v6953_v3  ;;  %4207 = vmatprep.subr.bf16.mxu0 %v6954_v4  ;;  %v6959_v7 = vld [vmem:[#allocation2 + $0x6e0] ss:$40 sps:$4 sm:$0xff]   ;;  %v6962_v9 = vld [vmem:[#allocation2 + $0x694] ss:$40 sps:$4 sm:$0xff]   ;;  %v6964_v10 = vld [vmem:[#allocation2 + $0x190] ss:$40 sps:$4 sm:$0xff]  }
  0x4a   : > { %4248 = vmatprep.subr.bf16.mxu1 %v6956_v5  ;;  %v6965_v11 = vld [vmem:[#allocation2 + $0x690] ss:$40 sps:$4 sm:$0xff]   ;;  %v6966_v12 = vld [vmem:[#allocation2 + $0x144] ss:$40 sps:$4 sm:$0xff]   ;;  %v6970_v14 = vld [vmem:[#allocation2 + $0x140] ss:$40 sps:$4 sm:$0xff]  }
  0x4b   : > { %v6968_v13 = vld [vmem:[#allocation2 + $0x644] ss:$40 sps:$4 sm:$0xff]   ;;  %v6971_v15 = vld [vmem:[#allocation2 + $0x640] ss:$40 sps:$4 sm:$0xff]   ;;  %v6972_v16 = vld [vmem:[#allocation2 + $0xf4] ss:$40 sps:$4 sm:$0xff]  }
  0x4c   : > { %4208 = vmatpush1.bf16.msra.mxu0 %v6958_v6  ;;  %v6974_v17 = vld [vmem:[#allocation2 + $0x5f4] ss:$40 sps:$4 sm:$0xff]   ;;  %v6976_v18 = vld [vmem:[#allocation2 + $0xf0] ss:$40 sps:$4 sm:$0xff]   ;;  %v6978_v20 = vld [vmem:[#allocation2 + $0xa4] ss:$40 sps:$4 sm:$0xff]  }
  0x4d   : > { %4249 = vmatpush1.bf16.msra.mxu1 %v6959_v7  ;;  %4209 = vmatprep.subr.bf16.mxu0 %v6960_v8  ;;  %v6977_v19 = vld [vmem:[#allocation2 + $0x5f0] ss:$40 sps:$4 sm:$0xff]   ;;  %v6980_v21 = vld [vmem:[#allocation2 + $0x5a4] ss:$40 sps:$4 sm:$0xff]   ;;  %v6982_v22 = vld [vmem:[#allocation2 + $0xa0] ss:$40 sps:$4 sm:$0xff]  }
  0x4e   : > { %4250 = vmatprep.subr.bf16.mxu1 %v6962_v9  ;;  %v6983_v23 = vld [vmem:[#allocation2 + $0x5a0] ss:$40 sps:$4 sm:$0xff]   ;;  %v6984_v24 = vld [vmem:[#allocation2 + $0x54] ss:$40 sps:$4 sm:$0xff]   ;;  %v6988_v26 = vld [vmem:[#allocation2 + $0x50] ss:$40 sps:$4 sm:$0xff]  }
  0x4f   : > { %v6986_v25 = vld [vmem:[#allocation2 + $0x554] ss:$40 sps:$4 sm:$0xff]   ;;  %v6989_v27 = vld [vmem:[#allocation2 + $0x550] ss:$40 sps:$4 sm:$0xff]   ;;  %v6990_v28 = vld [vmem:[#allocation2 + $0x4] ss:$40 sps:$4 sm:$0xff]  }
  0x50   : > { %4210 = vmatpush1.bf16.msra.mxu0 %v6964_v10  ;;  %v6992_v29 = vld [vmem:[#allocation2 + $0x504] ss:$40 sps:$4 sm:$0xff]   ;;  %v6994_v30 = vld [vmem:[#allocation2] ss:$40 sps:$4 sm:$0xff]   ;;  %v6996_v32 = vld [vmem:[#allocation2 + $0x4b4] ss:$40 sps:$4 sm:$0xff]  }
  0x51   : > { %4251 = vmatpush1.bf16.msra.mxu1 %v6965_v11  ;;  %4211 = vmatprep.subr.bf16.mxu0 %v6966_v12  ;;  %v6995_v31 = vld [vmem:[#allocation2 + $0x500] ss:$40 sps:$4 sm:$0xff]   ;;  %p269_p2 = scmp.lt.s32.totalorder %s8206_s21, 1  ;;  %v6998_v33 = vld [vmem:[#allocation2 + $0x9b4] ss:$40 sps:$4 sm:$0xff]  }
  0x52   : > { %4252 = vmatprep.subr.bf16.mxu1 %v6968_v13  ;;  %v7000_v34 = vld [vmem:[#allocation2 + $0x4b0] ss:$40 sps:$4 sm:$0xff]   ;;  %v7002_v36 = vld [vmem:[#allocation2 + $0x464] ss:$40 sps:$4 sm:$0xff]   ;;  %v7006_v38 = vld [vmem:[#allocation2 + $0x460] ss:$40 sps:$4 sm:$0xff]  }
  0x53   : > { %v7001_v35 = vld [vmem:[#allocation2 + $0x9b0] ss:$40 sps:$4 sm:$0xff]   ;;  %s8458_s21 = smov (!%p269_p2, %s8206_s21), 1  ;;  %v7004_v37 = vld [vmem:[#allocation2 + $0x964] ss:$40 sps:$4 sm:$0xff]  }
  0x54   : > { %4212 = vmatpush1.bf16.msra.mxu0 %v6970_v14  ;;  %v7007_v39 = vld [vmem:[#allocation2 + $0x960] ss:$40 sps:$4 sm:$0xff]   ;;  %v7008_v40 = vld [vmem:[#allocation2 + $0x414] ss:$40 sps:$4 sm:$0xff]   ;;  %s6784_s22 = sshll.u32 %s8458_s21, 5  ;;  %s6052_s28 = sshll.u32 %s8458_s21, 3 }
  0x55   : > { %4253 = vmatpush1.bf16.msra.mxu1 %v6971_v15  ;;  %4213 = vmatprep.subr.bf16.mxu0 %v6972_v16  ;;  %v7010_v41 = vld [vmem:[#allocation2 + $0x914] ss:$40 sps:$4 sm:$0xff]   ;;  %v7012_v42 = vld [vmem:[#allocation2 + $0x410] ss:$40 sps:$4 sm:$0xff]   ;;  %s8293_s27 = scalar_lea.vmem %s8449_s0, %s6784_s22  ;;  %v7014_v44 = vld [vmem:[#allocation2 + $0x3c4] ss:$40 sps:$4 sm:$0xff]   ;;  %s277_s6 = scalar_lea.vmem %s8454_s5, %s6052_s28 }
  0x56   : > { %4254 = vmatprep.subr.bf16.mxu1 %v6974_v17  ;;  %v7013_v43 = vld [vmem:[#allocation2 + $0x910] ss:$40 sps:$4 sm:$0xff]   ;;  %v7016_v45 = vld [vmem:[#allocation2 + $0x8c4] ss:$40 sps:$4 sm:$0xff]   ;;  %v7018_v49 = vld [vmem:[#allocation2 + $0x3c0] ss:$40 sps:$4 sm:$0xff]  }
  0x57   : > { %v279_v46 = vld [vmem:[%s8293_s27] sm:$0xff]  ;;  %v280_v48 = vld [vmem:[%s8293_s27 + $0x8] sm:$0xff]  ;;  %v7020_v52 = vld [vmem:[#allocation2 + $0x374] ss:$40 sps:$4 sm:$0xff]  }
  0x58   : > { %4214 = vmatpush1.bf16.msra.mxu0 %v6976_v18  ;;  %v8296_v47 = vcombine.high %v279_v46, %v279_v46  ;;  %v7019_v50 = vld [vmem:[#allocation2 + $0x8c0] ss:$40 sps:$4 sm:$0xff]   ;;  %v8299_v51 = vcombine.high %v280_v48, %v280_v48  ;;  %v7022_v53 = vld [vmem:[#allocation2 + $0x874] ss:$40 sps:$4 sm:$0xff]   ;;  %v7024_v54 = vld [vmem:[#allocation2 + $0x370] ss:$40 sps:$4 sm:$0xff]   ;;  %v8303_v6 = vcombine.low %v279_v46, %v279_v46  ;;  %v8305_v7 = vcombine.low %v280_v48, %v280_v48 }
  0x59   : > { %4255 = vmatpush1.bf16.msra.mxu1 %v6977_v19  ;;  %4215 = vmatprep.subr.bf16.mxu0 %v6978_v20  ;;  %v7025_v55 = vld [vmem:[#allocation2 + $0x870] ss:$40 sps:$4 sm:$0xff]   ;;  %v7026_v56 = vld [vmem:[#allocation2 + $0x324] ss:$40 sps:$4 sm:$0xff]   ;;  %v7030_v58 = vld [vmem:[#allocation2 + $0x320] ss:$40 sps:$4 sm:$0xff]  }
  0x5a   : > { %4256 = vmatprep.subr.bf16.mxu1 %v6980_v21  ;;  %4237 = vmatprep.mubr.bf16.mxu0 %v8296_v47  ;;  %v7028_v57 = vld [vmem:[#allocation2 + $0x824] ss:$40 sps:$4 sm:$0xff]   ;;  %v7031_v59 = vld [vmem:[#allocation2 + $0x820] ss:$40 sps:$4 sm:$0xff]   ;;  %v7032_v60 = vld [vmem:[#allocation2 + $0x2d4] ss:$40 sps:$4 sm:$0xff]  }
  0x5b   : > { %4278 = vmatprep.mubr.bf16.mxu1 %v8299_v51  ;;  %v7034_v61 = vld [vmem:[#allocation2 + $0x7d4] ss:$40 sps:$4 sm:$0xff]   ;;  %v7036_v62 = vld [vmem:[#allocation2 + $0x2d0] ss:$40 sps:$4 sm:$0xff]   ;;  %v7038_v0 = vld [vmem:[#allocation2 + $0x284] ss:$40 sps:$4 sm:$0xff]  }
  0x5c   : > { %4216 = vmatpush1.bf16.msra.mxu0 %v6982_v22  ;;  %v7037_v63 = vld [vmem:[#allocation2 + $0x7d0] ss:$40 sps:$4 sm:$0xff]   ;;  %v7040_v1 = vld [vmem:[#allocation2 + $0x784] ss:$40 sps:$4 sm:$0xff]   ;;  %v7042_v2 = vld [vmem:[#allocation2 + $0x280] ss:$40 sps:$4 sm:$0xff]  }
  0x5d   : > { %4257 = vmatpush1.bf16.msra.mxu1 %v6983_v23  ;;  %4217 = vmatprep.subr.bf16.mxu0 %v6984_v24  ;;  %v7043_v3 = vld [vmem:[#allocation2 + $0x780] ss:$40 sps:$4 sm:$0xff]   ;;  %v7050_v4 = vld [vmem:[#allocation2 + $0xc34] ss:$40 sps:$4 sm:$0xff]   ;;  %v7048_v8 = vld [vmem:[#allocation2 + $0xc30] ss:$40 sps:$4 sm:$0xff]  }
  0x5e   : > { %4258 = vmatprep.subr.bf16.mxu1 %v6986_v25  ;;  %v7053_v5 = vld [vmem:[#allocation2 + $0x1134] ss:$40 sps:$4 sm:$0xff]   ;;  %v7051_v9 = vld [vmem:[#allocation2 + $0x1130] ss:$40 sps:$4 sm:$0xff]   ;;  %v7056_v10 = vld [vmem:[#allocation2 + $0xbe4] ss:$40 sps:$4 sm:$0xff]  }
  0x5f   : > { %v7059_v11 = vld [vmem:[#allocation2 + $0x10e4] ss:$40 sps:$4 sm:$0xff]   ;;  %v7054_v12 = vld [vmem:[#allocation2 + $0xbe0] ss:$40 sps:$4 sm:$0xff]   ;;  %v7062_v14 = vld [vmem:[#allocation2 + $0xb94] ss:$40 sps:$4 sm:$0xff]  }
  0x60   : > { %4218 = vmatpush1.bf16.msra.mxu0 %v6988_v26  ;;  %v7057_v13 = vld [vmem:[#allocation2 + $0x10e0] ss:$40 sps:$4 sm:$0xff]   ;;  %v7065_v15 = vld [vmem:[#allocation2 + $0x1094] ss:$40 sps:$4 sm:$0xff]   ;;  %v7060_v16 = vld [vmem:[#allocation2 + $0xb90] ss:$40 sps:$4 sm:$0xff]  }
  0x61   : > { %4259 = vmatpush1.bf16.msra.mxu1 %v6989_v27  ;;  %4219 = vmatprep.subr.bf16.mxu0 %v6990_v28  ;;  %v7063_v17 = vld [vmem:[#allocation2 + $0x1090] ss:$40 sps:$4 sm:$0xff]   ;;  %v7068_v18 = vld [vmem:[#allocation2 + $0xb44] ss:$40 sps:$4 sm:$0xff]   ;;  %v7066_v20 = vld [vmem:[#allocation2 + $0xb40] ss:$40 sps:$4 sm:$0xff]  }
  0x62   : > { %4260 = vmatprep.subr.bf16.mxu1 %v6992_v29  ;;  %v7071_v19 = vld [vmem:[#allocation2 + $0x1044] ss:$40 sps:$4 sm:$0xff]   ;;  %v7069_v21 = vld [vmem:[#allocation2 + $0x1040] ss:$40 sps:$4 sm:$0xff]   ;;  %v7074_v22 = vld [vmem:[#allocation2 + $0xaf4] ss:$40 sps:$4 sm:$0xff]  }
  0x63   : > { %v7077_v23 = vld [vmem:[#allocation2 + $0xff4] ss:$40 sps:$4 sm:$0xff]   ;;  %v7072_v24 = vld [vmem:[#allocation2 + $0xaf0] ss:$40 sps:$4 sm:$0xff]   ;;  %v7080_v26 = vld [vmem:[#allocation2 + $0xaa4] ss:$40 sps:$4 sm:$0xff]  }
  0x64   : > { %4220 = vmatpush1.bf16.msra.mxu0 %v6994_v30  ;;  %v7075_v25 = vld [vmem:[#allocation2 + $0xff0] ss:$40 sps:$4 sm:$0xff]   ;;  %v7083_v27 = vld [vmem:[#allocation2 + $0xfa4] ss:$40 sps:$4 sm:$0xff]   ;;  %v7078_v28 = vld [vmem:[#allocation2 + $0xaa0] ss:$40 sps:$4 sm:$0xff]  }
  0x65   : > { %4261 = vmatpush1.bf16.msra.mxu1 %v6995_v31  ;;  %4221 = vmatprep.subr.bf16.mxu0 %v6996_v32  ;;  %v7081_v29 = vld [vmem:[#allocation2 + $0xfa0] ss:$40 sps:$4 sm:$0xff]   ;;  %v7086_v30 = vld [vmem:[#allocation2 + $0xa54] ss:$40 sps:$4 sm:$0xff]   ;;  %v7104_v46 = vld [vmem:[#allocation2 + $0xe64] ss:$40 sps:$4 sm:$0xff]  }
  0x66   : > { %4262 = vmatprep.subr.bf16.mxu1 %v6998_v33  ;;  %v7089_v31 = vld [vmem:[#allocation2 + $0xf54] ss:$40 sps:$4 sm:$0xff]   ;;  %v7107_v48 = vld [vmem:[#allocation2 + $0x1364] ss:$40 sps:$4 sm:$0xff]  }
  0x67   : > { %v8310_v32 = vld [vmem:[%s8293_s27 + $0x10] sm:$0xff]  ;;  %v8313_v33 = vld [vmem:[%s8293_s27 + $0x18] sm:$0xff] }
  0x68   : > { %4222 = vmatpush2.bf16.msra.mxu0 %v7000_v34  ;;  %v7084_v34 = vld [vmem:[#allocation2 + $0xa50] ss:$40 sps:$4 sm:$0xff]  }
  0x69   : > { %4263 = vmatpush2.bf16.msra.mxu1 %v7001_v35  ;;  %4223 = vmatprep.subr.bf16.mxu0 %v7002_v36  ;;  %v7087_v35 = vld [vmem:[#allocation2 + $0xf50] ss:$40 sps:$4 sm:$0xff]   ;;  %v8317_v36 = vcombine.high %v8310_v32, %v8310_v32 }
  0x6a   : > { %4264 = vmatprep.subr.bf16.mxu1 %v7004_v37  ;;  %v8321_v37 = vcombine.high %v8313_v33, %v8313_v33 }
  0x6c   : > { %4224 = vmatpush2.bf16.msra.mxu0 %v7006_v38  ;;  %v7092_v38 = vld [vmem:[#allocation2 + $0xa04] ss:$40 sps:$4 sm:$0xff]  }
  0x6d   : > { %4265 = vmatpush2.bf16.msra.mxu1 %v7007_v39  ;;  %4225 = vmatprep.subr.bf16.mxu0 %v7008_v40  ;;  %v7095_v39 = vld [vmem:[#allocation2 + $0xf04] ss:$40 sps:$4 sm:$0xff]   ;;  %v7090_v40 = vld [vmem:[#allocation2 + $0xa00] ss:$40 sps:$4 sm:$0xff]  }
  0x6e   : > { %4266 = vmatprep.subr.bf16.mxu1 %v7010_v41  ;;  %v7093_v41 = vld [vmem:[#allocation2 + $0xf00] ss:$40 sps:$4 sm:$0xff]  }
  0x70   : > { %4226 = vmatpush2.bf16.msra.mxu0 %v7012_v42  ;;  %v7098_v42 = vld [vmem:[#allocation2 + $0xeb4] ss:$40 sps:$4 sm:$0xff]  }
  0x71   : > { %4267 = vmatpush2.bf16.msra.mxu1 %v7013_v43  ;;  %4227 = vmatprep.subr.bf16.mxu0 %v7014_v44  ;;  %v7101_v43 = vld [vmem:[#allocation2 + $0x13b4] ss:$40 sps:$4 sm:$0xff]   ;;  %v7096_v44 = vld [vmem:[#allocation2 + $0xeb0] ss:$40 sps:$4 sm:$0xff]  }
  0x72   : > { %4268 = vmatprep.subr.bf16.mxu1 %v7016_v45  ;;  %v7099_v45 = vld [vmem:[#allocation2 + $0x13b0] ss:$40 sps:$4 sm:$0xff]  }
  0x74   : > { %4228 = vmatpush2.bf16.msra.mxu0 %v7018_v49  ;;  %v7102_v49 = vld [vmem:[#allocation2 + $0xe60] ss:$40 sps:$4 sm:$0xff]  }
  0x75   : > { %4269 = vmatpush2.bf16.msra.mxu1 %v7019_v50  ;;  %4229 = vmatprep.subr.bf16.mxu0 %v7020_v52  ;;  %v7105_v50 = vld [vmem:[#allocation2 + $0x1360] ss:$40 sps:$4 sm:$0xff]   ;;  %v7110_v52 = vld [vmem:[#allocation2 + $0xe14] ss:$40 sps:$4 sm:$0xff]  }
  0x76   : > { %4270 = vmatprep.subr.bf16.mxu1 %v7022_v53  ;;  %v7113_v53 = vld [vmem:[#allocation2 + $0x1314] ss:$40 sps:$4 sm:$0xff]  }
  0x78   : > { %4230 = vmatpush2.bf16.msra.mxu0 %v7024_v54  ;;  %v7108_v54 = vld [vmem:[#allocation2 + $0xe10] ss:$40 sps:$4 sm:$0xff]  }
  0x79   : > { %4271 = vmatpush2.bf16.msra.mxu1 %v7025_v55  ;;  %4231 = vmatprep.subr.bf16.mxu0 %v7026_v56  ;;  %v7111_v55 = vld [vmem:[#allocation2 + $0x1310] ss:$40 sps:$4 sm:$0xff]   ;;  %v7116_v56 = vld [vmem:[#allocation2 + $0xdc4] ss:$40 sps:$4 sm:$0xff]  }
  0x7a   : > { %4272 = vmatprep.subr.bf16.mxu1 %v7028_v57  ;;  %v7119_v57 = vld [vmem:[#allocation2 + $0x12c4] ss:$40 sps:$4 sm:$0xff]  }
  0x7c   : > { %4232 = vmatpush2.bf16.msra.mxu0 %v7030_v58  ;;  %v7114_v58 = vld [vmem:[#allocation2 + $0xdc0] ss:$40 sps:$4 sm:$0xff]  }
  0x7d   : > { %4273 = vmatpush2.bf16.msra.mxu1 %v7031_v59  ;;  %4233 = vmatprep.subr.bf16.mxu0 %v7032_v60  ;;  %v7117_v59 = vld [vmem:[#allocation2 + $0x12c0] ss:$40 sps:$4 sm:$0xff]   ;;  %v7122_v60 = vld [vmem:[#allocation2 + $0xd74] ss:$40 sps:$4 sm:$0xff]  }
  0x7e   : > { %4274 = vmatprep.subr.bf16.mxu1 %v7034_v61  ;;  %v7125_v61 = vld [vmem:[#allocation2 + $0x1274] ss:$40 sps:$4 sm:$0xff]  }
  0x80   : > { %4234 = vmatpush2.bf16.msra.mxu0 %v7036_v62  ;;  %v7120_v62 = vld [vmem:[#allocation2 + $0xd70] ss:$40 sps:$4 sm:$0xff]  }
  0x81   : > { %4275 = vmatpush2.bf16.msra.mxu1 %v7037_v63  ;;  %4235 = vmatprep.subr.bf16.mxu0 %v7038_v0  ;;  %v7123_v63 = vld [vmem:[#allocation2 + $0x1270] ss:$40 sps:$4 sm:$0xff]   ;;  %v7128_v0 = vld [vmem:[#allocation2 + $0xd24] ss:$40 sps:$4 sm:$0xff]  }
  0x82   : > { %4276 = vmatprep.subr.bf16.mxu1 %v7040_v1  ;;  %v7131_v1 = vld [vmem:[#allocation2 + $0x1224] ss:$40 sps:$4 sm:$0xff]  }
  0x84   : > { %4236 = vmatpush2.bf16.msra.mxu0 %v7042_v2  ;;  %v7126_v2 = vld [vmem:[#allocation2 + $0xd20] ss:$40 sps:$4 sm:$0xff]  }
  0x85   : > { %4277 = vmatpush2.bf16.msra.mxu1 %v7043_v3  ;;  %4287 = vmatprep.subr.bf16.mxu0 %v7050_v4  ;;  %v7129_v3 = vld [vmem:[#allocation2 + $0x1220] ss:$40 sps:$4 sm:$0xff]   ;;  %v7134_v4 = vld [vmem:[#allocation2 + $0xcd4] ss:$40 sps:$4 sm:$0xff]  }
  0x86   : > { %4328 = vmatprep.subr.bf16.mxu1 %v7053_v5  ;;  %v7137_v5 = vld [vmem:[#allocation2 + $0x11d4] ss:$40 sps:$4 sm:$0xff]  }
  0x87   : > { %4238 = vmatmul.mubr.bf16.vlgmr.msra.gmra.mxu0 %v8303_v6 }
  0x88   : > { %4279 = vmatmul.mubr.bf16.vlgmr.msra.gmra.mxu1 %v8305_v7  ;;  %4288 = vmatpush1.bf16.msra.mxu0 %v7048_v8  ;;  %v7132_v8 = vld [vmem:[#allocation2 + $0xcd0] ss:$40 sps:$4 sm:$0xff]  }
  0x89   : > { %4329 = vmatpush1.bf16.msra.mxu1 %v7051_v9  ;;  %4289 = vmatprep.subr.bf16.mxu0 %v7056_v10  ;;  %v7135_v9 = vld [vmem:[#allocation2 + $0x11d0] ss:$40 sps:$4 sm:$0xff]   ;;  %v7140_v10 = vld [vmem:[#allocation2 + $0xc84] ss:$40 sps:$4 sm:$0xff]  }
  0x8a   : > { %4330 = vmatprep.subr.bf16.mxu1 %v7059_v11  ;;  %4319 = vmatprep.mubr.bf16.mxu0 %v8317_v36  ;;  %v7143_v11 = vld [vmem:[#allocation2 + $0x1184] ss:$40 sps:$4 sm:$0xff]  }
  0x8b   : > { %4360 = vmatprep.mubr.bf16.mxu1 %v8321_v37 }
  0x8c   : > { %4290 = vmatpush1.bf16.msra.mxu0 %v7054_v12  ;;  %v7138_v12 = vld [vmem:[#allocation2 + $0xc80] ss:$40 sps:$4 sm:$0xff]  }
  0x8d   : > { %4331 = vmatpush1.bf16.msra.mxu1 %v7057_v13  ;;  %4291 = vmatprep.subr.bf16.mxu0 %v7062_v14  ;;  %v7141_v13 = vld [vmem:[#allocation2 + $0x1180] ss:$40 sps:$4 sm:$0xff]   ;;  %v7150_v14 = vld [vmem:[#allocation2 + $0x23c] ss:$40 sps:$4 sm:$0xff]  }
  0x8e   : > { %4332 = vmatprep.subr.bf16.mxu1 %v7065_v15  ;;  %v7153_v15 = vld [vmem:[#allocation2 + $0x73c] ss:$40 sps:$4 sm:$0xff]  }
  0x90   : > { %4292 = vmatpush1.bf16.msra.mxu0 %v7060_v16  ;;  %v8327_v16 = vcombine.low %v8310_v32, %v8310_v32  ;;  %v7174_v32 = vld [vmem:[#allocation2 + $0xfc] ss:$40 sps:$4 sm:$0xff]  }
  0x91   : > { %4333 = vmatpush1.bf16.msra.mxu1 %v7063_v17  ;;  %4293 = vmatprep.subr.bf16.mxu0 %v7068_v18  ;;  %v8331_v17 = vcombine.low %v8313_v33, %v8313_v33  ;;  %v7148_v18 = vld [vmem:[#allocation2 + $0x238] ss:$40 sps:$4 sm:$0xff]   ;;  %v7177_v33 = vld [vmem:[#allocation2 + $0x5fc] ss:$40 sps:$4 sm:$0xff]  }
  0x92   : > { %4334 = vmatprep.subr.bf16.mxu1 %v7071_v19  ;;  %v7151_v19 = vld [vmem:[#allocation2 + $0x738] ss:$40 sps:$4 sm:$0xff]  }
  0x94   : > { %4294 = vmatpush1.bf16.msra.mxu0 %v7066_v20  ;;  %v7156_v20 = vld [vmem:[#allocation2 + $0x1ec] ss:$40 sps:$4 sm:$0xff]  }
  0x95   : > { %4335 = vmatpush1.bf16.msra.mxu1 %v7069_v21  ;;  %4295 = vmatprep.subr.bf16.mxu0 %v7074_v22  ;;  %v7159_v21 = vld [vmem:[#allocation2 + $0x6ec] ss:$40 sps:$4 sm:$0xff]   ;;  %v7154_v22 = vld [vmem:[#allocation2 + $0x1e8] ss:$40 sps:$4 sm:$0xff]  }
  0x96   : > { %4336 = vmatprep.subr.bf16.mxu1 %v7077_v23  ;;  %v7157_v23 = vld [vmem:[#allocation2 + $0x6e8] ss:$40 sps:$4 sm:$0xff]  }
  0x98   : > { %4296 = vmatpush1.bf16.msra.mxu0 %v7072_v24  ;;  %v7162_v24 = vld [vmem:[#allocation2 + $0x19c] ss:$40 sps:$4 sm:$0xff]  }
  0x99   : > { %4337 = vmatpush1.bf16.msra.mxu1 %v7075_v25  ;;  %4297 = vmatprep.subr.bf16.mxu0 %v7080_v26  ;;  %v7165_v25 = vld [vmem:[#allocation2 + $0x69c] ss:$40 sps:$4 sm:$0xff]   ;;  %v7160_v26 = vld [vmem:[#allocation2 + $0x198] ss:$40 sps:$4 sm:$0xff]  }
  0x9a   : > { %4338 = vmatprep.subr.bf16.mxu1 %v7083_v27  ;;  %v7163_v27 = vld [vmem:[#allocation2 + $0x698] ss:$40 sps:$4 sm:$0xff]  }
  0x9c   : > { %4298 = vmatpush1.bf16.msra.mxu0 %v7078_v28  ;;  %v7168_v28 = vld [vmem:[#allocation2 + $0x14c] ss:$40 sps:$4 sm:$0xff]  }
  0x9d   : > { %4339 = vmatpush1.bf16.msra.mxu1 %v7081_v29  ;;  %4299 = vmatprep.subr.bf16.mxu0 %v7086_v30  ;;  %v7171_v29 = vld [vmem:[#allocation2 + $0x64c] ss:$40 sps:$4 sm:$0xff]   ;;  %v7166_v30 = vld [vmem:[#allocation2 + $0x148] ss:$40 sps:$4 sm:$0xff]  }
  0x9e   : > { %4340 = vmatprep.subr.bf16.mxu1 %v7089_v31  ;;  %v7169_v31 = vld [vmem:[#allocation2 + $0x648] ss:$40 sps:$4 sm:$0xff]  }
  0xa0   : > { %4300 = vmatpush1.bf16.msra.mxu0 %v7084_v34  ;;  %v7172_v34 = vld [vmem:[#allocation2 + $0xf8] ss:$40 sps:$4 sm:$0xff]  }
  0xa1   : > { %4341 = vmatpush1.bf16.msra.mxu1 %v7087_v35  ;;  %4301 = vmatprep.subr.bf16.mxu0 %v7092_v38  ;;  %v7175_v35 = vld [vmem:[#allocation2 + $0x5f8] ss:$40 sps:$4 sm:$0xff]   ;;  %v7180_v38 = vld [vmem:[#allocation2 + $0xac] ss:$40 sps:$4 sm:$0xff]  }
  0xa2   : > { %4342 = vmatprep.subr.bf16.mxu1 %v7095_v39  ;;  %v7183_v39 = vld [vmem:[#allocation2 + $0x5ac] ss:$40 sps:$4 sm:$0xff]  }
  0xa4   : > { %4302 = vmatpush1.bf16.msra.mxu0 %v7090_v40  ;;  %v7178_v40 = vld [vmem:[#allocation2 + $0xa8] ss:$40 sps:$4 sm:$0xff]  }
  0xa5   : > { %4343 = vmatpush1.bf16.msra.mxu1 %v7093_v41  ;;  %4303 = vmatprep.subr.bf16.mxu0 %v7098_v42  ;;  %v7181_v41 = vld [vmem:[#allocation2 + $0x5a8] ss:$40 sps:$4 sm:$0xff]   ;;  %v7186_v42 = vld [vmem:[#allocation2 + $0x5c] ss:$40 sps:$4 sm:$0xff]  }
  0xa6   : > { %4344 = vmatprep.subr.bf16.mxu1 %v7101_v43  ;;  %v7189_v43 = vld [vmem:[#allocation2 + $0x55c] ss:$40 sps:$4 sm:$0xff]  }
  0xa8   : > { %4304 = vmatpush2.bf16.msra.mxu0 %v7096_v44  ;;  %v7184_v44 = vld [vmem:[#allocation2 + $0x58] ss:$40 sps:$4 sm:$0xff]  }
  0xa9   : > { %4345 = vmatpush2.bf16.msra.mxu1 %v7099_v45  ;;  %4305 = vmatprep.subr.bf16.mxu0 %v7104_v46  ;;  %v7187_v45 = vld [vmem:[#allocation2 + $0x558] ss:$40 sps:$4 sm:$0xff]   ;;  %v7192_v46 = vld [vmem:[#allocation2 + $0xc] ss:$40 sps:$4 sm:$0xff]  }
  0xaa   : > { %4346 = vmatprep.subr.bf16.mxu1 %v7107_v48  ;;  %v7195_v48 = vld [vmem:[#allocation2 + $0x50c] ss:$40 sps:$4 sm:$0xff]  }
  0xac   : > { %4306 = vmatpush2.bf16.msra.mxu0 %v7102_v49  ;;  %v7190_v49 = vld [vmem:[#allocation2 + $0x8] ss:$40 sps:$4 sm:$0xff]  }
  0xad   : > { %4347 = vmatpush2.bf16.msra.mxu1 %v7105_v50  ;;  %4307 = vmatprep.subr.bf16.mxu0 %v7110_v52  ;;  %v7193_v50 = vld [vmem:[#allocation2 + $0x508] ss:$40 sps:$4 sm:$0xff]   ;;  %v7198_v52 = vld [vmem:[#allocation2 + $0x4bc] ss:$40 sps:$4 sm:$0xff]  }
  0xae   : > { %4348 = vmatprep.subr.bf16.mxu1 %v7113_v53  ;;  %v7201_v53 = vld [vmem:[#allocation2 + $0x9bc] ss:$40 sps:$4 sm:$0xff]  }
  0xb0   : > { %4308 = vmatpush2.bf16.msra.mxu0 %v7108_v54  ;;  %v7196_v54 = vld [vmem:[#allocation2 + $0x4b8] ss:$40 sps:$4 sm:$0xff]  }
  0xb1   : > { %4349 = vmatpush2.bf16.msra.mxu1 %v7111_v55  ;;  %4309 = vmatprep.subr.bf16.mxu0 %v7116_v56  ;;  %v7199_v55 = vld [vmem:[#allocation2 + $0x9b8] ss:$40 sps:$4 sm:$0xff]   ;;  %v7204_v56 = vld [vmem:[#allocation2 + $0x46c] ss:$40 sps:$4 sm:$0xff]  }
  0xb2   : > { %4350 = vmatprep.subr.bf16.mxu1 %v7119_v57  ;;  %v7207_v57 = vld [vmem:[#allocation2 + $0x96c] ss:$40 sps:$4 sm:$0xff]  }
  0xb4   : > { %4310 = vmatpush2.bf16.msra.mxu0 %v7114_v58  ;;  %v7202_v58 = vld [vmem:[#allocation2 + $0x468] ss:$40 sps:$4 sm:$0xff]  }
  0xb5   : > { %4351 = vmatpush2.bf16.msra.mxu1 %v7117_v59  ;;  %4311 = vmatprep.subr.bf16.mxu0 %v7122_v60  ;;  %v7205_v59 = vld [vmem:[#allocation2 + $0x968] ss:$40 sps:$4 sm:$0xff]   ;;  %v7210_v60 = vld [vmem:[#allocation2 + $0x41c] ss:$40 sps:$4 sm:$0xff]  }
  0xb6   : > { %4352 = vmatprep.subr.bf16.mxu1 %v7125_v61  ;;  %v7213_v61 = vld [vmem:[#allocation2 + $0x91c] ss:$40 sps:$4 sm:$0xff]  }
  0xb8   : > { %4312 = vmatpush2.bf16.msra.mxu0 %v7120_v62  ;;  %v7208_v62 = vld [vmem:[#allocation2 + $0x418] ss:$40 sps:$4 sm:$0xff]  }
  0xb9   : > { %4353 = vmatpush2.bf16.msra.mxu1 %v7123_v63  ;;  %4313 = vmatprep.subr.bf16.mxu0 %v7128_v0  ;;  %v7211_v63 = vld [vmem:[#allocation2 + $0x918] ss:$40 sps:$4 sm:$0xff]   ;;  %v7216_v0 = vld [vmem:[#allocation2 + $0x3cc] ss:$40 sps:$4 sm:$0xff]  }
  0xba   : > { %4354 = vmatprep.subr.bf16.mxu1 %v7131_v1  ;;  %v7219_v1 = vld [vmem:[#allocation2 + $0x8cc] ss:$40 sps:$4 sm:$0xff]  }
  0xbc   : > { %4314 = vmatpush2.bf16.msra.mxu0 %v7126_v2  ;;  %v7214_v2 = vld [vmem:[#allocation2 + $0x3c8] ss:$40 sps:$4 sm:$0xff]  }
  0xbd   : > { %4355 = vmatpush2.bf16.msra.mxu1 %v7129_v3  ;;  %4315 = vmatprep.subr.bf16.mxu0 %v7134_v4  ;;  %v7217_v3 = vld [vmem:[#allocation2 + $0x8c8] ss:$40 sps:$4 sm:$0xff]   ;;  %v7222_v4 = vld [vmem:[#allocation2 + $0x37c] ss:$40 sps:$4 sm:$0xff]  }
  0xbe   : > { %4356 = vmatprep.subr.bf16.mxu1 %v7137_v5  ;;  %v7225_v5 = vld [vmem:[#allocation2 + $0x87c] ss:$40 sps:$4 sm:$0xff]  }
  0xc0   : > { %4316 = vmatpush2.bf16.msra.mxu0 %v7132_v8  ;;  %v7220_v8 = vld [vmem:[#allocation2 + $0x378] ss:$40 sps:$4 sm:$0xff]  }
  0xc1   : > { %4357 = vmatpush2.bf16.msra.mxu1 %v7135_v9  ;;  %4317 = vmatprep.subr.bf16.mxu0 %v7140_v10  ;;  %v7223_v9 = vld [vmem:[#allocation2 + $0x878] ss:$40 sps:$4 sm:$0xff]   ;;  %v7228_v10 = vld [vmem:[#allocation2 + $0x32c] ss:$40 sps:$4 sm:$0xff]  }
  0xc2   : > { %4358 = vmatprep.subr.bf16.mxu1 %v7143_v11  ;;  %v7231_v11 = vld [vmem:[#allocation2 + $0x82c] ss:$40 sps:$4 sm:$0xff]  }
  0xc4   : > { %4318 = vmatpush2.bf16.msra.mxu0 %v7138_v12  ;;  %v7226_v12 = vld [vmem:[#allocation2 + $0x328] ss:$40 sps:$4 sm:$0xff]  }
  0xc5   : > { %4359 = vmatpush2.bf16.msra.mxu1 %v7141_v13  ;;  %4369 = vmatprep.subr.bf16.mxu0 %v7150_v14  ;;  %v7229_v13 = vld [vmem:[#allocation2 + $0x828] ss:$40 sps:$4 sm:$0xff]   ;;  %v7234_v14 = vld [vmem:[#allocation2 + $0x2dc] ss:$40 sps:$4 sm:$0xff]  }
  0xc6   : > { %4410 = vmatprep.subr.bf16.mxu1 %v7153_v15  ;;  %v7237_v15 = vld [vmem:[#allocation2 + $0x7dc] ss:$40 sps:$4 sm:$0xff]  }
  0xc7   : > { %4320 = vmatmul.mubr.bf16.vlgmr.msra.gmra.mxu0 %v8327_v16 }
  0xc8   : > { %4361 = vmatmul.mubr.bf16.vlgmr.msra.gmra.mxu1 %v8331_v17  ;;  %4370 = vmatpush1.bf16.msra.mxu0 %v7148_v18  ;;  %v7232_v18 = vld [vmem:[#allocation2 + $0x2d8] ss:$40 sps:$4 sm:$0xff]  }
  0xc9   : > { %4411 = vmatpush1.bf16.msra.mxu1 %v7151_v19  ;;  %4371 = vmatprep.subr.bf16.mxu0 %v7156_v20  ;;  %v7235_v19 = vld [vmem:[#allocation2 + $0x7d8] ss:$40 sps:$4 sm:$0xff]   ;;  %v7240_v20 = vld [vmem:[#allocation2 + $0x28c] ss:$40 sps:$4 sm:$0xff]  }
  0xca   : > { %4412 = vmatprep.subr.bf16.mxu1 %v7159_v21  ;;  %4401 = vmatprep.mubr.bf16.mxu0 %v8296_v47  ;;  %v7243_v21 = vld [vmem:[#allocation2 + $0x78c] ss:$40 sps:$4 sm:$0xff]  }
  0xcb   : > { %4442 = vmatprep.mubr.bf16.mxu1 %v8299_v51 }
  0xcc   : > { %4372 = vmatpush1.bf16.msra.mxu0 %v7154_v22  ;;  %v7238_v22 = vld [vmem:[#allocation2 + $0x288] ss:$40 sps:$4 sm:$0xff]  }
  0xcd   : > { %4413 = vmatpush1.bf16.msra.mxu1 %v7157_v23  ;;  %4373 = vmatprep.subr.bf16.mxu0 %v7162_v24  ;;  %v7241_v23 = vld [vmem:[#allocation2 + $0x788] ss:$40 sps:$4 sm:$0xff]   ;;  %v7246_v24 = vld [vmem:[#allocation2 + $0xc3c] ss:$40 sps:$4 sm:$0xff]  }
  0xce   : > { %4414 = vmatprep.subr.bf16.mxu1 %v7165_v25  ;;  %v7249_v25 = vld [vmem:[#allocation2 + $0x113c] ss:$40 sps:$4 sm:$0xff]  }
  0xd0   : > { %4374 = vmatpush1.bf16.msra.mxu0 %v7160_v26  ;;  %v7244_v26 = vld [vmem:[#allocation2 + $0xc38] ss:$40 sps:$4 sm:$0xff]  }
  0xd1   : > { %4415 = vmatpush1.bf16.msra.mxu1 %v7163_v27  ;;  %4375 = vmatprep.subr.bf16.mxu0 %v7168_v28  ;;  %v7247_v27 = vld [vmem:[#allocation2 + $0x1138] ss:$40 sps:$4 sm:$0xff]   ;;  %v7252_v28 = vld [vmem:[#allocation2 + $0xbec] ss:$40 sps:$4 sm:$0xff]  }
  0xd2   : > { %4416 = vmatprep.subr.bf16.mxu1 %v7171_v29  ;;  %v7255_v29 = vld [vmem:[#allocation2 + $0x10ec] ss:$40 sps:$4 sm:$0xff]  }
  0xd4   : > { %4376 = vmatpush1.bf16.msra.mxu0 %v7166_v30  ;;  %v7250_v30 = vld [vmem:[#allocation2 + $0xbe8] ss:$40 sps:$4 sm:$0xff]  }
  0xd5   : > { %4417 = vmatpush1.bf16.msra.mxu1 %v7169_v31  ;;  %4377 = vmatprep.subr.bf16.mxu0 %v7174_v32  ;;  %v7253_v31 = vld [vmem:[#allocation2 + $0x10e8] ss:$40 sps:$4 sm:$0xff]   ;;  %v7258_v32 = vld [vmem:[#allocation2 + $0xb9c] ss:$40 sps:$4 sm:$0xff]  }
  0xd6   : > { %4418 = vmatprep.subr.bf16.mxu1 %v7177_v33  ;;  %v7261_v33 = vld [vmem:[#allocation2 + $0x109c] ss:$40 sps:$4 sm:$0xff]  }
  0xd8   : > { %4378 = vmatpush1.bf16.msra.mxu0 %v7172_v34  ;;  %v7256_v34 = vld [vmem:[#allocation2 + $0xb98] ss:$40 sps:$4 sm:$0xff]  }
  0xd9   : > { %4419 = vmatpush1.bf16.msra.mxu1 %v7175_v35  ;;  %4379 = vmatprep.subr.bf16.mxu0 %v7180_v38  ;;  %v7259_v35 = vld [vmem:[#allocation2 + $0x1098] ss:$40 sps:$4 sm:$0xff]   ;;  %v7264_v38 = vld [vmem:[#allocation2 + $0xb4c] ss:$40 sps:$4 sm:$0xff]  }
  0xda   : > { %4420 = vmatprep.subr.bf16.mxu1 %v7183_v39  ;;  %v7267_v39 = vld [vmem:[#allocation2 + $0x104c] ss:$40 sps:$4 sm:$0xff]  }
  0xdc   : > { %4380 = vmatpush1.bf16.msra.mxu0 %v7178_v40  ;;  %v7262_v40 = vld [vmem:[#allocation2 + $0xb48] ss:$40 sps:$4 sm:$0xff]  }
  0xdd   : > { %4421 = vmatpush1.bf16.msra.mxu1 %v7181_v41  ;;  %4381 = vmatprep.subr.bf16.mxu0 %v7186_v42  ;;  %v7265_v41 = vld [vmem:[#allocation2 + $0x1048] ss:$40 sps:$4 sm:$0xff]   ;;  %v7270_v42 = vld [vmem:[#allocation2 + $0xafc] ss:$40 sps:$4 sm:$0xff]  }
  0xde   : > { %4422 = vmatprep.subr.bf16.mxu1 %v7189_v43  ;;  %v7273_v43 = vld [vmem:[#allocation2 + $0xffc] ss:$40 sps:$4 sm:$0xff]  }
  0xe0   : > { %4382 = vmatpush1.bf16.msra.mxu0 %v7184_v44  ;;  %v7268_v44 = vld [vmem:[#allocation2 + $0xaf8] ss:$40 sps:$4 sm:$0xff]  }
  0xe1   : > { %4423 = vmatpush1.bf16.msra.mxu1 %v7187_v45  ;;  %4383 = vmatprep.subr.bf16.mxu0 %v7192_v46  ;;  %v7271_v45 = vld [vmem:[#allocation2 + $0xff8] ss:$40 sps:$4 sm:$0xff]   ;;  %v7276_v46 = vld [vmem:[#allocation2 + $0xaac] ss:$40 sps:$4 sm:$0xff]  }
  0xe2   : > { %4424 = vmatprep.subr.bf16.mxu1 %v7195_v48  ;;  %v7279_v48 = vld [vmem:[#allocation2 + $0xfac] ss:$40 sps:$4 sm:$0xff]  }
  0xe4   : > { %4384 = vmatpush1.bf16.msra.mxu0 %v7190_v49  ;;  %v7274_v49 = vld [vmem:[#allocation2 + $0xaa8] ss:$40 sps:$4 sm:$0xff]  }
  0xe5   : > { %4425 = vmatpush1.bf16.msra.mxu1 %v7193_v50  ;;  %4385 = vmatprep.subr.bf16.mxu0 %v7198_v52  ;;  %v7277_v50 = vld [vmem:[#allocation2 + $0xfa8] ss:$40 sps:$4 sm:$0xff]   ;;  %v7282_v52 = vld [vmem:[#allocation2 + $0xa5c] ss:$40 sps:$4 sm:$0xff]  }
  0xe6   : > { %4426 = vmatprep.subr.bf16.mxu1 %v7201_v53  ;;  %v7285_v53 = vld [vmem:[#allocation2 + $0xf5c] ss:$40 sps:$4 sm:$0xff]  }
  0xe8   : > { %4386 = vmatpush2.bf16.msra.mxu0 %v7196_v54  ;;  %v7280_v54 = vld [vmem:[#allocation2 + $0xa58] ss:$40 sps:$4 sm:$0xff]  }
  0xe9   : > { %4427 = vmatpush2.bf16.msra.mxu1 %v7199_v55  ;;  %4387 = vmatprep.subr.bf16.mxu0 %v7204_v56  ;;  %v7283_v55 = vld [vmem:[#allocation2 + $0xf58] ss:$40 sps:$4 sm:$0xff]   ;;  %v7288_v56 = vld [vmem:[#allocation2 + $0xa0c] ss:$40 sps:$4 sm:$0xff]  }
  0xea   : > { %4428 = vmatprep.subr.bf16.mxu1 %v7207_v57  ;;  %v7291_v57 = vld [vmem:[#allocation2 + $0xf0c] ss:$40 sps:$4 sm:$0xff]  }
  0xec   : > { %4388 = vmatpush2.bf16.msra.mxu0 %v7202_v58  ;;  %v7286_v58 = vld [vmem:[#allocation2 + $0xa08] ss:$40 sps:$4 sm:$0xff]  }
  0xed   : > { %4429 = vmatpush2.bf16.msra.mxu1 %v7205_v59  ;;  %4389 = vmatprep.subr.bf16.mxu0 %v7210_v60  ;;  %v7289_v59 = vld [vmem:[#allocation2 + $0xf08] ss:$40 sps:$4 sm:$0xff]   ;;  %v7294_v60 = vld [vmem:[#allocation2 + $0xebc] ss:$40 sps:$4 sm:$0xff]  }
  0xee   : > { %4430 = vmatprep.subr.bf16.mxu1 %v7213_v61  ;;  %v7297_v61 = vld [vmem:[#allocation2 + $0x13bc] ss:$40 sps:$4 sm:$0xff]  }
  0xf0   : > { %4390 = vmatpush2.bf16.msra.mxu0 %v7208_v62  ;;  %v7292_v62 = vld [vmem:[#allocation2 + $0xeb8] ss:$40 sps:$4 sm:$0xff]  }
  0xf1   : > { %4431 = vmatpush2.bf16.msra.mxu1 %v7211_v63  ;;  %4391 = vmatprep.subr.bf16.mxu0 %v7216_v0  ;;  %v7295_v63 = vld [vmem:[#allocation2 + $0x13b8] ss:$40 sps:$4 sm:$0xff]   ;;  %v7300_v0 = vld [vmem:[#allocation2 + $0xe6c] ss:$40 sps:$4 sm:$0xff]  }
  0xf2   : > { %4432 = vmatprep.subr.bf16.mxu1 %v7219_v1  ;;  %v7303_v1 = vld [vmem:[#allocation2 + $0x136c] ss:$40 sps:$4 sm:$0xff]  }
  0xf4   : > { %4392 = vmatpush2.bf16.msra.mxu0 %v7214_v2  ;;  %v7298_v2 = vld [vmem:[#allocation2 + $0xe68] ss:$40 sps:$4 sm:$0xff]  }
  0xf5   : > { %4433 = vmatpush2.bf16.msra.mxu1 %v7217_v3  ;;  %4393 = vmatprep.subr.bf16.mxu0 %v7222_v4  ;;  %v7301_v3 = vld [vmem:[#allocation2 + $0x1368] ss:$40 sps:$4 sm:$0xff]   ;;  %v7306_v4 = vld [vmem:[#allocation2 + $0xe1c] ss:$40 sps:$4 sm:$0xff]  }
  0xf6   : > { %4434 = vmatprep.subr.bf16.mxu1 %v7225_v5  ;;  %v7309_v5 = vld [vmem:[#allocation2 + $0x131c] ss:$40 sps:$4 sm:$0xff]  }
  0xf8   : > { %4394 = vmatpush2.bf16.msra.mxu0 %v7220_v8  ;;  %v7304_v8 = vld [vmem:[#allocation2 + $0xe18] ss:$40 sps:$4 sm:$0xff]  }
  0xf9   : > { %4435 = vmatpush2.bf16.msra.mxu1 %v7223_v9  ;;  %4395 = vmatprep.subr.bf16.mxu0 %v7228_v10  ;;  %v7307_v9 = vld [vmem:[#allocation2 + $0x1318] ss:$40 sps:$4 sm:$0xff]   ;;  %v7312_v10 = vld [vmem:[#allocation2 + $0xdcc] ss:$40 sps:$4 sm:$0xff]  }
  0xfa   : > { %4436 = vmatprep.subr.bf16.mxu1 %v7231_v11  ;;  %v7315_v11 = vld [vmem:[#allocation2 + $0x12cc] ss:$40 sps:$4 sm:$0xff]  }
  0xfc   : > { %4396 = vmatpush2.bf16.msra.mxu0 %v7226_v12  ;;  %v7310_v12 = vld [vmem:[#allocation2 + $0xdc8] ss:$40 sps:$4 sm:$0xff]  }
  0xfd   : > { %4437 = vmatpush2.bf16.msra.mxu1 %v7229_v13  ;;  %4397 = vmatprep.subr.bf16.mxu0 %v7234_v14  ;;  %v7313_v13 = vld [vmem:[#allocation2 + $0x12c8] ss:$40 sps:$4 sm:$0xff]   ;;  %v7318_v14 = vld [vmem:[#allocation2 + $0xd7c] ss:$40 sps:$4 sm:$0xff]  }
  0xfe   : > { %4438 = vmatprep.subr.bf16.mxu1 %v7237_v15  ;;  %v7321_v15 = vld [vmem:[#allocation2 + $0x127c] ss:$40 sps:$4 sm:$0xff]  }
 0x100   : > { %4398 = vmatpush2.bf16.msra.mxu0 %v7232_v18  ;;  %v7316_v18 = vld [vmem:[#allocation2 + $0xd78] ss:$40 sps:$4 sm:$0xff]  }
 0x101   : > { %4439 = vmatpush2.bf16.msra.mxu1 %v7235_v19  ;;  %4399 = vmatprep.subr.bf16.mxu0 %v7240_v20  ;;  %v7319_v19 = vld [vmem:[#allocation2 + $0x1278] ss:$40 sps:$4 sm:$0xff]   ;;  %v7324_v20 = vld [vmem:[#allocation2 + $0xd2c] ss:$40 sps:$4 sm:$0xff]  }
 0x102   : > { %4440 = vmatprep.subr.bf16.mxu1 %v7243_v21  ;;  %v7327_v21 = vld [vmem:[#allocation2 + $0x122c] ss:$40 sps:$4 sm:$0xff]  }
 0x104   : > { %4400 = vmatpush2.bf16.msra.mxu0 %v7238_v22  ;;  %v7322_v22 = vld [vmem:[#allocation2 + $0xd28] ss:$40 sps:$4 sm:$0xff]  }
 0x105   : > { %4441 = vmatpush2.bf16.msra.mxu1 %v7241_v23  ;;  %4451 = vmatprep.subr.bf16.mxu0 %v7246_v24  ;;  %v7325_v23 = vld [vmem:[#allocation2 + $0x1228] ss:$40 sps:$4 sm:$0xff]   ;;  %v927_v24 = vlaneseq }
 0x106   : > { %4492 = vmatprep.subr.bf16.mxu1 %v7249_v25  ;;  %v7330_v25 = vld [vmem:[#allocation2 + $0xcdc] ss:$40 sps:$4 sm:$0xff]  }
 0x107   : > { %4402 = vmatmul.mubr.bf16.vlgmr.msra.gmra.mxu0 %v8303_v6 }
 0x108   : > { %4443 = vmatmul.mubr.bf16.vlgmr.msra.gmra.mxu1 %v8305_v7  ;;  %4452 = vmatpush1.bf16.msra.mxu0 %v7244_v26  ;;  %v7333_v26 = vld [vmem:[#allocation2 + $0x11dc] ss:$40 sps:$4 sm:$0xff]  }
 0x109   : > { %4493 = vmatpush1.bf16.msra.mxu1 %v7247_v27  ;;  %4453 = vmatprep.subr.bf16.mxu0 %v7252_v28  ;;  %v7328_v27 = vld [vmem:[#allocation2 + $0xcd8] ss:$40 sps:$4 sm:$0xff]  }
 0x10a   : > { %4494 = vmatprep.subr.bf16.mxu1 %v7255_v29  ;;  %4483 = vmatprep.mubr.bf16.mxu0 %v8317_v36  ;;  %v7331_v28 = vld [vmem:[#allocation2 + $0x11d8] ss:$40 sps:$4 sm:$0xff]   ;;  %v8341_v29 = vshrl.u32 %v927_v24, 7  ;;  %v7387_v24 = vld [vmem:[#allocation2 + $0x514] ss:$40 sps:$4 sm:$0xff]  }
 0x10b   : > { %4524 = vmatprep.mubr.bf16.mxu1 %v8321_v37 }
 0x10c   : > { %4454 = vmatpush1.bf16.msra.mxu0 %v7250_v30  ;;  %v7336_v30 = vld [vmem:[#allocation2 + $0xc8c] ss:$40 sps:$4 sm:$0xff]  }
 0x10d   : > { %4495 = vmatpush1.bf16.msra.mxu1 %v7253_v31  ;;  %4455 = vmatprep.subr.bf16.mxu0 %v7258_v32  ;;  %v7339_v31 = vld [vmem:[#allocation2 + $0x118c] ss:$40 sps:$4 sm:$0xff]   ;;  %v7334_v32 = vld [vmem:[#allocation2 + $0xc88] ss:$40 sps:$4 sm:$0xff]  }
 0x10e   : > { %4496 = vmatprep.subr.bf16.mxu1 %v7261_v33  ;;  %v7337_v33 = vld [vmem:[#allocation2 + $0x1188] ss:$40 sps:$4 sm:$0xff]  }
 0x110   : > { %4456 = vmatpush1.bf16.msra.mxu0 %v7256_v34  ;;  %v923_v34 = vld [vmem:[#allocation4] sm:$0xff] }
 0x111   : > { %4497 = vmatpush1.bf16.msra.mxu1 %v7259_v35  ;;  %4457 = vmatprep.subr.bf16.mxu0 %v7264_v38  ;;  %v929_v35 = vsub.s32 0, %v8341_v29  ;;  %v7342_v38 = vld [vmem:[#allocation2 + $0x244] ss:$40 sps:$4 sm:$0xff]  }
 0x112   : > { %4498 = vmatprep.subr.bf16.mxu1 %v7267_v39  ;;  %v7345_v39 = vld [vmem:[#allocation2 + $0x744] ss:$40 sps:$4 sm:$0xff]  }
 0x114   : > { %4458 = vmatpush1.bf16.msra.mxu0 %v7262_v40  ;;  %v933_v40 = vsub.s32 1, %v8341_v29 }
 0x115   : > { %4499 = vmatpush1.bf16.msra.mxu1 %v7265_v41  ;;  %4459 = vmatprep.subr.bf16.mxu0 %v7270_v42  ;;  %v7340_v41 = vld [vmem:[#allocation2 + $0x240] ss:$40 sps:$4 sm:$0xff]   ;;  %v930_v42 = vrot.slane %v923_v34, %v929_v35 }
 0x116   : > { %4500 = vmatprep.subr.bf16.mxu1 %v7273_v43  ;;  %v7343_v43 = vld [vmem:[#allocation2 + $0x740] ss:$40 sps:$4 sm:$0xff]  }
 0x118   : > { %4460 = vmatpush1.bf16.msra.mxu0 %v7268_v44  ;;  %v7348_v44 = vld [vmem:[#allocation2 + $0x1f4] ss:$40 sps:$4 sm:$0xff]  }
 0x119   : > { %4501 = vmatpush1.bf16.msra.mxu1 %v7271_v45  ;;  %4461 = vmatprep.subr.bf16.mxu0 %v7276_v46  ;;  %v7351_v45 = vld [vmem:[#allocation2 + $0x6f4] ss:$40 sps:$4 sm:$0xff]   ;;  %v934_v46 = vrot.slane %v923_v34, %v933_v40  ;;  %v7394_v34 = vld [vmem:[#allocation2 + $0x470] ss:$40 sps:$4 sm:$0xff]  }
 0x11a   : > { %4502 = vmatprep.subr.bf16.mxu1 %v7279_v48  ;;  %v7346_v48 = vld [vmem:[#allocation2 + $0x1f0] ss:$40 sps:$4 sm:$0xff]  }
 0x11c   : > { %4462 = vmatpush1.bf16.msra.mxu0 %v7274_v49 }
 0x11d   : > { %4503 = vmatpush1.bf16.msra.mxu1 %v7277_v50  ;;  %4463 = vmatprep.subr.bf16.mxu0 %v7282_v52  ;;  %v7349_v52 = vld [vmem:[#allocation2 + $0x6f0] ss:$40 sps:$4 sm:$0xff]  }
 0x11e   : > { %4504 = vmatprep.subr.bf16.mxu1 %v7285_v53 }
 0x120   : > { %4464 = vmatpush1.bf16.msra.mxu0 %v7280_v54  ;;  %v7354_v54 = vld [vmem:[#allocation2 + $0x1a4] ss:$40 sps:$4 sm:$0xff]  }
 0x121   : > { %4505 = vmatpush1.bf16.msra.mxu1 %v7283_v55  ;;  %4465 = vmatprep.subr.bf16.mxu0 %v7288_v56 }
 0x122   : > { %4506 = vmatprep.subr.bf16.mxu1 %v7291_v57  ;;  %v7357_v57 = vld [vmem:[#allocation2 + $0x6a4] ss:$40 sps:$4 sm:$0xff]  }
 0x124   : > { %4466 = vmatpush1.bf16.msra.mxu0 %v7286_v58 }
 0x125   : > { %4507 = vmatpush1.bf16.msra.mxu1 %v7289_v59  ;;  %4467 = vmatprep.subr.bf16.mxu0 %v7294_v60  ;;  %v7352_v60 = vld [vmem:[#allocation2 + $0x1a0] ss:$40 sps:$4 sm:$0xff]  }
 0x126   : > { %4508 = vmatprep.subr.bf16.mxu1 %v7297_v61  ;;  %v7355_v61 = vld [vmem:[#allocation2 + $0x6a0] ss:$40 sps:$4 sm:$0xff]  }
 0x128   : > { %4468 = vmatpush2.bf16.msra.mxu0 %v7292_v62 }
 0x129   : > { %4509 = vmatpush2.bf16.msra.mxu1 %v7295_v63  ;;  %4469 = vmatprep.subr.bf16.mxu0 %v7300_v0 }
 0x12a   : > { %4510 = vmatprep.subr.bf16.mxu1 %v7303_v1 }
 0x12c   : > { %4470 = vmatpush2.bf16.msra.mxu0 %v7298_v2 }
 0x12d   : > { %4511 = vmatpush2.bf16.msra.mxu1 %v7301_v3  ;;  %4471 = vmatprep.subr.bf16.mxu0 %v7306_v4  ;;  %v7360_v3 = vld [vmem:[#allocation2 + $0x154] ss:$40 sps:$4 sm:$0xff]  }
 0x12e   : > { %4512 = vmatprep.subr.bf16.mxu1 %v7309_v5  ;;  %v7363_v4 = vld [vmem:[#allocation2 + $0x654] ss:$40 sps:$4 sm:$0xff]   ;;  %v7358_v5 = vld [vmem:[#allocation2 + $0x150] ss:$40 sps:$4 sm:$0xff]  }
 0x130   : > { %4472 = vmatpush2.bf16.msra.mxu0 %v7304_v8  ;;  %v7361_v8 = vld [vmem:[#allocation2 + $0x650] ss:$40 sps:$4 sm:$0xff]  }
 0x131   : > { %4513 = vmatpush2.bf16.msra.mxu1 %v7307_v9  ;;  %4473 = vmatprep.subr.bf16.mxu0 %v7312_v10  ;;  %v7366_v9 = vld [vmem:[#allocation2 + $0x104] ss:$40 sps:$4 sm:$0xff]  }
 0x132   : > { %4514 = vmatprep.subr.bf16.mxu1 %v7315_v11  ;;  %v7369_v10 = vld [vmem:[#allocation2 + $0x604] ss:$40 sps:$4 sm:$0xff]   ;;  %v7364_v11 = vld [vmem:[#allocation2 + $0x100] ss:$40 sps:$4 sm:$0xff]  }
 0x134   : > { %4474 = vmatpush2.bf16.msra.mxu0 %v7310_v12  ;;  %v7367_v12 = vld [vmem:[#allocation2 + $0x600] ss:$40 sps:$4 sm:$0xff]  }
 0x135   : > { %4515 = vmatpush2.bf16.msra.mxu1 %v7313_v13  ;;  %4475 = vmatprep.subr.bf16.mxu0 %v7318_v14  ;;  %v7372_v13 = vld [vmem:[#allocation2 + $0xb4] ss:$40 sps:$4 sm:$0xff]  }
 0x136   : > { %4516 = vmatprep.subr.bf16.mxu1 %v7321_v15  ;;  %v7375_v14 = vld [vmem:[#allocation2 + $0x5b4] ss:$40 sps:$4 sm:$0xff]   ;;  %v7370_v15 = vld [vmem:[#allocation2 + $0xb0] ss:$40 sps:$4 sm:$0xff]  }
 0x138   : > { %4476 = vmatpush2.bf16.msra.mxu0 %v7316_v18  ;;  %v7373_v18 = vld [vmem:[#allocation2 + $0x5b0] ss:$40 sps:$4 sm:$0xff]  }
 0x139   : > { %4517 = vmatpush2.bf16.msra.mxu1 %v7319_v19  ;;  %4477 = vmatprep.subr.bf16.mxu0 %v7324_v20  ;;  %v7378_v19 = vld [vmem:[#allocation2 + $0x64] ss:$40 sps:$4 sm:$0xff]  }
 0x13a   : > { %4518 = vmatprep.subr.bf16.mxu1 %v7327_v21  ;;  %v7381_v20 = vld [vmem:[#allocation2 + $0x564] ss:$40 sps:$4 sm:$0xff]   ;;  %v7376_v21 = vld [vmem:[#allocation2 + $0x60] ss:$40 sps:$4 sm:$0xff]  }
 0x13c   : > { %4478 = vmatpush2.bf16.msra.mxu0 %v7322_v22  ;;  %v7379_v22 = vld [vmem:[#allocation2 + $0x560] ss:$40 sps:$4 sm:$0xff]  }
 0x13d   : > { %4519 = vmatpush2.bf16.msra.mxu1 %v7325_v23  ;;  %4479 = vmatprep.subr.bf16.mxu0 %v7330_v25  ;;  %v7384_v23 = vld [vmem:[#allocation2 + $0x14] ss:$40 sps:$4 sm:$0xff]   ;;  %v7382_v25 = vld [vmem:[#allocation2 + $0x10] ss:$40 sps:$4 sm:$0xff]  }
 0x13e   : > { %4520 = vmatprep.subr.bf16.mxu1 %v7333_v26  ;;  %v7385_v26 = vld [vmem:[#allocation2 + $0x510] ss:$40 sps:$4 sm:$0xff]  }
 0x140   : > { %4480 = vmatpush2.bf16.msra.mxu0 %v7328_v27  ;;  %v7390_v27 = vld [vmem:[#allocation2 + $0x4c4] ss:$40 sps:$4 sm:$0xff]  }
 0x141   : > { %4521 = vmatpush2.bf16.msra.mxu1 %v7331_v28  ;;  %4481 = vmatprep.subr.bf16.mxu0 %v7336_v30  ;;  %v7393_v28 = vld [vmem:[#allocation2 + $0x9c4] ss:$40 sps:$4 sm:$0xff]   ;;  %v7388_v30 = vld [vmem:[#allocation2 + $0x4c0] ss:$40 sps:$4 sm:$0xff]  }
 0x142   : > { %4522 = vmatprep.subr.bf16.mxu1 %v7339_v31  ;;  %v7391_v31 = vld [vmem:[#allocation2 + $0x9c0] ss:$40 sps:$4 sm:$0xff]  }
 0x144   : > { %4482 = vmatpush2.bf16.msra.mxu0 %v7334_v32  ;;  %v7396_v32 = vld [vmem:[#allocation2 + $0x474] ss:$40 sps:$4 sm:$0xff]  }
 0x145   : > { %4523 = vmatpush2.bf16.msra.mxu1 %v7337_v33  ;;  %4533 = vmatprep.subr.bf16.mxu0 %v7342_v38  ;;  %v7399_v33 = vld [vmem:[#allocation2 + $0x974] ss:$40 sps:$4 sm:$0xff]   ;;  %v7397_v38 = vld [vmem:[#allocation2 + $0x970] ss:$40 sps:$4 sm:$0xff]  }
 0x146   : > { %4574 = vmatprep.subr.bf16.mxu1 %v7345_v39  ;;  %v7402_v39 = vld [vmem:[#allocation2 + $0x424] ss:$40 sps:$4 sm:$0xff]  }
 0x147   : > { %v4239_v49 = vpop.f32.mrf.mxu0  ;;  %4484 = vmatmul.mubr.bf16.vlgmr.msra.gmra.mxu0 %v8327_v16 }
 0x148   : > { %v4280_v50 = vpop.f32.mrf.mxu1  ;;  %4525 = vmatmul.mubr.bf16.vlgmr.msra.gmra.mxu1 %v8331_v17  ;;  %v4240_v53 = vadd.f32 %v4239_v49, %v930_v42  ;;  %4534 = vmatpush1.bf16.msra.mxu0 %v7340_v41  ;;  %v7405_v41 = vld [vmem:[#allocation2 + $0x924] ss:$40 sps:$4 sm:$0xff]   ;;  %v7400_v42 = vld [vmem:[#allocation2 + $0x420] ss:$40 sps:$4 sm:$0xff]  }
 0x149   : > { %4575 = vmatpush1.bf16.msra.mxu1 %v7343_v43  ;;  %v4241_v55 = vpop.f32.mrf.mxu0  ;;  %4535 = vmatprep.subr.bf16.mxu0 %v7348_v44  ;;  %v7403_v43 = vld [vmem:[#allocation2 + $0x920] ss:$40 sps:$4 sm:$0xff]   ;;  %v7408_v44 = vld [vmem:[#allocation2 + $0x3d4] ss:$40 sps:$4 sm:$0xff]   ;;  %v7414_v49 = vld [vmem:[#allocation2 + $0x384] ss:$40 sps:$4 sm:$0xff]  }
 0x14a   : > { %v4282_v56 = vpop.f32.mrf.mxu1  ;;  %4576 = vmatprep.subr.bf16.mxu1 %v7351_v45  ;;  %v8351_v58 = vadd.f32 %v4280_v50, %v4240_v53  ;;  %v4242_v59 = vadd.f32 %v4241_v55, %v934_v46  ;;  %4565 = vmatprep.mubr.bf16.mxu0 %v8296_v47  ;;  %v7411_v45 = vld [vmem:[#allocation2 + $0x8d4] ss:$40 sps:$4 sm:$0xff]   ;;  %v7406_v46 = vld [vmem:[#allocation2 + $0x3d0] ss:$40 sps:$4 sm:$0xff]   ;;  %v7417_v50 = vld [vmem:[#allocation2 + $0x884] ss:$40 sps:$4 sm:$0xff]  }
 0x14b   : > { %4606 = vmatprep.mubr.bf16.mxu1 %v8299_v51  ;;  %v4243_v62 = vpop.f32.mrf.mxu0  ;;  %v7415_v53 = vld [vmem:[#allocation2 + $0x880] ss:$40 sps:$4 sm:$0xff]   ;;  %v7423_v55 = vld [vmem:[#allocation2 + $0x834] ss:$40 sps:$4 sm:$0xff]  }
 0x14c   : > { %v4284_v63 = vpop.f32.mrf.mxu1  ;;  %v8355_v0 = vadd.f32 %v4282_v56, %v4242_v59  ;;  %4536 = vmatpush1.bf16.msra.mxu0 %v7346_v48  ;;  %v7409_v48 = vld [vmem:[#allocation2 + $0x8d0] ss:$40 sps:$4 sm:$0xff]   ;;  %v7426_v59 = vld [vmem:[#allocation2 + $0x2e4] ss:$40 sps:$4 sm:$0xff]   ;;  %v7427_v62 = vld [vmem:[#allocation2 + $0x7e0] ss:$40 sps:$4 sm:$0xff]  }
 0x14d   : > { %4577 = vmatpush1.bf16.msra.mxu1 %v7349_v52  ;;  %v4244_v1 = vpop.f32.mrf.mxu0  ;;  %4537 = vmatprep.subr.bf16.mxu0 %v7354_v54  ;;  %v7412_v52 = vld [vmem:[#allocation2 + $0x380] ss:$40 sps:$4 sm:$0xff]   ;;  %v7420_v54 = vld [vmem:[#allocation2 + $0x334] ss:$40 sps:$4 sm:$0xff]   ;;  %v7418_v56 = vld [vmem:[#allocation2 + $0x330] ss:$40 sps:$4 sm:$0xff]  }
 0x14e   : > { %v4285_v2 = vpop.f32.mrf.mxu1  ;;  %4578 = vmatprep.subr.bf16.mxu1 %v7357_v57  ;;  %v7421_v57 = vld [vmem:[#allocation2 + $0x830] ss:$40 sps:$4 sm:$0xff]   ;;  %v7432_v63 = vld [vmem:[#allocation2 + $0x294] ss:$40 sps:$4 sm:$0xff]  }
 0x14f   : > { %v7435_v1 = vld [vmem:[#allocation2 + $0x794] ss:$40 sps:$4 sm:$0xff]   ;;  %v7430_v2 = vld [vmem:[#allocation2 + $0x290] ss:$40 sps:$4 sm:$0xff]  }
 0x150   : > { %4538 = vmatpush1.bf16.msra.mxu0 %v7352_v60  ;;  %v7429_v60 = vld [vmem:[#allocation2 + $0x7e4] ss:$40 sps:$4 sm:$0xff]  }
 0x151   : > { %4579 = vmatpush1.bf16.msra.mxu1 %v7355_v61  ;;  %4539 = vmatprep.subr.bf16.mxu0 %v7360_v3  ;;  %v7424_v61 = vld [vmem:[#allocation2 + $0x2e0] ss:$40 sps:$4 sm:$0xff]   ;;  %v7433_v3 = vld [vmem:[#allocation2 + $0x790] ss:$40 sps:$4 sm:$0xff]  }
 0x152   : > { %4580 = vmatprep.subr.bf16.mxu1 %v7363_v4  ;;  %v7438_v4 = vld [vmem:[#allocation2 + $0xc44] ss:$40 sps:$4 sm:$0xff]  }
 0x154   : > { %4540 = vmatpush1.bf16.msra.mxu0 %v7358_v5  ;;  %v7441_v5 = vld [vmem:[#allocation2 + $0x1144] ss:$40 sps:$4 sm:$0xff]  }
 0x155   : > { %4581 = vmatpush1.bf16.msra.mxu1 %v7361_v8  ;;  %4541 = vmatprep.subr.bf16.mxu0 %v7366_v9  ;;  %v7436_v8 = vld [vmem:[#allocation2 + $0xc40] ss:$40 sps:$4 sm:$0xff]  }
 0x156   : > { %4582 = vmatprep.subr.bf16.mxu1 %v7369_v10  ;;  %v7439_v9 = vld [vmem:[#allocation2 + $0x1140] ss:$40 sps:$4 sm:$0xff]   ;;  %v7444_v10 = vld [vmem:[#allocation2 + $0xbf4] ss:$40 sps:$4 sm:$0xff]  }
 0x158   : > { %4542 = vmatpush1.bf16.msra.mxu0 %v7364_v11  ;;  %v7447_v11 = vld [vmem:[#allocation2 + $0x10f4] ss:$40 sps:$4 sm:$0xff]  }
 0x159   : > { %4583 = vmatpush1.bf16.msra.mxu1 %v7367_v12  ;;  %4543 = vmatprep.subr.bf16.mxu0 %v7372_v13  ;;  %v7442_v12 = vld [vmem:[#allocation2 + $0xbf0] ss:$40 sps:$4 sm:$0xff]  }
 0x15a   : > { %4584 = vmatprep.subr.bf16.mxu1 %v7375_v14  ;;  %v7445_v13 = vld [vmem:[#allocation2 + $0x10f0] ss:$40 sps:$4 sm:$0xff]  }
 0x15c   : > { %4544 = vmatpush1.bf16.msra.mxu0 %v7370_v15 }
 0x15d   : > { %4585 = vmatpush1.bf16.msra.mxu1 %v7373_v18  ;;  %4545 = vmatprep.subr.bf16.mxu0 %v7378_v19 }
 0x15e   : > { %4586 = vmatprep.subr.bf16.mxu1 %v7381_v20 }
 0x160   : > { %4546 = vmatpush1.bf16.msra.mxu0 %v7376_v21  ;;  %v7450_v21 = vld [vmem:[#allocation2 + $0xba4] ss:$40 sps:$4 sm:$0xff]  }
 0x161   : > { %4587 = vmatpush1.bf16.msra.mxu1 %v7379_v22  ;;  %4547 = vmatprep.subr.bf16.mxu0 %v7384_v23  ;;  %v7453_v22 = vld [vmem:[#allocation2 + $0x10a4] ss:$40 sps:$4 sm:$0xff]  }
 0x162   : > { %4588 = vmatprep.subr.bf16.mxu1 %v7387_v24 }
 0x164   : > { %4548 = vmatpush1.bf16.msra.mxu0 %v7382_v25  ;;  %v7448_v25 = vld [vmem:[#allocation2 + $0xba0] ss:$40 sps:$4 sm:$0xff]  }
 0x165   : > { %4589 = vmatpush1.bf16.msra.mxu1 %v7385_v26  ;;  %4549 = vmatprep.subr.bf16.mxu0 %v7390_v27  ;;  %v7451_v26 = vld [vmem:[#allocation2 + $0x10a0] ss:$40 sps:$4 sm:$0xff]  }
 0x166   : > { %4590 = vmatprep.subr.bf16.mxu1 %v7393_v28 }
 0x168   : > { %4550 = vmatpush2.bf16.msra.mxu0 %v7388_v30 }
 0x169   : > { %4591 = vmatpush2.bf16.msra.mxu1 %v7391_v31  ;;  %4551 = vmatprep.subr.bf16.mxu0 %v7396_v32  ;;  %v7456_v32 = vld [vmem:[#allocation2 + $0xb54] ss:$40 sps:$4 sm:$0xff]  }
 0x16a   : > { %4592 = vmatprep.subr.bf16.mxu1 %v7399_v33  ;;  %v7459_v33 = vld [vmem:[#allocation2 + $0x1054] ss:$40 sps:$4 sm:$0xff]  }
 0x16c   : > { %4552 = vmatpush2.bf16.msra.mxu0 %v7394_v34  ;;  %v7454_v34 = vld [vmem:[#allocation2 + $0xb50] ss:$40 sps:$4 sm:$0xff]  }
 0x16d   : > { %4593 = vmatpush2.bf16.msra.mxu1 %v7397_v38  ;;  %4553 = vmatprep.subr.bf16.mxu0 %v7402_v39  ;;  %v7462_v38 = vld [vmem:[#allocation2 + $0xb04] ss:$40 sps:$4 sm:$0xff]  }
 0x16e   : > { %4594 = vmatprep.subr.bf16.mxu1 %v7405_v41  ;;  %v7465_v39 = vld [vmem:[#allocation2 + $0x1004] ss:$40 sps:$4 sm:$0xff]   ;;  %v7460_v41 = vld [vmem:[#allocation2 + $0xb00] ss:$40 sps:$4 sm:$0xff]  }
 0x170   : > { %4554 = vmatpush2.bf16.msra.mxu0 %v7400_v42  ;;  %v7463_v42 = vld [vmem:[#allocation2 + $0x1000] ss:$40 sps:$4 sm:$0xff]  }
 0x171   : > { %4595 = vmatpush2.bf16.msra.mxu1 %v7403_v43  ;;  %4555 = vmatprep.subr.bf16.mxu0 %v7408_v44  ;;  %v7468_v43 = vld [vmem:[#allocation2 + $0xab4] ss:$40 sps:$4 sm:$0xff]  }
 0x172   : > { %4596 = vmatprep.subr.bf16.mxu1 %v7411_v45  ;;  %v7471_v44 = vld [vmem:[#allocation2 + $0xfb4] ss:$40 sps:$4 sm:$0xff]   ;;  %v7466_v45 = vld [vmem:[#allocation2 + $0xab0] ss:$40 sps:$4 sm:$0xff]  }
 0x174   : > { %4556 = vmatpush2.bf16.msra.mxu0 %v7406_v46  ;;  %v7469_v46 = vld [vmem:[#allocation2 + $0xfb0] ss:$40 sps:$4 sm:$0xff]  }
 0x175   : > { %4597 = vmatpush2.bf16.msra.mxu1 %v7409_v48  ;;  %4557 = vmatprep.subr.bf16.mxu0 %v7414_v49  ;;  %v7474_v48 = vld [vmem:[#allocation2 + $0xa64] ss:$40 sps:$4 sm:$0xff]  }
 0x176   : > { %4598 = vmatprep.subr.bf16.mxu1 %v7417_v50  ;;  %v7477_v49 = vld [vmem:[#allocation2 + $0xf64] ss:$40 sps:$4 sm:$0xff]   ;;  %v7472_v50 = vld [vmem:[#allocation2 + $0xa60] ss:$40 sps:$4 sm:$0xff]  }
 0x178   : > { %4558 = vmatpush2.bf16.msra.mxu0 %v7412_v52  ;;  %v7475_v52 = vld [vmem:[#allocation2 + $0xf60] ss:$40 sps:$4 sm:$0xff]  }
 0x179   : > { %4599 = vmatpush2.bf16.msra.mxu1 %v7415_v53  ;;  %4559 = vmatprep.subr.bf16.mxu0 %v7420_v54  ;;  %v7480_v53 = vld [vmem:[#allocation2 + $0xa14] ss:$40 sps:$4 sm:$0xff]  }
 0x17a   : > { %4600 = vmatprep.subr.bf16.mxu1 %v7423_v55  ;;  %v7483_v54 = vld [vmem:[#allocation2 + $0xf14] ss:$40 sps:$4 sm:$0xff]   ;;  %v7478_v55 = vld [vmem:[#allocation2 + $0xa10] ss:$40 sps:$4 sm:$0xff]  }
 0x17c   : > { %4560 = vmatpush2.bf16.msra.mxu0 %v7418_v56  ;;  %v7481_v56 = vld [vmem:[#allocation2 + $0xf10] ss:$40 sps:$4 sm:$0xff]  }
 0x17d   : > { %4601 = vmatpush2.bf16.msra.mxu1 %v7421_v57  ;;  %4561 = vmatprep.subr.bf16.mxu0 %v7426_v59  ;;  %v7486_v57 = vld [vmem:[#allocation2 + $0xec4] ss:$40 sps:$4 sm:$0xff]  }
 0x17e   : > { %4602 = vmatprep.subr.bf16.mxu1 %v7429_v60  ;;  %v7489_v59 = vld [vmem:[#allocation2 + $0x13c4] ss:$40 sps:$4 sm:$0xff]   ;;  %v7484_v60 = vld [vmem:[#allocation2 + $0xec0] ss:$40 sps:$4 sm:$0xff]  }
 0x180   : > { %4562 = vmatpush2.bf16.msra.mxu0 %v7424_v61  ;;  %v7487_v61 = vld [vmem:[#allocation2 + $0x13c0] ss:$40 sps:$4 sm:$0xff]  }
 0x181   : > { %4603 = vmatpush2.bf16.msra.mxu1 %v7427_v62  ;;  %4563 = vmatprep.subr.bf16.mxu0 %v7432_v63  ;;  %v7492_v62 = vld [vmem:[#allocation2 + $0xe74] ss:$40 sps:$4 sm:$0xff]  }
 0x182   : > { %4604 = vmatprep.subr.bf16.mxu1 %v7435_v1  ;;  %v7495_v63 = vld [vmem:[#allocation2 + $0x1374] ss:$40 sps:$4 sm:$0xff]   ;;  %v7490_v1 = vld [vmem:[#allocation2 + $0xe70] ss:$40 sps:$4 sm:$0xff]  }
 0x184   : > { %4564 = vmatpush2.bf16.msra.mxu0 %v7430_v2  ;;  %v7493_v2 = vld [vmem:[#allocation2 + $0x1370] ss:$40 sps:$4 sm:$0xff]  }
 0x185   : > { %4605 = vmatpush2.bf16.msra.mxu1 %v7433_v3  ;;  %4615 = vmatprep.subr.bf16.mxu0 %v7438_v4  ;;  %v7498_v3 = vld [vmem:[#allocation2 + $0xe24] ss:$40 sps:$4 sm:$0xff]  }
 0x186   : > { %4656 = vmatprep.subr.bf16.mxu1 %v7441_v5  ;;  %v7501_v4 = vld [vmem:[#allocation2 + $0x1324] ss:$40 sps:$4 sm:$0xff]   ;;  %v7496_v5 = vld [vmem:[#allocation2 + $0xe20] ss:$40 sps:$4 sm:$0xff]  }
 0x187   : > { %v4321_v14 = vpop.f32.mrf.mxu0  ;;  %4566 = vmatmul.mubr.bf16.vlgmr.msra.gmra.mxu0 %v8303_v6 }
 0x188   : > { %v4362_v15 = vpop.f32.mrf.mxu1  ;;  %4607 = vmatmul.mubr.bf16.vlgmr.msra.gmra.mxu1 %v8305_v7  ;;  %v4322_v18 = vadd.f32 %v4321_v14, %v8351_v58  ;;  %4616 = vmatpush1.bf16.msra.mxu0 %v7436_v8  ;;  %v7499_v8 = vld [vmem:[#allocation2 + $0x1320] ss:$40 sps:$4 sm:$0xff]   ;;  %v7513_v14 = vld [vmem:[#allocation2 + $0x1284] ss:$40 sps:$4 sm:$0xff]  }
 0x189   : > { %4657 = vmatpush1.bf16.msra.mxu1 %v7439_v9  ;;  %v4323_v19 = vpop.f32.mrf.mxu0  ;;  %4617 = vmatprep.subr.bf16.mxu0 %v7444_v10  ;;  %v7504_v9 = vld [vmem:[#allocation2 + $0xdd4] ss:$40 sps:$4 sm:$0xff]  }
 0x18a   : > { %v4364_v20 = vpop.f32.mrf.mxu1  ;;  %4658 = vmatprep.subr.bf16.mxu1 %v7447_v11  ;;  %v8360_v23 = vadd.f32 %v4362_v15, %v4322_v18  ;;  %v4324_v24 = vadd.f32 %v4323_v19, %v8355_v0  ;;  %4647 = vmatprep.mubr.bf16.mxu0 %v8317_v36  ;;  %v7457_v0 = vld [vmem:[#allocation2 + $0x1050] ss:$40 sps:$4 sm:$0xff]   ;;  %v7507_v10 = vld [vmem:[#allocation2 + $0x12d4] ss:$40 sps:$4 sm:$0xff]   ;;  %v7508_v15 = vld [vmem:[#allocation2 + $0xd80] ss:$40 sps:$4 sm:$0xff]  }
 0x18b   : > { %4688 = vmatprep.mubr.bf16.mxu1 %v8321_v37  ;;  %v4325_v27 = vpop.f32.mrf.mxu0  ;;  %v7502_v11 = vld [vmem:[#allocation2 + $0xdd0] ss:$40 sps:$4 sm:$0xff]   ;;  %v7511_v18 = vld [vmem:[#allocation2 + $0x1280] ss:$40 sps:$4 sm:$0xff]   ;;  %v7516_v19 = vld [vmem:[#allocation2 + $0xd34] ss:$40 sps:$4 sm:$0xff]  }
 0x18c   : > { %v4366_v58 = vpop.f32.mrf.mxu1  ;;  %v8365_v28 = vadd.f32 %v4364_v20, %v4324_v24  ;;  %4618 = vmatpush1.bf16.msra.mxu0 %v7442_v12  ;;  %v7505_v12 = vld [vmem:[#allocation2 + $0x12d0] ss:$40 sps:$4 sm:$0xff]   ;;  %v7519_v20 = vld [vmem:[#allocation2 + $0x1234] ss:$40 sps:$4 sm:$0xff]   ;;  %v7522_v24 = vld [vmem:[#allocation2 + $0xce4] ss:$40 sps:$4 sm:$0xff]  }
 0x18d   : > { %4659 = vmatpush1.bf16.msra.mxu1 %v7445_v13  ;;  %v4326_v30 = vpop.f32.mrf.mxu0  ;;  %4619 = vmatprep.subr.bf16.mxu0 %v7450_v21  ;;  %v7510_v13 = vld [vmem:[#allocation2 + $0xd84] ss:$40 sps:$4 sm:$0xff]   ;;  %v7514_v21 = vld [vmem:[#allocation2 + $0xd30] ss:$40 sps:$4 sm:$0xff]   ;;  %v7523_v27 = vld [vmem:[#allocation2 + $0x11e0] ss:$40 sps:$4 sm:$0xff]  }
 0x18e   : > { %v4367_v31 = vpop.f32.mrf.mxu1  ;;  %4660 = vmatprep.subr.bf16.mxu1 %v7453_v22  ;;  %v7517_v22 = vld [vmem:[#allocation2 + $0x1230] ss:$40 sps:$4 sm:$0xff]   ;;  %v7528_v58 = vld [vmem:[#allocation2 + $0xc94] ss:$40 sps:$4 sm:$0xff]  }
 0x18f   : > { %v7531_v30 = vld [vmem:[#allocation2 + $0x1194] ss:$40 sps:$4 sm:$0xff]   ;;  %v7526_v31 = vld [vmem:[#allocation2 + $0xc90] ss:$40 sps:$4 sm:$0xff]  }
 0x190   : > { %4620 = vmatpush1.bf16.msra.mxu0 %v7448_v25  ;;  %v7525_v25 = vld [vmem:[#allocation2 + $0x11e4] ss:$40 sps:$4 sm:$0xff]  }
 0x191   : > { %4661 = vmatpush1.bf16.msra.mxu1 %v7451_v26  ;;  %4621 = vmatprep.subr.bf16.mxu0 %v7456_v32  ;;  %v7520_v26 = vld [vmem:[#allocation2 + $0xce0] ss:$40 sps:$4 sm:$0xff]   ;;  %v7529_v32 = vld [vmem:[#allocation2 + $0x1190] ss:$40 sps:$4 sm:$0xff]  }
 0x192   : > { %4662 = vmatprep.subr.bf16.mxu1 %v7459_v33  ;;  %v937_v33 = vsub.s32 2, %v8341_v29 }
 0x194   : > { %4622 = vmatpush1.bf16.msra.mxu0 %v7454_v34  ;;  %v7534_v34 = vld [vmem:[#allocation2 + $0x24c] ss:$40 sps:$4 sm:$0xff]  }
 0x195   : > { %4663 = vmatpush1.bf16.msra.mxu1 %v7457_v0  ;;  %4623 = vmatprep.subr.bf16.mxu0 %v7462_v38  ;;  %v7537_v0 = vld [vmem:[#allocation2 + $0x74c] ss:$40 sps:$4 sm:$0xff]   ;;  %v7532_v38 = vld [vmem:[#allocation2 + $0x248] ss:$40 sps:$4 sm:$0xff]  }
 0x196   : > { %4664 = vmatprep.subr.bf16.mxu1 %v7465_v39  ;;  %v7535_v39 = vld [vmem:[#allocation2 + $0x748] ss:$40 sps:$4 sm:$0xff]  }
 0x198   : > { %4624 = vmatpush1.bf16.msra.mxu0 %v7460_v41  ;;  %v941_v41 = vsub.s32 3, %v8341_v29 }
 0x199   : > { %4665 = vmatpush1.bf16.msra.mxu1 %v7463_v42  ;;  %4625 = vmatprep.subr.bf16.mxu0 %v7468_v43  ;;  %v8369_v42 = vld [vmem:[#allocation4] sm:$0xff] }
 0x19a   : > { %4666 = vmatprep.subr.bf16.mxu1 %v7471_v44  ;;  %v938_v43 = vrot.slane %v8369_v42, %v937_v33  ;;  %v7540_v44 = vld [vmem:[#allocation2 + $0x1fc] ss:$40 sps:$4 sm:$0xff]   ;;  %v7580_v33 = vld [vmem:[#allocation2 + $0x4c8] ss:$40 sps:$4 sm:$0xff]  }
 0x19c   : > { %4626 = vmatpush1.bf16.msra.mxu0 %v7466_v45  ;;  %v7543_v45 = vld [vmem:[#allocation2 + $0x6fc] ss:$40 sps:$4 sm:$0xff]  }
 0x19d   : > { %4667 = vmatpush1.bf16.msra.mxu1 %v7469_v46  ;;  %4627 = vmatprep.subr.bf16.mxu0 %v7474_v48  ;;  %v942_v46 = vrot.slane %v8369_v42, %v941_v41  ;;  %v7538_v48 = vld [vmem:[#allocation2 + $0x1f8] ss:$40 sps:$4 sm:$0xff]  }
 0x19e   : > { %4668 = vmatprep.subr.bf16.mxu1 %v7477_v49  ;;  %v7541_v49 = vld [vmem:[#allocation2 + $0x6f8] ss:$40 sps:$4 sm:$0xff]  }
 0x19f   : > { %v7589_v41 = vld [vmem:[#allocation2 + $0x978] ss:$40 sps:$4 sm:$0xff]  }
 0x1a0   : > { %4628 = vmatpush1.bf16.msra.mxu0 %v7472_v50 }
 0x1a1   : > { %4669 = vmatpush1.bf16.msra.mxu1 %v7475_v52  ;;  %4629 = vmatprep.subr.bf16.mxu0 %v7480_v53 }
 0x1a2   : > { %4670 = vmatprep.subr.bf16.mxu1 %v7483_v54 }
 0x1a4   : > { %4630 = vmatpush1.bf16.msra.mxu0 %v7478_v55 }
 0x1a5   : > { %4671 = vmatpush1.bf16.msra.mxu1 %v7481_v56  ;;  %4631 = vmatprep.subr.bf16.mxu0 %v7486_v57  ;;  %v7546_v56 = vld [vmem:[#allocation2 + $0x1ac] ss:$40 sps:$4 sm:$0xff]  }
 0x1a6   : > { %4672 = vmatprep.subr.bf16.mxu1 %v7489_v59  ;;  %v7549_v57 = vld [vmem:[#allocation2 + $0x6ac] ss:$40 sps:$4 sm:$0xff]  }
 0x1a8   : > { %4632 = vmatpush2.bf16.msra.mxu0 %v7484_v60 }
 0x1a9   : > { %4673 = vmatpush2.bf16.msra.mxu1 %v7487_v61  ;;  %4633 = vmatprep.subr.bf16.mxu0 %v7492_v62  ;;  %v7544_v61 = vld [vmem:[#allocation2 + $0x1a8] ss:$40 sps:$4 sm:$0xff]  }
 0x1aa   : > { %4674 = vmatprep.subr.bf16.mxu1 %v7495_v63  ;;  %v7547_v62 = vld [vmem:[#allocation2 + $0x6a8] ss:$40 sps:$4 sm:$0xff]  }
 0x1ac   : > { %4634 = vmatpush2.bf16.msra.mxu0 %v7490_v1 }
 0x1ad   : > { %4675 = vmatpush2.bf16.msra.mxu1 %v7493_v2  ;;  %4635 = vmatprep.subr.bf16.mxu0 %v7498_v3 }
 0x1ae   : > { %4676 = vmatprep.subr.bf16.mxu1 %v7501_v4 }
 0x1b0   : > { %4636 = vmatpush2.bf16.msra.mxu0 %v7496_v5  ;;  %v7552_v5 = vld [vmem:[#allocation2 + $0x15c] ss:$40 sps:$4 sm:$0xff]  }
 0x1b1   : > { %4677 = vmatpush2.bf16.msra.mxu1 %v7499_v8  ;;  %4637 = vmatprep.subr.bf16.mxu0 %v7504_v9  ;;  %v7555_v8 = vld [vmem:[#allocation2 + $0x65c] ss:$40 sps:$4 sm:$0xff]   ;;  %v7550_v9 = vld [vmem:[#allocation2 + $0x158] ss:$40 sps:$4 sm:$0xff]  }
 0x1b2   : > { %4678 = vmatprep.subr.bf16.mxu1 %v7507_v10  ;;  %v7553_v10 = vld [vmem:[#allocation2 + $0x658] ss:$40 sps:$4 sm:$0xff]  }
 0x1b4   : > { %4638 = vmatpush2.bf16.msra.mxu0 %v7502_v11  ;;  %v7558_v11 = vld [vmem:[#allocation2 + $0x10c] ss:$40 sps:$4 sm:$0xff]  }
 0x1b5   : > { %4679 = vmatpush2.bf16.msra.mxu1 %v7505_v12  ;;  %4639 = vmatprep.subr.bf16.mxu0 %v7510_v13  ;;  %v7561_v12 = vld [vmem:[#allocation2 + $0x60c] ss:$40 sps:$4 sm:$0xff]   ;;  %v7556_v13 = vld [vmem:[#allocation2 + $0x108] ss:$40 sps:$4 sm:$0xff]  }
 0x1b6   : > { %4680 = vmatprep.subr.bf16.mxu1 %v7513_v14  ;;  %v7559_v14 = vld [vmem:[#allocation2 + $0x608] ss:$40 sps:$4 sm:$0xff]  }
 0x1b8   : > { %4640 = vmatpush2.bf16.msra.mxu0 %v7508_v15  ;;  %v7564_v15 = vld [vmem:[#allocation2 + $0xbc] ss:$40 sps:$4 sm:$0xff]  }
 0x1b9   : > { %4681 = vmatpush2.bf16.msra.mxu1 %v7511_v18  ;;  %4641 = vmatprep.subr.bf16.mxu0 %v7516_v19  ;;  %v7567_v18 = vld [vmem:[#allocation2 + $0x5bc] ss:$40 sps:$4 sm:$0xff]   ;;  %v7562_v19 = vld [vmem:[#allocation2 + $0xb8] ss:$40 sps:$4 sm:$0xff]  }
 0x1ba   : > { %4682 = vmatprep.subr.bf16.mxu1 %v7519_v20  ;;  %v7565_v20 = vld [vmem:[#allocation2 + $0x5b8] ss:$40 sps:$4 sm:$0xff]  }
 0x1bc   : > { %4642 = vmatpush2.bf16.msra.mxu0 %v7514_v21  ;;  %v7570_v21 = vld [vmem:[#allocation2 + $0x6c] ss:$40 sps:$4 sm:$0xff]  }
 0x1bd   : > { %4683 = vmatpush2.bf16.msra.mxu1 %v7517_v22  ;;  %4643 = vmatprep.subr.bf16.mxu0 %v7522_v24  ;;  %v7573_v22 = vld [vmem:[#allocation2 + $0x56c] ss:$40 sps:$4 sm:$0xff]   ;;  %v7568_v24 = vld [vmem:[#allocation2 + $0x68] ss:$40 sps:$4 sm:$0xff]  }
 0x1be   : > { %4684 = vmatprep.subr.bf16.mxu1 %v7525_v25  ;;  %v7571_v25 = vld [vmem:[#allocation2 + $0x568] ss:$40 sps:$4 sm:$0xff]  }
 0x1c0   : > { %4644 = vmatpush2.bf16.msra.mxu0 %v7520_v26  ;;  %v7576_v26 = vld [vmem:[#allocation2 + $0x1c] ss:$40 sps:$4 sm:$0xff]  }
 0x1c1   : > { %4685 = vmatpush2.bf16.msra.mxu1 %v7523_v27  ;;  %4645 = vmatprep.subr.bf16.mxu0 %v7528_v58  ;;  %v7579_v27 = vld [vmem:[#allocation2 + $0x51c] ss:$40 sps:$4 sm:$0xff]   ;;  %v7574_v58 = vld [vmem:[#allocation2 + $0x18] ss:$40 sps:$4 sm:$0xff]  }
 0x1c2   : > { %4686 = vmatprep.subr.bf16.mxu1 %v7531_v30  ;;  %v7577_v30 = vld [vmem:[#allocation2 + $0x518] ss:$40 sps:$4 sm:$0xff]  }
 0x1c4   : > { %4646 = vmatpush2.bf16.msra.mxu0 %v7526_v31  ;;  %v7582_v31 = vld [vmem:[#allocation2 + $0x4cc] ss:$40 sps:$4 sm:$0xff]  }
 0x1c5   : > { %4687 = vmatpush2.bf16.msra.mxu1 %v7529_v32  ;;  %4697 = vmatprep.subr.bf16.mxu0 %v7534_v34  ;;  %v7585_v32 = vld [vmem:[#allocation2 + $0x9cc] ss:$40 sps:$4 sm:$0xff]   ;;  %v7583_v34 = vld [vmem:[#allocation2 + $0x9c8] ss:$40 sps:$4 sm:$0xff]  }
 0x1c6   : > { %4738 = vmatprep.subr.bf16.mxu1 %v7537_v0  ;;  %v7588_v0 = vld [vmem:[#allocation2 + $0x47c] ss:$40 sps:$4 sm:$0xff]  }
 0x1c7   : > { %v4403_v50 = vpop.f32.mrf.mxu0  ;;  %4648 = vmatmul.mubr.bf16.vlgmr.msra.gmra.mxu0 %v8327_v16 }
 0x1c8   : > { %v4444_v52 = vpop.f32.mrf.mxu1  ;;  %4689 = vmatmul.mubr.bf16.vlgmr.msra.gmra.mxu1 %v8331_v17  ;;  %v4404_v53 = vadd.f32 %v4403_v50, %v938_v43  ;;  %4698 = vmatpush1.bf16.msra.mxu0 %v7532_v38  ;;  %v7591_v38 = vld [vmem:[#allocation2 + $0x97c] ss:$40 sps:$4 sm:$0xff]   ;;  %v7594_v43 = vld [vmem:[#allocation2 + $0x42c] ss:$40 sps:$4 sm:$0xff]   ;;  %v7598_v50 = vld [vmem:[#allocation2 + $0x3d8] ss:$40 sps:$4 sm:$0xff]  }
 0x1c9   : > { %4739 = vmatpush1.bf16.msra.mxu1 %v7535_v39  ;;  %v4405_v54 = vpop.f32.mrf.mxu0  ;;  %4699 = vmatprep.subr.bf16.mxu0 %v7540_v44  ;;  %v7586_v39 = vld [vmem:[#allocation2 + $0x478] ss:$40 sps:$4 sm:$0xff]   ;;  %v7597_v44 = vld [vmem:[#allocation2 + $0x92c] ss:$40 sps:$4 sm:$0xff]  }
 0x1ca   : > { %v4446_v55 = vpop.f32.mrf.mxu1  ;;  %4740 = vmatprep.subr.bf16.mxu1 %v7543_v45  ;;  %v8375_v59 = vadd.f32 %v4444_v52, %v4404_v53  ;;  %v4406_v60 = vadd.f32 %v4405_v54, %v942_v46  ;;  %4729 = vmatprep.mubr.bf16.mxu0 %v8296_v47  ;;  %v7592_v45 = vld [vmem:[#allocation2 + $0x428] ss:$40 sps:$4 sm:$0xff]   ;;  %v7601_v52 = vld [vmem:[#allocation2 + $0x8d8] ss:$40 sps:$4 sm:$0xff]   ;;  %v7606_v53 = vld [vmem:[#allocation2 + $0x38c] ss:$40 sps:$4 sm:$0xff]  }
 0x1cb   : > { %4770 = vmatprep.mubr.bf16.mxu1 %v8299_v51  ;;  %v4407_v63 = vpop.f32.mrf.mxu0  ;;  %v7595_v46 = vld [vmem:[#allocation2 + $0x928] ss:$40 sps:$4 sm:$0xff]   ;;  %v7609_v54 = vld [vmem:[#allocation2 + $0x88c] ss:$40 sps:$4 sm:$0xff]  }
 0x1cc   : > { %v4448_v1 = vpop.f32.mrf.mxu1  ;;  %v8379_v2 = vadd.f32 %v4446_v55, %v4406_v60  ;;  %4700 = vmatpush1.bf16.msra.mxu0 %v7538_v48  ;;  %v7600_v48 = vld [vmem:[#allocation2 + $0x3dc] ss:$40 sps:$4 sm:$0xff]   ;;  %v7604_v55 = vld [vmem:[#allocation2 + $0x388] ss:$40 sps:$4 sm:$0xff]   ;;  %v7618_v63 = vld [vmem:[#allocation2 + $0x2ec] ss:$40 sps:$4 sm:$0xff]  }
 0x1cd   : > { %4741 = vmatpush1.bf16.msra.mxu1 %v7541_v49  ;;  %v4408_v3 = vpop.f32.mrf.mxu0  ;;  %4701 = vmatprep.subr.bf16.mxu0 %v7546_v56  ;;  %v7603_v49 = vld [vmem:[#allocation2 + $0x8dc] ss:$40 sps:$4 sm:$0xff]   ;;  %v7607_v56 = vld [vmem:[#allocation2 + $0x888] ss:$40 sps:$4 sm:$0xff]   ;;  %v7621_v1 = vld [vmem:[#allocation2 + $0x7ec] ss:$40 sps:$4 sm:$0xff]  }
 0x1ce   : > { %v4449_v4 = vpop.f32.mrf.mxu1  ;;  %4742 = vmatprep.subr.bf16.mxu1 %v7549_v57  ;;  %v7612_v57 = vld [vmem:[#allocation2 + $0x33c] ss:$40 sps:$4 sm:$0xff]   ;;  %v7616_v3 = vld [vmem:[#allocation2 + $0x2e8] ss:$40 sps:$4 sm:$0xff]  }
 0x1cf   : > { %v7615_v60 = vld [vmem:[#allocation2 + $0x83c] ss:$40 sps:$4 sm:$0xff]   ;;  %v7619_v4 = vld [vmem:[#allocation2 + $0x7e8] ss:$40 sps:$4 sm:$0xff]  }
 0x1d0   : > { %4702 = vmatpush1.bf16.msra.mxu0 %v7544_v61  ;;  %v7610_v61 = vld [vmem:[#allocation2 + $0x338] ss:$40 sps:$4 sm:$0xff]  }
 0x1d1   : > { %4743 = vmatpush1.bf16.msra.mxu1 %v7547_v62  ;;  %4703 = vmatprep.subr.bf16.mxu0 %v7552_v5  ;;  %v7613_v62 = vld [vmem:[#allocation2 + $0x838] ss:$40 sps:$4 sm:$0xff]   ;;  %v7624_v5 = vld [vmem:[#allocation2 + $0x29c] ss:$40 sps:$4 sm:$0xff]  }
 0x1d2   : > { %4744 = vmatprep.subr.bf16.mxu1 %v7555_v8  ;;  %v7627_v8 = vld [vmem:[#allocation2 + $0x79c] ss:$40 sps:$4 sm:$0xff]  }
 0x1d4   : > { %4704 = vmatpush1.bf16.msra.mxu0 %v7550_v9  ;;  %v7622_v9 = vld [vmem:[#allocation2 + $0x298] ss:$40 sps:$4 sm:$0xff]  }
 0x1d5   : > { %4745 = vmatpush1.bf16.msra.mxu1 %v7553_v10  ;;  %4705 = vmatprep.subr.bf16.mxu0 %v7558_v11  ;;  %v7625_v10 = vld [vmem:[#allocation2 + $0x798] ss:$40 sps:$4 sm:$0xff]   ;;  %v7630_v11 = vld [vmem:[#allocation2 + $0xc4c] ss:$40 sps:$4 sm:$0xff]  }
 0x1d6   : > { %4746 = vmatprep.subr.bf16.mxu1 %v7561_v12  ;;  %v7633_v12 = vld [vmem:[#allocation2 + $0x114c] ss:$40 sps:$4 sm:$0xff]  }
 0x1d8   : > { %4706 = vmatpush1.bf16.msra.mxu0 %v7556_v13  ;;  %v7628_v13 = vld [vmem:[#allocation2 + $0xc48] ss:$40 sps:$4 sm:$0xff]  }
 0x1d9   : > { %4747 = vmatpush1.bf16.msra.mxu1 %v7559_v14  ;;  %4707 = vmatprep.subr.bf16.mxu0 %v7564_v15  ;;  %v7631_v14 = vld [vmem:[#allocation2 + $0x1148] ss:$40 sps:$4 sm:$0xff]   ;;  %v7636_v15 = vld [vmem:[#allocation2 + $0xbfc] ss:$40 sps:$4 sm:$0xff]  }
 0x1da   : > { %4748 = vmatprep.subr.bf16.mxu1 %v7567_v18  ;;  %v7639_v18 = vld [vmem:[#allocation2 + $0x10fc] ss:$40 sps:$4 sm:$0xff]  }
 0x1dc   : > { %4708 = vmatpush1.bf16.msra.mxu0 %v7562_v19  ;;  %v7634_v19 = vld [vmem:[#allocation2 + $0xbf8] ss:$40 sps:$4 sm:$0xff]  }
 0x1dd   : > { %4749 = vmatpush1.bf16.msra.mxu1 %v7565_v20  ;;  %4709 = vmatprep.subr.bf16.mxu0 %v7570_v21  ;;  %v7637_v20 = vld [vmem:[#allocation2 + $0x10f8] ss:$40 sps:$4 sm:$0xff]  }
 0x1de   : > { %4750 = vmatprep.subr.bf16.mxu1 %v7573_v22 }
 0x1e0   : > { %4710 = vmatpush1.bf16.msra.mxu0 %v7568_v24 }
 0x1e1   : > { %4751 = vmatpush1.bf16.msra.mxu1 %v7571_v25  ;;  %4711 = vmatprep.subr.bf16.mxu0 %v7576_v26 }
 0x1e2   : > { %4752 = vmatprep.subr.bf16.mxu1 %v7579_v27  ;;  %v7642_v27 = vld [vmem:[#allocation2 + $0xbac] ss:$40 sps:$4 sm:$0xff]  }
 0x1e4   : > { %4712 = vmatpush1.bf16.msra.mxu0 %v7574_v58  ;;  %v7645_v58 = vld [vmem:[#allocation2 + $0x10ac] ss:$40 sps:$4 sm:$0xff]  }
 0x1e5   : > { %4753 = vmatpush1.bf16.msra.mxu1 %v7577_v30  ;;  %4713 = vmatprep.subr.bf16.mxu0 %v7582_v31 }
 0x1e6   : > { %4754 = vmatprep.subr.bf16.mxu1 %v7585_v32  ;;  %v7640_v32 = vld [vmem:[#allocation2 + $0xba8] ss:$40 sps:$4 sm:$0xff]  }
 0x1e8   : > { %4714 = vmatpush2.bf16.msra.mxu0 %v7580_v33 }
 0x1e9   : > { %4755 = vmatpush2.bf16.msra.mxu1 %v7583_v34  ;;  %4715 = vmatprep.subr.bf16.mxu0 %v7588_v0  ;;  %v7643_v0 = vld [vmem:[#allocation2 + $0x10a8] ss:$40 sps:$4 sm:$0xff]  }
 0x1ea   : > { %4756 = vmatprep.subr.bf16.mxu1 %v7591_v38 }
 0x1ec   : > { %4716 = vmatpush2.bf16.msra.mxu0 %v7586_v39 }
 0x1ed   : > { %4757 = vmatpush2.bf16.msra.mxu1 %v7589_v41  ;;  %4717 = vmatprep.subr.bf16.mxu0 %v7594_v43  ;;  %v7648_v41 = vld [vmem:[#allocation2 + $0xb5c] ss:$40 sps:$4 sm:$0xff]  }
 0x1ee   : > { %4758 = vmatprep.subr.bf16.mxu1 %v7597_v44  ;;  %v7651_v43 = vld [vmem:[#allocation2 + $0x105c] ss:$40 sps:$4 sm:$0xff]   ;;  %v7646_v44 = vld [vmem:[#allocation2 + $0xb58] ss:$40 sps:$4 sm:$0xff]  }
 0x1f0   : > { %4718 = vmatpush2.bf16.msra.mxu0 %v7592_v45  ;;  %v7654_v45 = vld [vmem:[#allocation2 + $0xb0c] ss:$40 sps:$4 sm:$0xff]  }
 0x1f1   : > { %4759 = vmatpush2.bf16.msra.mxu1 %v7595_v46  ;;  %4719 = vmatprep.subr.bf16.mxu0 %v7600_v48  ;;  %v7657_v46 = vld [vmem:[#allocation2 + $0x100c] ss:$40 sps:$4 sm:$0xff]   ;;  %v7652_v48 = vld [vmem:[#allocation2 + $0xb08] ss:$40 sps:$4 sm:$0xff]  }
 0x1f2   : > { %4760 = vmatprep.subr.bf16.mxu1 %v7603_v49  ;;  %v7655_v49 = vld [vmem:[#allocation2 + $0x1008] ss:$40 sps:$4 sm:$0xff]  }
 0x1f4   : > { %4720 = vmatpush2.bf16.msra.mxu0 %v7598_v50  ;;  %v7660_v50 = vld [vmem:[#allocation2 + $0xabc] ss:$40 sps:$4 sm:$0xff]  }
 0x1f5   : > { %4761 = vmatpush2.bf16.msra.mxu1 %v7601_v52  ;;  %4721 = vmatprep.subr.bf16.mxu0 %v7606_v53  ;;  %v7663_v52 = vld [vmem:[#allocation2 + $0xfbc] ss:$40 sps:$4 sm:$0xff]   ;;  %v7658_v53 = vld [vmem:[#allocation2 + $0xab8] ss:$40 sps:$4 sm:$0xff]  }
 0x1f6   : > { %4762 = vmatprep.subr.bf16.mxu1 %v7609_v54  ;;  %v7661_v54 = vld [vmem:[#allocation2 + $0xfb8] ss:$40 sps:$4 sm:$0xff]  }
 0x1f8   : > { %4722 = vmatpush2.bf16.msra.mxu0 %v7604_v55  ;;  %v7666_v55 = vld [vmem:[#allocation2 + $0xa6c] ss:$40 sps:$4 sm:$0xff]  }
 0x1f9   : > { %4763 = vmatpush2.bf16.msra.mxu1 %v7607_v56  ;;  %4723 = vmatprep.subr.bf16.mxu0 %v7612_v57  ;;  %v7669_v56 = vld [vmem:[#allocation2 + $0xf6c] ss:$40 sps:$4 sm:$0xff]   ;;  %v7664_v57 = vld [vmem:[#allocation2 + $0xa68] ss:$40 sps:$4 sm:$0xff]  }
 0x1fa   : > { %4764 = vmatprep.subr.bf16.mxu1 %v7615_v60  ;;  %v7667_v60 = vld [vmem:[#allocation2 + $0xf68] ss:$40 sps:$4 sm:$0xff]  }
 0x1fc   : > { %4724 = vmatpush2.bf16.msra.mxu0 %v7610_v61  ;;  %v7672_v61 = vld [vmem:[#allocation2 + $0xa1c] ss:$40 sps:$4 sm:$0xff]  }
 0x1fd   : > { %4765 = vmatpush2.bf16.msra.mxu1 %v7613_v62  ;;  %4725 = vmatprep.subr.bf16.mxu0 %v7618_v63  ;;  %v7675_v62 = vld [vmem:[#allocation2 + $0xf1c] ss:$40 sps:$4 sm:$0xff]   ;;  %v7670_v63 = vld [vmem:[#allocation2 + $0xa18] ss:$40 sps:$4 sm:$0xff]  }
 0x1fe   : > { %4766 = vmatprep.subr.bf16.mxu1 %v7621_v1  ;;  %v7673_v1 = vld [vmem:[#allocation2 + $0xf18] ss:$40 sps:$4 sm:$0xff]  }
 0x200   : > { %4726 = vmatpush2.bf16.msra.mxu0 %v7616_v3  ;;  %v7678_v3 = vld [vmem:[#allocation2 + $0xecc] ss:$40 sps:$4 sm:$0xff]  }
 0x201   : > { %4767 = vmatpush2.bf16.msra.mxu1 %v7619_v4  ;;  %4727 = vmatprep.subr.bf16.mxu0 %v7624_v5  ;;  %v7681_v4 = vld [vmem:[#allocation2 + $0x13cc] ss:$40 sps:$4 sm:$0xff]   ;;  %v7676_v5 = vld [vmem:[#allocation2 + $0xec8] ss:$40 sps:$4 sm:$0xff]  }
 0x202   : > { %4768 = vmatprep.subr.bf16.mxu1 %v7627_v8  ;;  %v7679_v8 = vld [vmem:[#allocation2 + $0x13c8] ss:$40 sps:$4 sm:$0xff]  }
 0x204   : > { %4728 = vmatpush2.bf16.msra.mxu0 %v7622_v9  ;;  %v7684_v9 = vld [vmem:[#allocation2 + $0xe7c] ss:$40 sps:$4 sm:$0xff]  }
 0x205   : > { %4769 = vmatpush2.bf16.msra.mxu1 %v7625_v10  ;;  %4779 = vmatprep.subr.bf16.mxu0 %v7630_v11  ;;  %v7687_v10 = vld [vmem:[#allocation2 + $0x137c] ss:$40 sps:$4 sm:$0xff]   ;;  %v7682_v11 = vld [vmem:[#allocation2 + $0xe78] ss:$40 sps:$4 sm:$0xff]  }
 0x206   : > { %4820 = vmatprep.subr.bf16.mxu1 %v7633_v12  ;;  %v7685_v12 = vld [vmem:[#allocation2 + $0x1378] ss:$40 sps:$4 sm:$0xff]  }
 0x207   : > { %v4485_v21 = vpop.f32.mrf.mxu0  ;;  %4730 = vmatmul.mubr.bf16.vlgmr.msra.gmra.mxu0 %v8303_v6 }
 0x208   : > { %v4526_v22 = vpop.f32.mrf.mxu1  ;;  %4771 = vmatmul.mubr.bf16.vlgmr.msra.gmra.mxu1 %v8305_v7  ;;  %v4486_v24 = vadd.f32 %v4485_v21, %v8375_v59  ;;  %4780 = vmatpush1.bf16.msra.mxu0 %v7628_v13  ;;  %v7690_v13 = vld [vmem:[#allocation2 + $0xe2c] ss:$40 sps:$4 sm:$0xff]   ;;  %v7694_v21 = vld [vmem:[#allocation2 + $0xdd8] ss:$40 sps:$4 sm:$0xff]  }
 0x209   : > { %4821 = vmatpush1.bf16.msra.mxu1 %v7631_v14  ;;  %v4487_v25 = vpop.f32.mrf.mxu0  ;;  %4781 = vmatprep.subr.bf16.mxu0 %v7636_v15  ;;  %v7693_v14 = vld [vmem:[#allocation2 + $0x132c] ss:$40 sps:$4 sm:$0xff]   ;;  %v7688_v15 = vld [vmem:[#allocation2 + $0xe28] ss:$40 sps:$4 sm:$0xff]  }
 0x20a   : > { %v4528_v26 = vpop.f32.mrf.mxu1  ;;  %4822 = vmatprep.subr.bf16.mxu1 %v7639_v18  ;;  %v8384_v30 = vadd.f32 %v4526_v22, %v4486_v24  ;;  %v4488_v31 = vadd.f32 %v4487_v25, %v8379_v2  ;;  %4811 = vmatprep.mubr.bf16.mxu0 %v8317_v36  ;;  %v7649_v2 = vld [vmem:[#allocation2 + $0x1058] ss:$40 sps:$4 sm:$0xff]   ;;  %v7691_v18 = vld [vmem:[#allocation2 + $0x1328] ss:$40 sps:$4 sm:$0xff]   ;;  %v7702_v24 = vld [vmem:[#allocation2 + $0xd8c] ss:$40 sps:$4 sm:$0xff]  }
 0x20b   : > { %4852 = vmatprep.mubr.bf16.mxu1 %v8321_v37  ;;  %v4489_v33 = vpop.f32.mrf.mxu0  ;;  %v7697_v22 = vld [vmem:[#allocation2 + $0x12d8] ss:$40 sps:$4 sm:$0xff]   ;;  %v7705_v25 = vld [vmem:[#allocation2 + $0x128c] ss:$40 sps:$4 sm:$0xff]  }
 0x20c   : > { %v4530_v34 = vpop.f32.mrf.mxu1  ;;  %v8389_v59 = vadd.f32 %v4528_v26, %v4488_v31  ;;  %4782 = vmatpush1.bf16.msra.mxu0 %v7634_v19  ;;  %v7696_v19 = vld [vmem:[#allocation2 + $0xddc] ss:$40 sps:$4 sm:$0xff]   ;;  %v7700_v26 = vld [vmem:[#allocation2 + $0xd88] ss:$40 sps:$4 sm:$0xff]   ;;  %v7709_v33 = vld [vmem:[#allocation2 + $0x1238] ss:$40 sps:$4 sm:$0xff]  }
 0x20d   : > { %4823 = vmatpush1.bf16.msra.mxu1 %v7637_v20  ;;  %v4490_v38 = vpop.f32.mrf.mxu0  ;;  %4783 = vmatprep.subr.bf16.mxu0 %v7642_v27  ;;  %v7699_v20 = vld [vmem:[#allocation2 + $0x12dc] ss:$40 sps:$4 sm:$0xff]   ;;  %v7703_v27 = vld [vmem:[#allocation2 + $0x1288] ss:$40 sps:$4 sm:$0xff]   ;;  %v7714_v34 = vld [vmem:[#allocation2 + $0xcec] ss:$40 sps:$4 sm:$0xff]  }
 0x20e   : > { %v4531_v39 = vpop.f32.mrf.mxu1  ;;  %4824 = vmatprep.subr.bf16.mxu1 %v7645_v58  ;;  %v7708_v58 = vld [vmem:[#allocation2 + $0xd3c] ss:$40 sps:$4 sm:$0xff]   ;;  %v7712_v38 = vld [vmem:[#allocation2 + $0xce8] ss:$40 sps:$4 sm:$0xff]  }
 0x20f   : > { %v7711_v31 = vld [vmem:[#allocation2 + $0x123c] ss:$40 sps:$4 sm:$0xff]   ;;  %v7715_v39 = vld [vmem:[#allocation2 + $0x11e8] ss:$40 sps:$4 sm:$0xff]  }
 0x210   : > { %4784 = vmatpush1.bf16.msra.mxu0 %v7640_v32  ;;  %v7706_v32 = vld [vmem:[#allocation2 + $0xd38] ss:$40 sps:$4 sm:$0xff]  }
 0x211   : > { %4825 = vmatpush1.bf16.msra.mxu1 %v7643_v0  ;;  %4785 = vmatprep.subr.bf16.mxu0 %v7648_v41  ;;  %v7717_v0 = vld [vmem:[#allocation2 + $0x11ec] ss:$40 sps:$4 sm:$0xff]   ;;  %v7720_v41 = vld [vmem:[#allocation2 + $0xc9c] ss:$40 sps:$4 sm:$0xff]  }
 0x212   : > { %4826 = vmatprep.subr.bf16.mxu1 %v7651_v43  ;;  %v7723_v43 = vld [vmem:[#allocation2 + $0x119c] ss:$40 sps:$4 sm:$0xff]  }
 0x214   : > { %4786 = vmatpush1.bf16.msra.mxu0 %v7646_v44  ;;  %v7718_v44 = vld [vmem:[#allocation2 + $0xc98] ss:$40 sps:$4 sm:$0xff]  }
 0x215   : > { %4827 = vmatpush1.bf16.msra.mxu1 %v7649_v2  ;;  %4787 = vmatprep.subr.bf16.mxu0 %v7654_v45  ;;  %v7721_v2 = vld [vmem:[#allocation2 + $0x1198] ss:$40 sps:$4 sm:$0xff]   ;;  %v945_v45 = vsub.s32 4, %v8341_v29 }
 0x216   : > { %4828 = vmatprep.subr.bf16.mxu1 %v7657_v46  ;;  %v7726_v46 = vld [vmem:[#allocation2 + $0x254] ss:$40 sps:$4 sm:$0xff]  }
 0x218   : > { %4788 = vmatpush1.bf16.msra.mxu0 %v7652_v48  ;;  %v7729_v48 = vld [vmem:[#allocation2 + $0x754] ss:$40 sps:$4 sm:$0xff]  }
 0x219   : > { %4829 = vmatpush1.bf16.msra.mxu1 %v7655_v49  ;;  %4789 = vmatprep.subr.bf16.mxu0 %v7660_v50  ;;  %v949_v49 = vsub.s32 5, %v8341_v29  ;;  %v946_v50 = vrot.slane %v8369_v42, %v945_v45  ;;  %v7775_v45 = vld [vmem:[#allocation2 + $0x9d0] ss:$40 sps:$4 sm:$0xff]  }
 0x21a   : > { %4830 = vmatprep.subr.bf16.mxu1 %v7663_v52  ;;  %v7724_v52 = vld [vmem:[#allocation2 + $0x250] ss:$40 sps:$4 sm:$0xff]  }
 0x21c   : > { %4790 = vmatpush1.bf16.msra.mxu0 %v7658_v53  ;;  %v7727_v53 = vld [vmem:[#allocation2 + $0x750] ss:$40 sps:$4 sm:$0xff]  }
 0x21d   : > { %4831 = vmatpush1.bf16.msra.mxu1 %v7661_v54  ;;  %4791 = vmatprep.subr.bf16.mxu0 %v7666_v55  ;;  %v7732_v54 = vld [vmem:[#allocation2 + $0x204] ss:$40 sps:$4 sm:$0xff]  }
 0x21e   : > { %4832 = vmatprep.subr.bf16.mxu1 %v7669_v56  ;;  %v7735_v55 = vld [vmem:[#allocation2 + $0x704] ss:$40 sps:$4 sm:$0xff]   ;;  %v950_v56 = vrot.slane %v8369_v42, %v949_v49  ;;  %v7778_v49 = vld [vmem:[#allocation2 + $0x480] ss:$40 sps:$4 sm:$0xff]  }
 0x220   : > { %4792 = vmatpush1.bf16.msra.mxu0 %v7664_v57 }
 0x221   : > { %4833 = vmatpush1.bf16.msra.mxu1 %v7667_v60  ;;  %4793 = vmatprep.subr.bf16.mxu0 %v7672_v61 }
 0x222   : > { %4834 = vmatprep.subr.bf16.mxu1 %v7675_v62  ;;  %v7730_v62 = vld [vmem:[#allocation2 + $0x200] ss:$40 sps:$4 sm:$0xff]  }
 0x224   : > { %4794 = vmatpush1.bf16.msra.mxu0 %v7670_v63  ;;  %v7733_v63 = vld [vmem:[#allocation2 + $0x700] ss:$40 sps:$4 sm:$0xff]  }
 0x225   : > { %4835 = vmatpush1.bf16.msra.mxu1 %v7673_v1  ;;  %4795 = vmatprep.subr.bf16.mxu0 %v7678_v3 }
 0x226   : > { %4836 = vmatprep.subr.bf16.mxu1 %v7681_v4  ;;  %v7738_v4 = vld [vmem:[#allocation2 + $0x1b4] ss:$40 sps:$4 sm:$0xff]  }
 0x228   : > { %4796 = vmatpush2.bf16.msra.mxu0 %v7676_v5  ;;  %v7741_v5 = vld [vmem:[#allocation2 + $0x6b4] ss:$40 sps:$4 sm:$0xff]  }
 0x229   : > { %4837 = vmatpush2.bf16.msra.mxu1 %v7679_v8  ;;  %4797 = vmatprep.subr.bf16.mxu0 %v7684_v9 }
 0x22a   : > { %4838 = vmatprep.subr.bf16.mxu1 %v7687_v10 }
 0x22c   : > { %4798 = vmatpush2.bf16.msra.mxu0 %v7682_v11 }
 0x22d   : > { %4839 = vmatpush2.bf16.msra.mxu1 %v7685_v12  ;;  %4799 = vmatprep.subr.bf16.mxu0 %v7690_v13  ;;  %v7736_v12 = vld [vmem:[#allocation2 + $0x1b0] ss:$40 sps:$4 sm:$0xff]  }
 0x22e   : > { %4840 = vmatprep.subr.bf16.mxu1 %v7693_v14  ;;  %v7739_v13 = vld [vmem:[#allocation2 + $0x6b0] ss:$40 sps:$4 sm:$0xff]  }
 0x230   : > { %4800 = vmatpush2.bf16.msra.mxu0 %v7688_v15 }
 0x231   : > { %4841 = vmatpush2.bf16.msra.mxu1 %v7691_v18  ;;  %4801 = vmatprep.subr.bf16.mxu0 %v7696_v19  ;;  %v7744_v18 = vld [vmem:[#allocation2 + $0x164] ss:$40 sps:$4 sm:$0xff]  }
 0x232   : > { %4842 = vmatprep.subr.bf16.mxu1 %v7699_v20  ;;  %v7747_v19 = vld [vmem:[#allocation2 + $0x664] ss:$40 sps:$4 sm:$0xff]   ;;  %v7742_v20 = vld [vmem:[#allocation2 + $0x160] ss:$40 sps:$4 sm:$0xff]  }
 0x234   : > { %4802 = vmatpush2.bf16.msra.mxu0 %v7694_v21  ;;  %v7753_v21 = vld [vmem:[#allocation2 + $0x614] ss:$40 sps:$4 sm:$0xff]  }
 0x235   : > { %4843 = vmatpush2.bf16.msra.mxu1 %v7697_v22  ;;  %4803 = vmatprep.subr.bf16.mxu0 %v7702_v24  ;;  %v7748_v22 = vld [vmem:[#allocation2 + $0x110] ss:$40 sps:$4 sm:$0xff]  }
 0x236   : > { %4844 = vmatprep.subr.bf16.mxu1 %v7705_v25  ;;  %v7751_v24 = vld [vmem:[#allocation2 + $0x610] ss:$40 sps:$4 sm:$0xff]   ;;  %v7756_v25 = vld [vmem:[#allocation2 + $0xc4] ss:$40 sps:$4 sm:$0xff]  }
 0x238   : > { %4804 = vmatpush2.bf16.msra.mxu0 %v7700_v26  ;;  %v7759_v26 = vld [vmem:[#allocation2 + $0x5c4] ss:$40 sps:$4 sm:$0xff]  }
 0x239   : > { %4845 = vmatpush2.bf16.msra.mxu1 %v7703_v27  ;;  %4805 = vmatprep.subr.bf16.mxu0 %v7708_v58  ;;  %v7754_v27 = vld [vmem:[#allocation2 + $0xc0] ss:$40 sps:$4 sm:$0xff]  }
 0x23a   : > { %4846 = vmatprep.subr.bf16.mxu1 %v7711_v31  ;;  %v7757_v58 = vld [vmem:[#allocation2 + $0x5c0] ss:$40 sps:$4 sm:$0xff]   ;;  %v7762_v31 = vld [vmem:[#allocation2 + $0x74] ss:$40 sps:$4 sm:$0xff]  }
 0x23c   : > { %4806 = vmatpush2.bf16.msra.mxu0 %v7706_v32  ;;  %v7765_v32 = vld [vmem:[#allocation2 + $0x574] ss:$40 sps:$4 sm:$0xff]  }
 0x23d   : > { %4847 = vmatpush2.bf16.msra.mxu1 %v7709_v33  ;;  %4807 = vmatprep.subr.bf16.mxu0 %v7714_v34  ;;  %v7760_v33 = vld [vmem:[#allocation2 + $0x70] ss:$40 sps:$4 sm:$0xff]  }
 0x23e   : > { %4848 = vmatprep.subr.bf16.mxu1 %v7717_v0  ;;  %v7763_v34 = vld [vmem:[#allocation2 + $0x570] ss:$40 sps:$4 sm:$0xff]   ;;  %v7768_v0 = vld [vmem:[#allocation2 + $0x24] ss:$40 sps:$4 sm:$0xff]  }
 0x240   : > { %4808 = vmatpush2.bf16.msra.mxu0 %v7712_v38  ;;  %v7771_v38 = vld [vmem:[#allocation2 + $0x524] ss:$40 sps:$4 sm:$0xff]  }
 0x241   : > { %4849 = vmatpush2.bf16.msra.mxu1 %v7715_v39  ;;  %4809 = vmatprep.subr.bf16.mxu0 %v7720_v41  ;;  %v7766_v39 = vld [vmem:[#allocation2 + $0x20] ss:$40 sps:$4 sm:$0xff]  }
 0x242   : > { %4850 = vmatprep.subr.bf16.mxu1 %v7723_v43  ;;  %v7769_v41 = vld [vmem:[#allocation2 + $0x520] ss:$40 sps:$4 sm:$0xff]   ;;  %v7774_v43 = vld [vmem:[#allocation2 + $0x4d4] ss:$40 sps:$4 sm:$0xff]  }
 0x244   : > { %4810 = vmatpush2.bf16.msra.mxu0 %v7718_v44  ;;  %v7777_v44 = vld [vmem:[#allocation2 + $0x9d4] ss:$40 sps:$4 sm:$0xff]  }
 0x245   : > { %4851 = vmatpush2.bf16.msra.mxu1 %v7721_v2  ;;  %4861 = vmatprep.subr.bf16.mxu0 %v7726_v46  ;;  %v7772_v2 = vld [vmem:[#allocation2 + $0x4d0] ss:$40 sps:$4 sm:$0xff]   ;;  %v7780_v46 = vld [vmem:[#allocation2 + $0x484] ss:$40 sps:$4 sm:$0xff]  }
 0x246   : > { %4902 = vmatprep.subr.bf16.mxu1 %v7729_v48  ;;  %v7783_v48 = vld [vmem:[#allocation2 + $0x984] ss:$40 sps:$4 sm:$0xff]  }
 0x247   : > { %v4567_v57 = vpop.f32.mrf.mxu0  ;;  %4812 = vmatmul.mubr.bf16.vlgmr.msra.gmra.mxu0 %v8327_v16 }
 0x248   : > { %v4608_v60 = vpop.f32.mrf.mxu1  ;;  %4853 = vmatmul.mubr.bf16.vlgmr.msra.gmra.mxu1 %v8331_v17  ;;  %v4568_v61 = vadd.f32 %v4567_v57, %v946_v50  ;;  %4862 = vmatpush1.bf16.msra.mxu0 %v7724_v52  ;;  %v7781_v50 = vld [vmem:[#allocation2 + $0x980] ss:$40 sps:$4 sm:$0xff]   ;;  %v7786_v52 = vld [vmem:[#allocation2 + $0x434] ss:$40 sps:$4 sm:$0xff]   ;;  %v7795_v57 = vld [vmem:[#allocation2 + $0x8e4] ss:$40 sps:$4 sm:$0xff]  }
 0x249   : > { %4903 = vmatpush1.bf16.msra.mxu1 %v7727_v53  ;;  %v4569_v1 = vpop.f32.mrf.mxu0  ;;  %4863 = vmatprep.subr.bf16.mxu0 %v7732_v54  ;;  %v7789_v53 = vld [vmem:[#allocation2 + $0x934] ss:$40 sps:$4 sm:$0xff]   ;;  %v7784_v54 = vld [vmem:[#allocation2 + $0x430] ss:$40 sps:$4 sm:$0xff]  }
 0x24a   : > { %v4610_v3 = vpop.f32.mrf.mxu1  ;;  %4904 = vmatprep.subr.bf16.mxu1 %v7735_v55  ;;  %v8397_v8 = vadd.f32 %v4608_v60, %v4568_v61  ;;  %v4570_v42 = vadd.f32 %v4569_v1, %v950_v56  ;;  %4893 = vmatprep.mubr.bf16.mxu0 %v8296_v47  ;;  %v7745_v47 = vld [vmem:[#allocation2 + $0x660] ss:$40 sps:$4 sm:$0xff]   ;;  %v7787_v55 = vld [vmem:[#allocation2 + $0x930] ss:$40 sps:$4 sm:$0xff]   ;;  %v7792_v56 = vld [vmem:[#allocation2 + $0x3e4] ss:$40 sps:$4 sm:$0xff]  }
 0x24b   : > { %4934 = vmatprep.mubr.bf16.mxu1 %v8299_v51  ;;  %v4571_v9 = vpop.f32.mrf.mxu0  ;;  %v7750_v51 = vld [vmem:[#allocation2 + $0x114] ss:$40 sps:$4 sm:$0xff]   ;;  %v7790_v60 = vld [vmem:[#allocation2 + $0x3e0] ss:$40 sps:$4 sm:$0xff]   ;;  %v7796_v1 = vld [vmem:[#allocation2 + $0x390] ss:$40 sps:$4 sm:$0xff]  }
 0x24c   : > { %v4612_v10 = vpop.f32.mrf.mxu1  ;;  %v8401_v11 = vadd.f32 %v4610_v3, %v4570_v42  ;;  %4864 = vmatpush1.bf16.msra.mxu0 %v7730_v62  ;;  %v7793_v61 = vld [vmem:[#allocation2 + $0x8e0] ss:$40 sps:$4 sm:$0xff]   ;;  %v7798_v62 = vld [vmem:[#allocation2 + $0x394] ss:$40 sps:$4 sm:$0xff]   ;;  %v7799_v3 = vld [vmem:[#allocation2 + $0x890] ss:$40 sps:$4 sm:$0xff]  }
 0x24d   : > { %4905 = vmatpush1.bf16.msra.mxu1 %v7733_v63  ;;  %v4572_v14 = vpop.f32.mrf.mxu0  ;;  %4865 = vmatprep.subr.bf16.mxu0 %v7738_v4  ;;  %v7801_v63 = vld [vmem:[#allocation2 + $0x894] ss:$40 sps:$4 sm:$0xff]   ;;  %v7804_v4 = vld [vmem:[#allocation2 + $0x344] ss:$40 sps:$4 sm:$0xff]   ;;  %v7802_v42 = vld [vmem:[#allocation2 + $0x340] ss:$40 sps:$4 sm:$0xff]  }
 0x24e   : > { %v4613_v15 = vpop.f32.mrf.mxu1  ;;  %4906 = vmatprep.subr.bf16.mxu1 %v7741_v5  ;;  %v7807_v5 = vld [vmem:[#allocation2 + $0x844] ss:$40 sps:$4 sm:$0xff]   ;;  %v7805_v9 = vld [vmem:[#allocation2 + $0x840] ss:$40 sps:$4 sm:$0xff]   ;;  %v7810_v10 = vld [vmem:[#allocation2 + $0x2f4] ss:$40 sps:$4 sm:$0xff]  }
 0x24f   : > { %v7811_v14 = vld [vmem:[#allocation2 + $0x7f0] ss:$40 sps:$4 sm:$0xff]   ;;  %v7816_v15 = vld [vmem:[#allocation2 + $0x2a4] ss:$40 sps:$4 sm:$0xff]  }
 0x250   : > { %4866 = vmatpush1.bf16.msra.mxu0 %v7736_v12  ;;  %v7813_v12 = vld [vmem:[#allocation2 + $0x7f4] ss:$40 sps:$4 sm:$0xff]  }
 0x251   : > { %4907 = vmatpush1.bf16.msra.mxu1 %v7739_v13  ;;  %4867 = vmatprep.subr.bf16.mxu0 %v7744_v18  ;;  %v7808_v13 = vld [vmem:[#allocation2 + $0x2f0] ss:$40 sps:$4 sm:$0xff]   ;;  %v7819_v18 = vld [vmem:[#allocation2 + $0x7a4] ss:$40 sps:$4 sm:$0xff]  }
 0x252   : > { %4908 = vmatprep.subr.bf16.mxu1 %v7747_v19  ;;  %v7814_v19 = vld [vmem:[#allocation2 + $0x2a0] ss:$40 sps:$4 sm:$0xff]  }
 0x254   : > { %4868 = vmatpush1.bf16.msra.mxu0 %v7742_v20  ;;  %v7817_v20 = vld [vmem:[#allocation2 + $0x7a0] ss:$40 sps:$4 sm:$0xff]  }
 0x255   : > { %4909 = vmatpush1.bf16.msra.mxu1 %v7745_v47  ;;  %4869 = vmatprep.subr.bf16.mxu0 %v7750_v51  ;;  %v7822_v47 = vld [vmem:[#allocation2 + $0xc54] ss:$40 sps:$4 sm:$0xff]  }
 0x256   : > { %4910 = vmatprep.subr.bf16.mxu1 %v7753_v21  ;;  %v7825_v51 = vld [vmem:[#allocation2 + $0x1154] ss:$40 sps:$4 sm:$0xff]   ;;  %v7820_v21 = vld [vmem:[#allocation2 + $0xc50] ss:$40 sps:$4 sm:$0xff]  }
 0x258   : > { %4870 = vmatpush1.bf16.msra.mxu0 %v7748_v22  ;;  %v7823_v22 = vld [vmem:[#allocation2 + $0x1150] ss:$40 sps:$4 sm:$0xff]  }
 0x259   : > { %4911 = vmatpush1.bf16.msra.mxu1 %v7751_v24  ;;  %4871 = vmatprep.subr.bf16.mxu0 %v7756_v25  ;;  %v7828_v24 = vld [vmem:[#allocation2 + $0xc04] ss:$40 sps:$4 sm:$0xff]  }
 0x25a   : > { %4912 = vmatprep.subr.bf16.mxu1 %v7759_v26  ;;  %v7831_v25 = vld [vmem:[#allocation2 + $0x1104] ss:$40 sps:$4 sm:$0xff]  }
 0x25c   : > { %4872 = vmatpush1.bf16.msra.mxu0 %v7754_v27 }
 0x25d   : > { %4913 = vmatpush1.bf16.msra.mxu1 %v7757_v58  ;;  %4873 = vmatprep.subr.bf16.mxu0 %v7762_v31  ;;  %v7826_v31 = vld [vmem:[#allocation2 + $0xc00] ss:$40 sps:$4 sm:$0xff]  }
 0x25e   : > { %4914 = vmatprep.subr.bf16.mxu1 %v7765_v32  ;;  %v7829_v32 = vld [vmem:[#allocation2 + $0x1100] ss:$40 sps:$4 sm:$0xff]  }
 0x260   : > { %4874 = vmatpush1.bf16.msra.mxu0 %v7760_v33 }
 0x261   : > { %4915 = vmatpush1.bf16.msra.mxu1 %v7763_v34  ;;  %4875 = vmatprep.subr.bf16.mxu0 %v7768_v0  ;;  %v7834_v0 = vld [vmem:[#allocation2 + $0xbb4] ss:$40 sps:$4 sm:$0xff]  }
 0x262   : > { %4916 = vmatprep.subr.bf16.mxu1 %v7771_v38  ;;  %v7837_v38 = vld [vmem:[#allocation2 + $0x10b4] ss:$40 sps:$4 sm:$0xff]  }
 0x264   : > { %4876 = vmatpush1.bf16.msra.mxu0 %v7766_v39 }
 0x265   : > { %4917 = vmatpush1.bf16.msra.mxu1 %v7769_v41  ;;  %4877 = vmatprep.subr.bf16.mxu0 %v7774_v43  ;;  %v7835_v41 = vld [vmem:[#allocation2 + $0x10b0] ss:$40 sps:$4 sm:$0xff]  }
 0x266   : > { %4918 = vmatprep.subr.bf16.mxu1 %v7777_v44 }
 0x268   : > { %4878 = vmatpush2.bf16.msra.mxu0 %v7772_v2  ;;  %v7840_v2 = vld [vmem:[#allocation2 + $0xb64] ss:$40 sps:$4 sm:$0xff]  }
 0x269   : > { %4919 = vmatpush2.bf16.msra.mxu1 %v7775_v45  ;;  %4879 = vmatprep.subr.bf16.mxu0 %v7780_v46  ;;  %v7843_v45 = vld [vmem:[#allocation2 + $0x1064] ss:$40 sps:$4 sm:$0xff]   ;;  %v7838_v46 = vld [vmem:[#allocation2 + $0xb60] ss:$40 sps:$4 sm:$0xff]  }
 0x26a   : > { %4920 = vmatprep.subr.bf16.mxu1 %v7783_v48  ;;  %v7841_v48 = vld [vmem:[#allocation2 + $0x1060] ss:$40 sps:$4 sm:$0xff]  }
 0x26c   : > { %4880 = vmatpush2.bf16.msra.mxu0 %v7778_v49  ;;  %v7844_v49 = vld [vmem:[#allocation2 + $0xb10] ss:$40 sps:$4 sm:$0xff]  }
 0x26d   : > { %4921 = vmatpush2.bf16.msra.mxu1 %v7781_v50  ;;  %4881 = vmatprep.subr.bf16.mxu0 %v7786_v52  ;;  %v7847_v50 = vld [vmem:[#allocation2 + $0x1010] ss:$40 sps:$4 sm:$0xff]   ;;  %v7852_v52 = vld [vmem:[#allocation2 + $0xac4] ss:$40 sps:$4 sm:$0xff]  }
 0x26e   : > { %4922 = vmatprep.subr.bf16.mxu1 %v7789_v53  ;;  %v7855_v53 = vld [vmem:[#allocation2 + $0xfc4] ss:$40 sps:$4 sm:$0xff]  }
 0x270   : > { %4882 = vmatpush2.bf16.msra.mxu0 %v7784_v54  ;;  %v7850_v54 = vld [vmem:[#allocation2 + $0xac0] ss:$40 sps:$4 sm:$0xff]  }
 0x271   : > { %4923 = vmatpush2.bf16.msra.mxu1 %v7787_v55  ;;  %4883 = vmatprep.subr.bf16.mxu0 %v7792_v56  ;;  %v7853_v55 = vld [vmem:[#allocation2 + $0xfc0] ss:$40 sps:$4 sm:$0xff]   ;;  %v7858_v56 = vld [vmem:[#allocation2 + $0xa74] ss:$40 sps:$4 sm:$0xff]  }
 0x272   : > { %4924 = vmatprep.subr.bf16.mxu1 %v7795_v57  ;;  %v7861_v57 = vld [vmem:[#allocation2 + $0xf74] ss:$40 sps:$4 sm:$0xff]  }
 0x274   : > { %4884 = vmatpush2.bf16.msra.mxu0 %v7790_v60  ;;  %v5026_v60 = vsub.f32 0.0, %v8365_v28  ;;  %v7873_v28 = vld [vmem:[#allocation2 + $0x13d4] ss:$40 sps:$4 sm:$0xff]  }
 0x275   : > { %4925 = vmatpush2.bf16.msra.mxu1 %v7793_v61  ;;  %4885 = vmatprep.subr.bf16.mxu0 %v7798_v62  ;;  %v5028_v61 = vsub.f32 0.0, %v8389_v59  ;;  %v7856_v62 = vld [vmem:[#allocation2 + $0xa70] ss:$40 sps:$4 sm:$0xff]  }
 0x276   : > { %4926 = vmatprep.subr.bf16.mxu1 %v7801_v63  ;;  %v7859_v63 = vld [vmem:[#allocation2 + $0xf70] ss:$40 sps:$4 sm:$0xff]  }
 0x277   : > { %v7868_v59 = vld [vmem:[#allocation2 + $0xed0] ss:$40 sps:$4 sm:$0xff]  }
 0x278   : > { %4886 = vmatpush2.bf16.msra.mxu0 %v7796_v1  ;;  %v7864_v1 = vld [vmem:[#allocation2 + $0xa24] ss:$40 sps:$4 sm:$0xff]  }
 0x279   : > { %4927 = vmatpush2.bf16.msra.mxu1 %v7799_v3  ;;  %4887 = vmatprep.subr.bf16.mxu0 %v7804_v4  ;;  %v7867_v3 = vld [vmem:[#allocation2 + $0xf24] ss:$40 sps:$4 sm:$0xff]   ;;  %v5037_v4 = vmul.f32 1.442695, %v5026_v60 }
 0x27a   : > { %4928 = vmatprep.subr.bf16.mxu1 %v7807_v5  ;;  %v5041_v5 = vmul.f32 1.442695, %v5028_v61  ;;  %v7918_v60 = vld [vmem:[#allocation6 + $0x38] sm:$0xff]  }
 0x27b   : > { %7996 = vpow2.f32 %v5037_v4  ;;  %v7919_v61 = vld [vmem:[#allocation6 + $0xb8] sm:$0xff]  }
 0x27c   : > { %4888 = vmatpush2.bf16.msra.mxu0 %v7802_v42  ;;  %v7862_v42 = vld [vmem:[#allocation2 + $0xa20] ss:$40 sps:$4 sm:$0xff]   ;;  %7998 = vpow2.f32 %v5041_v5 }
 0x27d   : > { %4929 = vmatpush2.bf16.msra.mxu1 %v7805_v9  ;;  %4889 = vmatprep.subr.bf16.mxu0 %v7810_v10  ;;  %v7865_v9 = vld [vmem:[#allocation2 + $0xf20] ss:$40 sps:$4 sm:$0xff]   ;;  %v7870_v10 = vld [vmem:[#allocation2 + $0xed4] ss:$40 sps:$4 sm:$0xff]  }
 0x27e   : > { %4930 = vmatprep.subr.bf16.mxu1 %v7813_v12  ;;  %v7871_v12 = vld [vmem:[#allocation2 + $0x13d0] ss:$40 sps:$4 sm:$0xff]  }
 0x280   : > { %4890 = vmatpush2.bf16.msra.mxu0 %v7808_v13  ;;  %v7876_v13 = vld [vmem:[#allocation2 + $0xe84] ss:$40 sps:$4 sm:$0xff]  }
 0x281   : > { %4931 = vmatpush2.bf16.msra.mxu1 %v7811_v14  ;;  %4891 = vmatprep.subr.bf16.mxu0 %v7816_v15  ;;  %v7879_v14 = vld [vmem:[#allocation2 + $0x1384] ss:$40 sps:$4 sm:$0xff]   ;;  %v7874_v15 = vld [vmem:[#allocation2 + $0xe80] ss:$40 sps:$4 sm:$0xff]  }
 0x282   : > { %4932 = vmatprep.subr.bf16.mxu1 %v7819_v18  ;;  %v7877_v18 = vld [vmem:[#allocation2 + $0x1380] ss:$40 sps:$4 sm:$0xff]  }
 0x284   : > { %4892 = vmatpush2.bf16.msra.mxu0 %v7814_v19  ;;  %v7882_v19 = vld [vmem:[#allocation2 + $0xe34] ss:$40 sps:$4 sm:$0xff]  }
 0x285   : > { %4933 = vmatpush2.bf16.msra.mxu1 %v7817_v20  ;;  %4943 = vmatprep.subr.bf16.mxu0 %v7822_v47  ;;  %v7885_v20 = vld [vmem:[#allocation2 + $0x1334] ss:$40 sps:$4 sm:$0xff]   ;;  %v7880_v47 = vld [vmem:[#allocation2 + $0xe30] ss:$40 sps:$4 sm:$0xff]  }
 0x286   : > { %4984 = vmatprep.subr.bf16.mxu1 %v7825_v51  ;;  %v7883_v51 = vld [vmem:[#allocation2 + $0x1330] ss:$40 sps:$4 sm:$0xff]  }
 0x287   : > { %v4649_v26 = vpop.f32.mrf.mxu0  ;;  %4894 = vmatmul.mubr.bf16.vlgmr.msra.gmra.mxu0 %v8303_v6 }
 0x288   : > { %v4690_v27 = vpop.f32.mrf.mxu1  ;;  %4935 = vmatmul.mubr.bf16.vlgmr.msra.gmra.mxu1 %v8305_v7  ;;  %v4650_v58 = vadd.f32 %v4649_v26, %v8397_v8  ;;  %4944 = vmatpush1.bf16.msra.mxu0 %v7820_v21  ;;  %v7832_v8 = vld [vmem:[#allocation2 + $0xbb0] ss:$40 sps:$4 sm:$0xff]   ;;  %v7888_v21 = vld [vmem:[#allocation2 + $0xde4] ss:$40 sps:$4 sm:$0xff]   ;;  %v7886_v26 = vld [vmem:[#allocation2 + $0xde0] ss:$40 sps:$4 sm:$0xff]  }
 0x289   : > { %4985 = vmatpush1.bf16.msra.mxu1 %v7823_v22  ;;  %v8406_v33 = vpop.f32.mrf.mxu0  ;;  %4945 = vmatprep.subr.bf16.mxu0 %v7828_v24  ;;  %v7891_v22 = vld [vmem:[#allocation2 + $0x12e4] ss:$40 sps:$4 sm:$0xff]   ;;  %v7997_v24 = vpop.eup %7996 }
 0x28a   : > { %v8408_v34 = vpop.f32.mrf.mxu1  ;;  %4986 = vmatprep.subr.bf16.mxu1 %v7831_v25  ;;  %v8410_v39 = vadd.f32 %v4690_v27, %v4650_v58  ;;  %4975 = vmatprep.mubr.bf16.mxu0 %v8317_v36  ;;  %v7846_v36 = vld [vmem:[#allocation2 + $0xb14] ss:$40 sps:$4 sm:$0xff]   ;;  %v7999_v25 = vpop.eup %7998  ;;  %v7889_v27 = vld [vmem:[#allocation2 + $0x12e0] ss:$40 sps:$4 sm:$0xff]  }
 0x28b   : > { %5016 = vmatprep.mubr.bf16.mxu1 %v8321_v37  ;;  %v4653_v6 = vpop.f32.mrf.mxu0  ;;  %v7849_v37 = vld [vmem:[#allocation2 + $0x1014] ss:$40 sps:$4 sm:$0xff]  }
 0x28c   : > { %v4694_v7 = vpop.f32.mrf.mxu1  ;;  %4946 = vmatpush1.bf16.msra.mxu0 %v7826_v31  ;;  %v7894_v58 = vld [vmem:[#allocation2 + $0xd94] ss:$40 sps:$4 sm:$0xff]   ;;  %v7892_v6 = vld [vmem:[#allocation2 + $0xd90] ss:$40 sps:$4 sm:$0xff]  }
 0x28d   : > { %4987 = vmatpush1.bf16.msra.mxu1 %v7829_v32  ;;  %v4654_v43 = vpop.f32.mrf.mxu0  ;;  %4947 = vmatprep.subr.bf16.mxu0 %v7834_v0  ;;  %v7897_v31 = vld [vmem:[#allocation2 + $0x1294] ss:$40 sps:$4 sm:$0xff]   ;;  %v5056_v32 = vadd.f32 1.0, %v7997_v24  ;;  %v5058_v0 = vadd.f32 1.0, %v7999_v25  ;;  %v7895_v7 = vld [vmem:[#allocation2 + $0x1290] ss:$40 sps:$4 sm:$0xff]  }
 0x28e   : > { %v4695_v44 = vpop.f32.mrf.mxu1  ;;  %4988 = vmatprep.subr.bf16.mxu1 %v7837_v38  ;;  %v4652_v38 = vadd.f32 %v8406_v33, %v8401_v11  ;;  %v7906_v11 = vld [vmem:[#allocation2 + $0xcf4] ss:$40 sps:$4 sm:$0xff]   ;;  %v7931_v25 = vld [vmem:[#allocation6 + $0xa0] sm:$0xff]  }
 0x28f   : > { %8000 = vrcp.f32 %v5056_v32  ;;  %v7898_v44 = vld [vmem:[#allocation2 + $0xd40] ss:$40 sps:$4 sm:$0xff]   ;;  %v7909_v33 = vld [vmem:[#allocation2 + $0x11f4] ss:$40 sps:$4 sm:$0xff]  }
 0x290   : > { %4948 = vmatpush1.bf16.msra.mxu0 %v7832_v8  ;;  %v7900_v8 = vld [vmem:[#allocation2 + $0xd44] ss:$40 sps:$4 sm:$0xff]   ;;  %8002 = vrcp.f32 %v5058_v0  ;;  %v4693_v43 = vadd.f32 %v8408_v34, %v4652_v38  ;;  %v7936_v38 = vld [vmem:[#allocation6 + $0x50] sm:$0xff]  }
 0x291   : > { %4989 = vmatpush1.bf16.msra.mxu1 %v7835_v41  ;;  %4949 = vmatprep.subr.bf16.mxu0 %v7840_v2  ;;  %v7903_v41 = vld [vmem:[#allocation2 + $0x1244] ss:$40 sps:$4 sm:$0xff]   ;;  %v7901_v2 = vld [vmem:[#allocation2 + $0x1240] ss:$40 sps:$4 sm:$0xff]  }
 0x292   : > { %4990 = vmatprep.subr.bf16.mxu1 %v7843_v45  ;;  %v5025_v45 = vsub.f32 0.0, %v8360_v23  ;;  %v7912_v34 = vld [vmem:[#allocation2 + $0xca4] ss:$40 sps:$4 sm:$0xff]   ;;  %v7910_v23 = vld [vmem:[#allocation2 + $0xca0] ss:$40 sps:$4 sm:$0xff]  }
 0x293   : > { %v7934_v32 = vld [vmem:[#allocation6 + $0x18] sm:$0xff]  }
 0x294   : > { %4950 = vmatpush1.bf16.msra.mxu0 %v7838_v46  ;;  %v5027_v46 = vsub.f32 0.0, %v8384_v30  ;;  %v7916_v30 = vld [vmem:[#allocation6 + $0x78] sm:$0xff]  }
 0x295   : > { %4991 = vmatpush1.bf16.msra.mxu1 %v7841_v48  ;;  %4951 = vmatprep.subr.bf16.mxu0 %v7846_v36  ;;  %v5030_v48 = vsub.f32 0.0, %v4693_v43  ;;  %v7904_v36 = vld [vmem:[#allocation2 + $0xcf0] ss:$40 sps:$4 sm:$0xff]   ;;  %v7935_v0 = vld [vmem:[#allocation6 + $0x98] sm:$0xff]  }
 0x296   : > { %4992 = vmatprep.subr.bf16.mxu1 %v7849_v37  ;;  %v7907_v37 = vld [vmem:[#allocation2 + $0x11f0] ss:$40 sps:$4 sm:$0xff]  }
 0x297   : > { %v7940_v43 = vld [vmem:[#allocation6 + $0x48] sm:$0xff]  }
 0x298   : > { %4952 = vmatpush1.bf16.msra.mxu0 %v7844_v49  ;;  %v5035_v49 = vmul.f32 1.442695, %v5025_v45 }
 0x299   : > { %4993 = vmatpush1.bf16.msra.mxu1 %v7847_v50  ;;  %4953 = vmatprep.subr.bf16.mxu0 %v7852_v52  ;;  %v7915_v50 = vld [vmem:[#allocation2 + $0x11a4] ss:$40 sps:$4 sm:$0xff]   ;;  %v5039_v52 = vmul.f32 1.442695, %v5027_v46 }
 0x29a   : > { %4994 = vmatprep.subr.bf16.mxu1 %v7855_v53  ;;  %v5045_v53 = vmul.f32 1.442695, %v5030_v48  ;;  %8004 = vpow2.f32 %v5035_v49  ;;  %v7945_v46 = vld [vmem:[#allocation6 + $0xc0] sm:$0xff]   ;;  %v7964_v49 = vld [vmem:[#allocation6 + $0x1f8] sm:$0xff]  }
 0x29b   : > { %8006 = vpow2.f32 %v5039_v52  ;;  %v7946_v48 = vld [vmem:[#allocation6] sm:$0xff]   ;;  %v7949_v52 = vld [vmem:[#allocation6 + $0x138] sm:$0xff]  }
 0x29c   : > { %4954 = vmatpush1.bf16.msra.mxu0 %v7850_v54  ;;  %v7913_v54 = vld [vmem:[#allocation2 + $0x11a0] ss:$40 sps:$4 sm:$0xff]   ;;  %8008 = vpow2.f32 %v5045_v53 }
 0x29d   : > { %4995 = vmatpush1.bf16.msra.mxu1 %v7853_v55  ;;  %4955 = vmatprep.subr.bf16.mxu0 %v7858_v56  ;;  %v7917_v55 = vld [vmem:[#allocation6 + $0xf8] sm:$0xff]   ;;  %v8001_v56 = vpop.eup %8000 }
 0x29e   : > { %4996 = vmatprep.subr.bf16.mxu1 %v7861_v57  ;;  %v8003_v57 = vpop.eup %8002 }
 0x29f   : > { %v5088_v5 = vpack.c.bf16 %v8003_v57, %v8003_v57  ;;  %v7951_v57 = vld [vmem:[#allocation6 + $0x130] sm:$0xff]  }
 0x2a0   : > { %4956 = vmatpush1.bf16.msra.mxu0 %v7856_v62  ;;  %v5086_v62 = vpack.c.bf16 %v8001_v56, %v8001_v56  ;;  %v7966_v56 = vld [vmem:[#allocation6 + $0x1f0] sm:$0xff]  }
 0x2a1   : > { %4997 = vmatpush1.bf16.msra.mxu1 %v7859_v63  ;;  %4957 = vmatprep.subr.bf16.mxu0 %v7864_v1  ;;  %v7920_v63 = vld [vmem:[#allocation6 + $0x70] sm:$0xff]  }
 0x2a2   : > { %4998 = vmatprep.subr.bf16.mxu1 %v7867_v3  ;;  %v7921_v1 = vld [vmem:[#allocation6 + $0xf0] sm:$0xff]  }
 0x2a4   : > { %4958 = vmatpush1.bf16.msra.mxu0 %v7862_v42  ;;  %v7922_v42 = vld [vmem:[#allocation6 + $0x30] sm:$0xff]  }
 0x2a5   : > { %4999 = vmatpush1.bf16.msra.mxu1 %v7865_v9  ;;  %4959 = vmatprep.subr.bf16.mxu0 %v7870_v10 }
 0x2a6   : > { %5000 = vmatprep.subr.bf16.mxu1 %v7873_v28  ;;  %v7923_v28 = vld [vmem:[#allocation6 + $0xb0] sm:$0xff]  }
 0x2a8   : > { %4960 = vmatpush2.bf16.msra.mxu0 %v7868_v59  ;;  %v7924_v59 = vld [vmem:[#allocation6 + $0x68] sm:$0xff]  }
 0x2a9   : > { %5001 = vmatpush2.bf16.msra.mxu1 %v7871_v12  ;;  %4961 = vmatprep.subr.bf16.mxu0 %v7876_v13  ;;  %v7925_v12 = vld [vmem:[#allocation6 + $0xe8] sm:$0xff]  }
 0x2aa   : > { %5002 = vmatprep.subr.bf16.mxu1 %v7879_v14 }
 0x2ac   : > { %4962 = vmatpush2.bf16.msra.mxu0 %v7874_v15 }
 0x2ad   : > { %5003 = vmatpush2.bf16.msra.mxu1 %v7877_v18  ;;  %4963 = vmatprep.subr.bf16.mxu0 %v7882_v19  ;;  %v7927_v18 = vld [vmem:[#allocation6 + $0xa8] sm:$0xff]   ;;  %v7928_v19 = vld [vmem:[#allocation6 + $0x60] sm:$0xff]  }
 0x2ae   : > { %5004 = vmatprep.subr.bf16.mxu1 %v7885_v20  ;;  %v8005_v20 = vpop.eup %8004 }
 0x2af   : > { %v5055_v24 = vadd.f32 1.0, %v8005_v20  ;;  %v7959_v20 = vld [vmem:[#allocation6 + $0x110] sm:$0xff]  }
 0x2b0   : > { %4964 = vmatpush2.bf16.msra.mxu0 %v7880_v47  ;;  %v7929_v47 = vld [vmem:[#allocation6 + $0xe0] sm:$0xff]  }
 0x2b1   : > { %5005 = vmatpush2.bf16.msra.mxu1 %v7883_v51  ;;  %4965 = vmatprep.subr.bf16.mxu0 %v7888_v21  ;;  %v8007_v51 = vpop.eup %8006  ;;  %8010 = vrcp.f32 %v5055_v24  ;;  %v957_v24 = vsub.s32 7, %v8341_v29 }
 0x2b2   : > { %5006 = vmatprep.subr.bf16.mxu1 %v7891_v22  ;;  %v8009_v21 = vpop.eup %8008  ;;  %v7930_v22 = vld [vmem:[#allocation6 + $0x20] sm:$0xff]  }
 0x2b4   : > { %4966 = vmatpush2.bf16.msra.mxu0 %v7886_v26  ;;  %v7932_v26 = vld [vmem:[#allocation6 + $0x58] sm:$0xff]  }
 0x2b5   : > { %5007 = vmatpush2.bf16.msra.mxu1 %v7889_v27  ;;  %4967 = vmatprep.subr.bf16.mxu0 %v7894_v58  ;;  %v5057_v27 = vadd.f32 1.0, %v8007_v51  ;;  %v7933_v58 = vld [vmem:[#allocation6 + $0xd8] sm:$0xff]   ;;  %v953_v51 = vsub.s32 6, %v8341_v29 }
 0x2b6   : > { %5008 = vmatprep.subr.bf16.mxu1 %v7897_v31  ;;  %v5060_v31 = vadd.f32 1.0, %v8009_v21  ;;  %v7975_v21 = vld [vmem:[#allocation6 + $0x190] sm:$0xff]  }
 0x2b7   : > { %8012 = vrcp.f32 %v5057_v27  ;;  %v8037_v27 = vld [vmem:[#allocation4] sm:$0xff] }
 0x2b8   : > { %4968 = vmatpush2.bf16.msra.mxu0 %v7892_v6  ;;  %v7937_v6 = vld [vmem:[#allocation6 + $0xd0] sm:$0xff]   ;;  %8014 = vrcp.f32 %v5060_v31  ;;  %v7977_v31 = vld [vmem:[#allocation6 + $0x188] sm:$0xff]  }
 0x2b9   : > { %5009 = vmatpush2.bf16.msra.mxu1 %v7895_v7  ;;  %4969 = vmatprep.subr.bf16.mxu0 %v7900_v8  ;;  %v7938_v7 = vld [vmem:[#allocation6 + $0x10] sm:$0xff]   ;;  %v5029_v8 = vsub.f32 0.0, %v8410_v39  ;;  %v7947_v39 = vld [vmem:[#allocation6 + $0x80] sm:$0xff]  }
 0x2ba   : > { %5010 = vmatprep.subr.bf16.mxu1 %v7903_v41  ;;  %v7939_v41 = vld [vmem:[#allocation6 + $0x90] sm:$0xff]  }
 0x2bb   : > { %v5043_v45 = vmul.f32 1.442695, %v5029_v8  ;;  %v7979_v8 = vld [vmem:[#allocation6 + $0x180] sm:$0xff]  }
 0x2bc   : > { %4970 = vmatpush2.bf16.msra.mxu0 %v7898_v44  ;;  %v7941_v44 = vld [vmem:[#allocation6 + $0xc8] sm:$0xff]  }
 0x2bd   : > { %5011 = vmatpush2.bf16.msra.mxu1 %v7901_v2  ;;  %4971 = vmatprep.subr.bf16.mxu0 %v7906_v11  ;;  %v7942_v2 = vld [vmem:[#allocation6 + $0x8] sm:$0xff]   ;;  %8016 = vpow2.f32 %v5043_v45 }
 0x2be   : > { %5012 = vmatprep.subr.bf16.mxu1 %v7909_v33  ;;  %v7943_v11 = vld [vmem:[#allocation6 + $0x88] sm:$0xff]   ;;  %v7944_v33 = vld [vmem:[#allocation6 + $0x40] sm:$0xff]  }
 0x2c0   : > { %4972 = vmatpush2.bf16.msra.mxu0 %v7904_v36  ;;  %v7948_v36 = vld [vmem:[#allocation6 + $0x178] sm:$0xff]  }
 0x2c1   : > { %5013 = vmatpush2.bf16.msra.mxu1 %v7907_v37  ;;  %4973 = vmatprep.subr.bf16.mxu0 %v7912_v34  ;;  %v8011_v37 = vpop.eup %8010 }
 0x2c2   : > { %5014 = vmatprep.subr.bf16.mxu1 %v7915_v50  ;;  %v5085_v53 = vpack.c.bf16 %v8011_v37, %v8011_v37 }
 0x2c4   : > { %4974 = vmatpush2.bf16.msra.mxu0 %v7910_v23  ;;  %v8013_v34 = vpop.eup %8012  ;;  %v7950_v23 = vld [vmem:[#allocation6 + $0x170] sm:$0xff]  }
 0x2c5   : > { %5015 = vmatpush2.bf16.msra.mxu1 %v7913_v54  ;;  %6785 = vmatprep.subr.bf16.mxu0 %v7916_v30  ;;  %v8015_v50 = vpop.eup %8014  ;;  %v5087_v54 = vpack.c.bf16 %v8013_v34, %v8013_v34  ;;  %v7965_v30 = vld [vmem:[#allocation6 + $0x1b8] sm:$0xff]  }
 0x2c6   : > { %6807 = vmatprep.subr.bf16.mxu1 %v7917_v55  ;;  %v5090_v55 = vpack.c.bf16 %v8015_v50, %v8015_v50 }
 0x2c7   : > { %v8421_v3 = vpop.f32.mrf.mxu0  ;;  %4976 = vmatmul.mubr.bf16.vlgmr.msra.gmra.mxu0 %v8327_v16  ;;  %v7926_v16 = vld [vmem:[#allocation6 + $0x28] sm:$0xff]  }
 0x2c8   : > { %v8423_v4 = vpop.f32.mrf.mxu1  ;;  %5017 = vmatmul.mubr.bf16.vlgmr.msra.gmra.mxu1 %v8331_v17  ;;  %6786 = vmatpush3.bf16.msra.mxu0 %v7918_v60  ;;  %v7952_v60 = vld [vmem:[#allocation6 + $0x168] sm:$0xff]  }
 0x2c9   : > { %5774 = vmatprep.mubr.bf16.mxu0 %v5086_v62  ;;  %6808 = vmatpush3.bf16.msra.mxu1 %v7919_v61  ;;  %v8427_v9 = vpop.f32.mrf.mxu0  ;;  %v7967_v61 = vld [vmem:[#allocation6 + $0x1b0] sm:$0xff]   ;;  %v7968_v62 = vld [vmem:[#allocation6 + $0x1e8] sm:$0xff]  }
 0x2ca   : > { %5814 = vmatprep.mubr.bf16.mxu1 %v5088_v5  ;;  %v8429_v10 = vpop.f32.mrf.mxu1  ;;  %6787 = vmatprep.subr.bf16.mxu0 %v7920_v63  ;;  %v7953_v63 = vld [vmem:[#allocation6 + $0x128] sm:$0xff]   ;;  %v8017_v5 = vpop.eup %8016 }
 0x2cb   : > { %6809 = vmatprep.subr.bf16.mxu1 %v7921_v1  ;;  %v4735_v13 = vpop.f32.mrf.mxu0  ;;  %v7954_v1 = vld [vmem:[#allocation6 + $0x160] sm:$0xff]  }
 0x2cc   : > { %v4776_v14 = vpop.f32.mrf.mxu1  ;;  %6788 = vmatpush3.bf16.msra.mxu0 %v7922_v42  ;;  %v7969_v42 = vld [vmem:[#allocation6 + $0x1a8] sm:$0xff]   ;;  %v7956_v13 = vld [vmem:[#allocation6 + $0x158] sm:$0xff]  }
 0x2cd   : > { %6810 = vmatpush3.bf16.msra.mxu1 %v7923_v28  ;;  %v4736_v17 = vpop.f32.mrf.mxu0  ;;  %6789 = vmatprep.subr.bf16.mxu0 %v7924_v59  ;;  %v7970_v28 = vld [vmem:[#allocation6 + $0x1e0] sm:$0xff]  }
 0x2ce   : > { %v4777_v15 = vpop.f32.mrf.mxu1  ;;  %6811 = vmatprep.subr.bf16.mxu1 %v7925_v12  ;;  %v7955_v59 = vld [vmem:[#allocation6 + $0x120] sm:$0xff]   ;;  %v5059_v12 = vadd.f32 1.0, %v8017_v5  ;;  %v7957_v17 = vld [vmem:[#allocation6 + $0x118] sm:$0xff]  }
 0x2cf   : > { %v7971_v14 = vld [vmem:[#allocation6 + $0x1a0] sm:$0xff]   ;;  %v7958_v15 = vld [vmem:[#allocation6 + $0x150] sm:$0xff]   ;;  %v7988_v5 = vld [vmem:[#allocation6 + $0x258] sm:$0xff]  }
 0x2d0   : > { %6790 = vmatpush3.bf16.msra.mxu0 %v7926_v16  ;;  %v7972_v16 = vld [vmem:[#allocation6 + $0x1d8] sm:$0xff]   ;;  %8018 = vrcp.f32 %v5059_v12  ;;  %v7992_v12 = vld [vmem:[#allocation6 + $0x248] sm:$0xff]  }
 0x2d1   : > { %6812 = vmatpush3.bf16.msra.mxu1 %v7927_v18  ;;  %6791 = vmatprep.subr.bf16.mxu0 %v7928_v19  ;;  %v7973_v18 = vld [vmem:[#allocation6 + $0x198] sm:$0xff]   ;;  %v7974_v19 = vld [vmem:[#allocation6 + $0x1d0] sm:$0xff]  }
 0x2d2   : > { %6813 = vmatprep.subr.bf16.mxu1 %v7929_v47  ;;  %v7960_v47 = vld [vmem:[#allocation6 + $0x148] sm:$0xff]  }
 0x2d4   : > { %6792 = vmatpush3.bf16.msra.mxu0 %v7930_v22  ;;  %v7976_v22 = vld [vmem:[#allocation6 + $0x1c8] sm:$0xff]  }
 0x2d5   : > { %6814 = vmatpush3.bf16.msra.mxu1 %v7931_v25  ;;  %6793 = vmatprep.subr.bf16.mxu0 %v7932_v26  ;;  %v7961_v25 = vld [vmem:[#allocation6 + $0x108] sm:$0xff]   ;;  %v7962_v26 = vld [vmem:[#allocation6 + $0x140] sm:$0xff]  }
 0x2d6   : > { %6815 = vmatprep.subr.bf16.mxu1 %v7933_v58  ;;  %v954_v58 = vrot.slane %v8037_v27, %v953_v51 }
 0x2d8   : > { %6794 = vmatpush3.bf16.msra.mxu0 %v7934_v32  ;;  %v7978_v32 = vld [vmem:[#allocation6 + $0x1c0] sm:$0xff]  }
 0x2d9   : > { %6816 = vmatpush3.bf16.msra.mxu1 %v7935_v0  ;;  %6795 = vmatprep.subr.bf16.mxu0 %v7936_v38  ;;  %v958_v0 = vrot.slane %v8037_v27, %v957_v24  ;;  %v7963_v38 = vld [vmem:[#allocation6 + $0x100] sm:$0xff]   ;;  %v924_v27 = vld [vmem:[#allocation4 + $0x8] sm:$0x3] }
 0x2da   : > { %6817 = vmatprep.subr.bf16.mxu1 %v7937_v6 }
 0x2dc   : > { %6796 = vmatpush3.bf16.msra.mxu0 %v7938_v7  ;;  %v4732_v7 = vadd.f32 %v8421_v3, %v954_v58  ;;  %v962_v58 = vrot.slane %v924_v27, %v929_v35 }
 0x2dd   : > { %6818 = vmatpush3.bf16.msra.mxu1 %v7939_v41  ;;  %6797 = vmatprep.subr.bf16.mxu0 %v7940_v43  ;;  %v8019_v6 = vpop.eup %8018  ;;  %v4734_v41 = vadd.f32 %v8427_v9, %v958_v0 }
 0x2de   : > { %6819 = vmatprep.subr.bf16.mxu1 %v7941_v44  ;;  %v5089_v43 = vpack.c.bf16 %v8019_v6, %v8019_v6  ;;  %v4773_v44 = vadd.f32 %v8423_v4, %v4732_v7 }
 0x2e0   : > { %6798 = vmatpush3.bf16.msra.mxu0 %v7942_v2 }
 0x2e1   : > { %6820 = vmatpush3.bf16.msra.mxu1 %v7943_v11  ;;  %6799 = vmatprep.subr.bf16.mxu0 %v7944_v33  ;;  %v4775_v11 = vadd.f32 %v8429_v10, %v4734_v41  ;;  %v7982_v10 = vld [vmem:[#allocation6 + $0x270] sm:$0xff]  }
 0x2e2   : > { %6821 = vmatprep.subr.bf16.mxu1 %v7945_v46 }
 0x2e4   : > { %6800 = vmatpush3.bf16.msra.mxu0 %v7946_v48 }
 0x2e5   : > { %6822 = vmatpush3.bf16.msra.mxu1 %v7947_v39  ;;  %6829 = vmatprep.subr.bf16.mxu0 %v7948_v36 }
 0x2e6   : > { %6851 = vmatprep.subr.bf16.mxu1 %v7964_v49 }
 0x2e7   : > { %5775 = vmatmul.mubr.bf16.vlgmr.msra.gmra.mxu0 %v5085_v53 }
 0x2e8   : > { %5815 = vmatmul.mubr.bf16.vlgmr.msra.gmra.mxu1 %v5087_v54  ;;  %6830 = vmatpush3.bf16.msra.mxu0 %v7949_v52  ;;  %v7981_v54 = vld [vmem:[#allocation6 + $0x238] sm:$0xff]  }
 0x2e9   : > { %5854 = vmatprep.mubr.bf16.mxu0 %v5090_v55  ;;  %6831 = vmatprep.subr.bf16.mxu0 %v7950_v23  ;;  %v7980_v23 = vld [vmem:[#allocation6 + $0x278] sm:$0xff]   ;;  %v7984_v55 = vld [vmem:[#allocation6 + $0x268] sm:$0xff]  }
 0x2ea   : > { %6852 = vmatpush3.bf16.msra.mxu1 %v7965_v30  ;;  %v7983_v30 = vld [vmem:[#allocation6 + $0x230] sm:$0xff]  }
 0x2eb   : > { %6853 = vmatprep.subr.bf16.mxu1 %v7966_v56  ;;  %v7985_v56 = vld [vmem:[#allocation6 + $0x228] sm:$0xff]  }
 0x2ec   : > { %6832 = vmatpush3.bf16.msra.mxu0 %v7951_v57 }
 0x2ed   : > { %6833 = vmatprep.subr.bf16.mxu0 %v7952_v60 }
 0x2ee   : > { %6854 = vmatpush3.bf16.msra.mxu1 %v7967_v61  ;;  %v7986_v61 = vld [vmem:[#allocation6 + $0x260] sm:$0xff]  }
 0x2ef   : > { %6855 = vmatprep.subr.bf16.mxu1 %v7968_v62 }
 0x2f0   : > { %6834 = vmatpush3.bf16.msra.mxu0 %v7953_v63  ;;  %v7987_v63 = vld [vmem:[#allocation6 + $0x220] sm:$0xff]  }
 0x2f1   : > { %6835 = vmatprep.subr.bf16.mxu0 %v7954_v1 }
 0x2f2   : > { %6856 = vmatpush3.bf16.msra.mxu1 %v7969_v42  ;;  %v7989_v42 = vld [vmem:[#allocation6 + $0x218] sm:$0xff]  }
 0x2f3   : > { %6857 = vmatprep.subr.bf16.mxu1 %v7970_v28  ;;  %v7990_v28 = vld [vmem:[#allocation6 + $0x250] sm:$0xff]  }
 0x2f4   : > { %6836 = vmatpush3.bf16.msra.mxu0 %v7955_v59  ;;  %v7991_v59 = vld [vmem:[#allocation6 + $0x210] sm:$0xff]  }
 0x2f5   : > { %6837 = vmatprep.subr.bf16.mxu0 %v7956_v13  ;;  %v7993_v13 = vld [vmem:[#allocation6 + $0x208] sm:$0xff]  }
 0x2f6   : > { %6858 = vmatpush3.bf16.msra.mxu1 %v7971_v14 }
 0x2f7   : > { %6859 = vmatprep.subr.bf16.mxu1 %v7972_v16  ;;  %v7994_v16 = vld [vmem:[#allocation6 + $0x240] sm:$0xff]  }
 0x2f8   : > { %6838 = vmatpush3.bf16.msra.mxu0 %v7957_v17  ;;  %v7995_v17 = vld [vmem:[#allocation6 + $0x200] sm:$0xff]  }
 0x2f9   : > { %6839 = vmatprep.subr.bf16.mxu0 %v7958_v15 }
 0x2fa   : > { %6860 = vmatpush3.bf16.msra.mxu1 %v7973_v18 }
 0x2fb   : > { %6861 = vmatprep.subr.bf16.mxu1 %v7974_v19 }
 0x2fc   : > { %6840 = vmatpush3.bf16.msra.mxu0 %v7959_v20 }
 0x2fd   : > { %6841 = vmatprep.subr.bf16.mxu0 %v7960_v47 }
 0x2fe   : > { %6862 = vmatpush3.bf16.msra.mxu1 %v7975_v21 }
 0x2ff   : > { %6863 = vmatprep.subr.bf16.mxu1 %v7976_v22 }
 0x300   : > { %6842 = vmatpush3.bf16.msra.mxu0 %v7961_v25 }
 0x301   : > { %6843 = vmatprep.subr.bf16.mxu0 %v7962_v26 }
 0x302   : > { %6864 = vmatpush3.bf16.msra.mxu1 %v7977_v31  ;;  %v966_v31 = vrot.slane %v924_v27, %v933_v40 }
 0x303   : > { %6865 = vmatprep.subr.bf16.mxu1 %v7978_v32 }
 0x304   : > { %6844 = vmatpush3.bf16.msra.mxu0 %v7963_v38 }
 0x305   : > { %6873 = vmatprep.subr.bf16.mxu0 %v7980_v23 }
 0x306   : > { %6866 = vmatpush3.bf16.msra.mxu1 %v7979_v8 }
 0x307   : > { %v4813_v2 = vpop.f32.mrf.mxu0  ;;  %5855 = vmatmul.mubr.bf16.vlgmr.msra.gmra.mxu0 %v5089_v43 }
 0x308   : > { %v4854_v45 = vpop.f32.mrf.mxu1  ;;  %v4814_v33 = vadd.f32 %v4813_v2, %v4773_v44  ;;  %6874 = vmatpush3.bf16.msra.mxu0 %v7981_v54 }
 0x309   : > { %v4815_v46 = vpop.f32.mrf.mxu0  ;;  %6875 = vmatprep.subr.bf16.mxu0 %v7982_v10 }
 0x30a   : > { %v4856_v48 = vpop.f32.mrf.mxu1  ;;  %v4855_v39 = vadd.f32 %v4854_v45, %v4814_v33  ;;  %v4816_v3 = vadd.f32 %v4815_v46, %v4775_v11 }
 0x30b   : > { %v4817_v36 = vpop.f32.mrf.mxu0 }
 0x30c   : > { %v4858_v37 = vpop.f32.mrf.mxu1  ;;  %v5031_v49 = vsub.f32 0.0, %v4855_v39  ;;  %v4857_v34 = vadd.f32 %v4856_v48, %v4816_v3  ;;  %6876 = vmatpush3.bf16.msra.mxu0 %v7983_v30 }
 0x30d   : > { %v4818_v9 = vpop.f32.mrf.mxu0  ;;  %6877 = vmatprep.subr.bf16.mxu0 %v7984_v55 }
 0x30e   : > { %v4859_v50 = vpop.f32.mrf.mxu1  ;;  %v5047_v52 = vmul.f32 1.442695, %v5031_v49  ;;  %v5032_v53 = vsub.f32 0.0, %v4857_v34 }
 0x310   : > { %8020 = vpow2.f32 %v5047_v52  ;;  %v5049_v4 = vmul.f32 1.442695, %v5032_v53  ;;  %6878 = vmatpush3.bf16.msra.mxu0 %v7985_v56  ;;  %v6701_v52 = vld [vmem:[#allocation7] ss:$0 sm:$0xff] }
 0x311   : > { %6879 = vmatprep.subr.bf16.mxu0 %v7986_v61 }
 0x312   : > { %8022 = vpow2.f32 %v5049_v4 }
 0x314   : > { %6880 = vmatpush3.bf16.msra.mxu0 %v7987_v63 }
 0x315   : > { %6881 = vmatprep.subr.bf16.mxu0 %v7988_v5 }
 0x318   : > { %6882 = vmatpush3.bf16.msra.mxu0 %v7989_v42 }
 0x319   : > { %6883 = vmatprep.subr.bf16.mxu0 %v7990_v28 }
 0x31c   : > { %6884 = vmatpush3.bf16.msra.mxu0 %v7991_v59 }
 0x31d   : > { %v8021_v57 = vpop.eup %8020  ;;  %6885 = vmatprep.subr.bf16.mxu0 %v7992_v12 }
 0x31e   : > { %v5061_v60 = vadd.f32 1.0, %v8021_v57 }
 0x31f   : > { %v8023_v62 = vpop.eup %8022 }
 0x320   : > { %v5062_v1 = vadd.f32 1.0, %v8023_v62  ;;  %8024 = vrcp.f32 %v5061_v60  ;;  %6886 = vmatpush3.bf16.msra.mxu0 %v7993_v13 }
 0x321   : > { %6887 = vmatprep.subr.bf16.mxu0 %v7994_v16 }
 0x322   : > { %8026 = vrcp.f32 %v5062_v1 }
 0x324   : > { %6888 = vmatpush3.bf16.msra.mxu0 %v7995_v17 }
 0x32d   : > { %v8025_v14 = vpop.eup %8024 }
 0x32e   : > { %v5091_v19 = vpack.c.bf16 %v8025_v14, %v8025_v14 }
 0x32f   : > { %v8027_v15 = vpop.eup %8026 }
 0x330   : > { %v5092_v18 = vpack.c.bf16 %v8027_v15, %v8027_v15 }
 0x332   : > { %5894 = vmatprep.mubr.bf16.mxu1 %v5092_v18 }
 0x333   : > { %5895 = vmatmul.mubr.bf16.vlgmr.msra.gmra.mxu1 %v5091_v19 }
 0x347   : > { %v4895_v20 = vpop.f32.mrf.mxu0 }
 0x348   : > { %v4936_v47 = vpop.f32.mrf.mxu1  ;;  %v4896_v32 = vadd.f32 %v4895_v20, %v962_v58 }
 0x349   : > { %v4897_v51 = vpop.f32.mrf.mxu0 }
 0x34a   : > { %v4938_v21 = vpop.f32.mrf.mxu1  ;;  %v4898_v0 = vadd.f32 %v4897_v51, %v966_v31  ;;  %v4937_v38 = vadd.f32 %v4936_v47, %v4896_v32 }
 0x34b   : > { %v4899_v22 = vpop.f32.mrf.mxu0 }
 0x34c   : > { %v4940_v24 = vpop.f32.mrf.mxu1  ;;  %v4939_v8 = vadd.f32 %v4938_v21, %v4898_v0 }
 0x34d   : > { %v4900_v25 = vpop.f32.mrf.mxu0 }
 0x34e   : > { %v4941_v26 = vpop.f32.mrf.mxu1 }
 0x387   : > { %v4977_v6 = vpop.f32.mrf.mxu0 }
 0x388   : > { %v5018_v7 = vpop.f32.mrf.mxu1  ;;  %v4978_v41 = vadd.f32 %v4977_v6, %v4937_v38 }
 0x389   : > { %v4979_v43 = vpop.f32.mrf.mxu0 }
 0x38a   : > { %v5020_v44 = vpop.f32.mrf.mxu1  ;;  %v5019_v2 = vadd.f32 %v5018_v7, %v4978_v41  ;;  %v4980_v45 = vadd.f32 %v4979_v43, %v4939_v8 }
 0x38b   : > { %v4981_v11 = vpop.f32.mrf.mxu0 }
 0x38c   : > { %v5022_v33 = vpop.f32.mrf.mxu1  ;;  %v5033_v46 = vsub.f32 0.0, %v5019_v2  ;;  %v5021_v48 = vadd.f32 %v5020_v44, %v4980_v45 }
 0x38d   : > { %v4982_v39 = vpop.f32.mrf.mxu0 }
 0x38e   : > { %v5023_v35 = vpop.f32.mrf.mxu1  ;;  %v5051_v3 = vmul.f32 1.442695, %v5033_v46  ;;  %v5034_v29 = vsub.f32 0.0, %v5021_v48 }
 0x390   : > { %8028 = vpow2.f32 %v5051_v3  ;;  %v5053_v40 = vmul.f32 1.442695, %v5034_v29 }
 0x392   : > { %8030 = vpow2.f32 %v5053_v40 }
 0x39d   : > { %v8029_v36 = vpop.eup %8028 }
 0x39e   : > { %v5063_v37 = vadd.f32 1.0, %v8029_v36 }
 0x39f   : > { %v8031_v49 = vpop.eup %8030 }
 0x3a0   : > { %v5064_v34 = vadd.f32 1.0, %v8031_v49  ;;  %8032 = vrcp.f32 %v5063_v37 }
 0x3a2   : > { %8034 = vrcp.f32 %v5064_v34 }
 0x3a7   : > { %v6801_v9 = vpop.f32.mrf.mxu0 }
 0x3a8   : > { %v6823_v50 = vpop.f32.mrf.mxu1 }
 0x3a9   : > { %v6802_v53 = vpop.f32.mrf.mxu0 }
 0x3aa   : > { %v6803_v4 = vadd.f32 %v6802_v53, %v6801_v9  ;;  %v6824_v23 = vpop.f32.mrf.mxu1 }
 0x3ab   : > { %v6825_v54 = vadd.f32 %v6824_v23, %v6823_v50  ;;  %v6804_v10 = vpop.f32.mrf.mxu0 }
 0x3ac   : > { %v5777_v30 = vadd.f32 %v6803_v4, %v6701_v52  ;;  %v6826_v55 = vpop.f32.mrf.mxu1 }
 0x3ad   : > { %v6805_v56 = vpop.f32.mrf.mxu0  ;;  %v8033_v57 = vpop.eup %8032 }
 0x3ae   : > { %v5817_v60 = vadd.f32 %v6825_v54, %v5777_v30  ;;  %v6827_v61 = vpop.f32.mrf.mxu1  ;;  %v5093_v1 = vpack.c.bf16 %v8033_v57, %v8033_v57 }
 0x3af   : > { %v8035_v62 = vpop.eup %8034 }
 0x3b0   : > { %v5094_v63 = vpack.c.bf16 %v8035_v62, %v8035_v62 }
 0x3b2   : > { %5934 = vmatprep.mubr.bf16.mxu0 %v5094_v63 }
 0x3b3   : > { %5935 = vmatmul.mubr.bf16.vlgmr.msra.gmra.mxu0 %v5093_v1 }
 0x3c7   : > { %v6845_v5 = vpop.f32.mrf.mxu0 }
 0x3c9   : > { %v6846_v42 = vpop.f32.mrf.mxu0 }
 0x3ca   : > { %v6847_v28 = vadd.f32 %v6846_v42, %v6845_v5 }
 0x3cb   : > { %v6848_v59 = vpop.f32.mrf.mxu0 }
 0x3cc   : > { %v5857_v12 = vadd.f32 %v6847_v28, %v5817_v60 }
 0x3cd   : > { %v6849_v13 = vpop.f32.mrf.mxu0 }
 0x3f3   : > { %v6867_v14 = vpop.f32.mrf.mxu1 }
 0x3f5   : > { %v6868_v16 = vpop.f32.mrf.mxu1 }
 0x3f6   : > { %v6869_v17 = vadd.f32 %v6868_v16, %v6867_v14 }
 0x3f7   : > { %v6870_v15 = vpop.f32.mrf.mxu1 }
 0x3f8   : > { %v5897_v18 = vadd.f32 %v6869_v17, %v5857_v12 }
 0x3f9   : > { %v6871_v19 = vpop.f32.mrf.mxu1 }
 0x473   : > { %v6889_v20 = vpop.f32.mrf.mxu0 }
 0x475   : > { %v6890_v47 = vpop.f32.mrf.mxu0 }
 0x476   : > { %v6891_v51 = vadd.f32 %v6890_v47, %v6889_v20 }
 0x477   : > { %v6892_v21 = vpop.f32.mrf.mxu0 }
 0x478   : > { %v5937_v22 = vadd.f32 %v6891_v51, %v5897_v18 }
 0x479   : > { %v6893_v24 = vpop.f32.mrf.mxu0 }
 0x47a   : > { %5942 = vst [vmem:[%s277_s6] sm:$0xff] %v5937_v22 }
 0x47b PF: > { %s18_s18 = sadd.s32 1, %s8160_s18  }
 0x47c   : > { %p15_p3 = scmp.ge.s32.totalorder %s18_s18, 4  }
 0x47e   :  { %17 = sbr.rel (!%p15_p3) target bundleno = 3 (0x3), region = 87 }
 0x483   :  { %5962 = vsyncpa [#allocation3], 1 }
 0x484   :  { %5964 = vsyncpa [#allocation3 + $0x1], 1 }
 0x485   :  { %5965 = vsyncpa [#allocation5], 1 }
 0x486   :  { %5966 = vsyncpa [#allocation8], 1 }

</bundles_post_ra>
